<compile_context>
chip_gen: v6e
topology: v6e:2x2x1
jax: 0.10.0
libtpu: 0.0.40
codegen_flags: <defaults>
</compile_context>

<pallas_src>
import jax
import jax.numpy as jnp
from jax.experimental import pallas as pl
from jax.experimental.pallas import tpu as pltpu


def _conv1x1_kernel(x_ref, w_ref, o_ref):
    # x_ref: (M, K) activations (f32 or bf16) -- cast to bf16 on the VPU here
    #        so callers never need a separate astype op.
    # w_ref: (K, TN) bf16 weight column tile (the streamed operand).
    # o_ref: (M, TN) f32 output tile (lane-dense).
    x_bf = x_ref[...].astype(jnp.bfloat16)
    o_ref[...] = jnp.dot(
        x_bf, w_ref[...], preferred_element_type=jnp.float32
    ).astype(o_ref.dtype)


def prepare_weight_kn(weight_oihw, dtype=jnp.bfloat16):
    """One-time weight prep (call at init, NOT per forward).

    [Cout, Cin, 1, 1] (PyTorch OIHW) -> [K, N] = [Cin, Cout] in bf16.
    """
    Cout, Cin, kh, kw = weight_oihw.shape
    assert (kh, kw) == (1, 1)
    return jnp.transpose(weight_oihw.reshape(Cout, Cin), (1, 0)).astype(dtype)


def _pick_tn(N, K, M, *, w_itemsize=2, o_itemsize=4,
             vmem_budget=16 << 20, target_grid=2):
    """Pick the N tile.

    Prefer grid == target_grid (2): balanced 1-step-per-core split on v7x's
    two TensorCores and minimal per-step overhead on single-TC v5e/v6e.
    Fall back to the largest 128-aligned divisor of N whose double-buffered
    weight + output tiles fit the VMEM budget.
    """
    def fits(tn):
        need = 2 * K * tn * w_itemsize + 2 * M * tn * o_itemsize
        return need <= vmem_budget

    cand = N // target_grid
    if N % target_grid == 0 and cand % 128 == 0 and fits(cand):
        return cand
    best = None
    for tn in range(128, N + 1, 128):
        if N % tn == 0 and fits(tn):
            best = tn
    if best is None:
        raise ValueError(f"No legal 128-aligned N tile for N={N}")
    return best


def conv2d_1x1_mk(x_mk, w_kn, *, tn=None):
    """[M, K] x [K, N] -> [M, N] f32 via a Pallas kernel tiled over N only."""
    M, K = x_mk.shape
    K2, N = w_kn.shape
    assert K == K2
    if tn is None:
        tn = _pick_tn(N, K, M)
    assert N % tn == 0 and tn % 128 == 0

    out_dtype = jnp.float32
    bytes_accessed = (
        x_mk.size * x_mk.dtype.itemsize
        + w_kn.size * w_kn.dtype.itemsize
        + M * N * jnp.dtype(out_dtype).itemsize
    )
    cost = pl.CostEstimate(
        flops=2 * M * K * N, transcendentals=0, bytes_accessed=bytes_accessed
    )

    return pl.pallas_call(
        _conv1x1_kernel,
        out_shape=jax.ShapeDtypeStruct((M, N), out_dtype),
        grid_spec=pltpu.PrefetchScalarGridSpec(
            num_scalar_prefetch=0,
            grid=(N // tn,),
            in_specs=[
                # Full activations; same block every step -> DMA'd once.
                pl.BlockSpec((M, K), lambda j: (0, 0)),
                # Weight column tile streamed over N (dominant HBM traffic).
                pl.BlockSpec((K, tn), lambda j: (0, j)),
            ],
            out_specs=pl.BlockSpec((M, tn), lambda j: (0, j)),
        ),
        compiler_params=pltpu.CompilerParams(
            dimension_semantics=("parallel",),  # 1 step / core on v7x at grid=2
            vmem_limit_bytes=24 << 20,
        ),
        cost_estimate=cost,
    )(x_mk, w_kn)


def conv2d_1x1_nhwc(x_nhwc, w_kn, *, tn=None):
    """Fast path: NHWC in, NHWC out. Zero wrapper XLA ops (reshapes are free)."""
    B, H, W, Cin = x_nhwc.shape
    K, N = w_kn.shape
    assert K == Cin
    out_mn = conv2d_1x1_mk(x_nhwc.reshape(B * H * W, Cin), w_kn, tn=tn)
    return out_mn.reshape(B, H, W, N)


def conv2d_1x1(x_nchw, w_kn, *, tn=None):
    """PyTorch-compatible wrapper: NCHW in, NCHW out, bias=False.

    x_nchw: [B, Cin, H, W] float; w_kn: [Cin, Cout] from prepare_weight_kn().
    Returns [B, Cout, H, W] float32.
    """
    B, Cin, H, W = x_nchw.shape
    K, N = w_kn.shape
    assert K == Cin

    # NCHW -> [M, K] bf16: one small (125 KB) fused transpose+cast, kept only
    # to honor the PyTorch layout. Use conv2d_1x1_nhwc in an NHWC model.
    x_mk = (
        jnp.transpose(x_nchw, (0, 2, 3, 1))
        .reshape(B * H * W, Cin)
        .astype(w_kn.dtype)
    )
    out_mn = conv2d_1x1_mk(x_mk, w_kn, tn=tn)

    # NHWC -> NCHW only for PyTorch-contract compatibility; the kernel output
    # itself is lane-dense (M, N).
    return jnp.transpose(out_mn.reshape(B, H, W, N), (0, 3, 1, 2))


if __name__ == "__main__":
    key = jax.random.PRNGKey(0)
    kx, kw = jax.random.split(key)

    # Shapes from the module: x825 = [1, 640, 7, 7], Conv2d(640 -> 3840, 1x1).
    B, Cin, H, W, Cout = 1, 640, 7, 7, 3840
    x = jax.random.normal(kx, (B, Cin, H, W), dtype=jnp.float32)
    w = jax.random.normal(kw, (Cout, Cin, 1, 1), dtype=jnp.float32) * (
        1.0 / (Cin ** 0.5)
    )

    # Weight prep happens ONCE, outside the hot (jitted) forward path.
    w_kn = jax.block_until_ready(prepare_weight_kn(w))

    # PyTorch-compatible NCHW forward.
    fwd = jax.jit(conv2d_1x1)
    out = fwd(x, w_kn)
    jax.block_until_ready(out)
    assert out.shape == (B, Cout, H, W)

    # NHWC fast path (zero wrapper ops) must agree with the compat path.
    fwd_nhwc = jax.jit(conv2d_1x1_nhwc)
    out_nhwc = fwd_nhwc(jnp.transpose(x, (0, 2, 3, 1)), w_kn)
    jax.block_until_ready(out_nhwc)
    assert jnp.allclose(
        jnp.transpose(out_nhwc, (0, 3, 1, 2)), out, atol=2e-2, rtol=2e-2
    )

    # Tight check against a reference using the same bf16-rounded inputs
    # (f32 accumulate), so only MXU accumulation-order differences remain.
    x_bf = x.astype(jnp.bfloat16).astype(jnp.float32)
    w_bf = w.reshape(Cout, Cin).astype(jnp.bfloat16).astype(jnp.float32)
    ref_bf = jnp.einsum(
        "bchw,oc->bohw", x_bf, w_bf, precision=jax.lax.Precision.HIGHEST
    )
    assert jnp.allclose(out, ref_bf, atol=2e-2, rtol=2e-2)

    # Loose sanity check against the pure-f32 PyTorch-equivalent conv
    # (bf16 inputs introduce ~1e-2 absolute deviation on unit-scale outputs).
    ref_f32 = jnp.einsum(
        "bchw,oc->bohw", x, w.reshape(Cout, Cin),
        precision=jax.lax.Precision.HIGHEST,
    )
    assert jnp.allclose(out, ref_f32, atol=1e-1, rtol=1e-1)

    print("KERNEL_OK")
</pallas_src>

<mosaic_0001>
module attributes {stable_mosaic.version = 11 : i64} {
  func.func @_conv1x1_kernel(%arg0: i32, %arg1: memref<49x640xbf16, #tpu.memory_space<vmem>>, %arg2: memref<640x1920xbf16, #tpu.memory_space<vmem>>, %arg3: memref<49x1920xf32, #tpu.memory_space<vmem>>) attributes {dimension_semantics = [#tpu.dimension_semantics<parallel>], iteration_bounds = array<i64: 2>, scalar_prefetch = 0 : i64, scratch_operands = 0 : i64, tpu.core_type = #tpu.core_type<tc>, window_params = [{pipeline_mode = #tpu.pipeline_mode<synchronous>, transform_indices = @transform_0, window_bounds = array<i64: 49, 640>}, {transform_indices = @transform_1, window_bounds = array<i64: 640, 1920>}, {transform_indices = @transform_2, window_bounds = array<i64: 49, 1920>}]} {
    %c0 = arith.constant 0 : index
    %c0_0 = arith.constant 0 : index
    %0 = vector.load %arg1[%c0, %c0_0] : memref<49x640xbf16, #tpu.memory_space<vmem>>, vector<49x640xbf16>
    %c0_1 = arith.constant 0 : index
    %c0_2 = arith.constant 0 : index
    %1 = vector.load %arg2[%c0_1, %c0_2] : memref<640x1920xbf16, #tpu.memory_space<vmem>>, vector<640x1920xbf16>
    %cst = arith.constant dense<0.000000e+00> : vector<49x1920xf32>
    %2 = tpu.matmul %0, %1, %cst {dimension_numbers = #tpu.dot_dimension_numbers<[1], [0], [0], [1], [0, 0, 1, 1], [], []>} : vector<49x640xbf16>, vector<640x1920xbf16>, vector<49x1920xf32> -> vector<49x1920xf32>
    %c0_3 = arith.constant 0 : index
    %c0_4 = arith.constant 0 : index
    %3 = vector.load %arg3[%c0_3, %c0_4] : memref<49x1920xf32, #tpu.memory_space<vmem>>, vector<49x1920xf32>
    tpu.vector_store %arg3[%c0_3, %c0_4], %2 {strides = array<i32>} : memref<49x1920xf32, #tpu.memory_space<vmem>>, vector<49x1920xf32>,
    return
  }
  func.func @transform_0(%arg0: i32) -> (i32, i32) {
    %c0_i32 = arith.constant 0 : i32
    %c0_i32_0 = arith.constant 0 : i32
    %c0_i32_1 = arith.constant 0 : i32
    return %c0_i32, %c0_i32_0 : i32, i32
  }
  func.func @transform_1(%arg0: i32) -> (i32, i32) {
    %c0_i32 = arith.constant 0 : i32
    %c0_i32_0 = arith.constant 0 : i32
    return %c0_i32, %arg0 : i32, i32
  }
  func.func @transform_2(%arg0: i32) -> (i32, i32) {
    %c0_i32 = arith.constant 0 : i32
    %c0_i32_0 = arith.constant 0 : i32
    return %c0_i32, %arg0 : i32, i32
  }
}

</mosaic_0001>

<bundles_post_ra>
// kernel: conv2d_1x1.1
= control target key start
LH: loop header
LB: loop body
LE: loop exit
PB: predicated region body
PF: predicated region fallthrough
CT: control target
= control target key end

     0   :  { %7 = vsyncpa [#allocation3], 0  ;;  %s9808_s0 = inlined_call_operand.vmem [shape: bf16[49,640], index: 0, kind: input, shape index: {}]   ;;  %s9809_s1 = inlined_call_operand.hbm [shape: bf16[640,3840], index: 1, kind: input, shape index: {}]   ;;  %s9810_s2 = inlined_call_operand.vmem [shape: f32[49,3840], index: 2, kind: output, shape index: {}]  }
   0x1   :  { %9 = vsyncpa [#allocation3 + $0x1], 0  ;;  %s7873_s9 = smov 0   ;;  %s7875_s10 = smov 0  }
   0x2   :  { %s7877_s11 = smov 0   ;;  %s7879_s12 = smov 0  }
   0x3 LB: > { %s7892_s13 = sadd.s32 4294967295, %s7851_s12   ;;  %s7895_s14 = sadd.s32 1, %s7851_s12   ;;  %s7851_s12 = sphi %s7879_s12, %s9820_s12   ;;  %s7847_s11 = sphi %s7877_s11, %s9819_s11   ;;  %s7843_s10 = sphi %s7875_s10, %s9818_s10   ;;  %s7839_s9 = sphi %s7873_s9, %s9817_s9  }
   0x4   : > { %s40_s15 = ssub.s32 %s7851_s12, %s7895_s14  ;;  %s43_s16 = sadd.s32 1, %s7847_s11 }
   0x5   : > { %p41_p0 = scmp.eq.s32.totalorder %s40_s15, 0  ;;  %p50_p1 = scmp.ne.s32.totalorder %s7847_s11, %s7843_s10 }
   0x6   : > { %p51_p2 = scmp.eq.s32.totalorder %s7851_s12, 0  ;;  %p56_p3 = scmp.ne.s32.totalorder %s7843_s10, %s7839_s9 }
   0x7   : > { %s7905_s17 = scalar_select %p41_p0, %s7847_s11, %s43_s16  }
   0x8   : > { %p52_p4 = por %p51_p2, %p50_p1  ;;  %p57_p5 = scmp.eq.s32.totalorder %s7892_s13, 0 }
   0x9   : > { %p80_p6 = scmp.eq.s32.totalorder %s7892_s13, 1  ;;  %p6798_p8 = scmp.lt.s32.totalorder %s7851_s12, 2 }
   0xa   : > { %p7909_p7 = por %p57_p5, %p56_p3  ;;  %s109_s20 = sand.u32 1, %s7847_s11  }
   0xb   : > { %p7914_p9 = por %p80_p6, %p50_p1  ;;  %s6789_s21 = smul.u32 4800, %s109_s20 }
   0xc   : > { %s9812_s18 = scalar_select %p7909_p7, 1, 0 }
   0xd   : > { %s9813_s19 = scalar_select %p7914_p9, 1, 0 }
   0xe   : > { %s6671_s22 = smul.u32 960, %s7851_s12  ;;  %p7920_p10 = pnand %p6798_p8, %p52_p4 }
   0xf   : > { %s113_s27 = scalar_lea.vmem [#allocation2], %s6789_s21  ;;  %s7931_s29 = scalar_lea.sflag [#allocation3], %s109_s20 }
  0x10   : > { %s7927_s26 = scalar_lea.hbm %s9809_s1, %s6671_s22  ;;  %s120_s28 = sshll.u32 %s113_s27, 4  ;;  %s7929_s28 = int_to_ptr.vmem [resolvable:$true] %s120_s28 }
  0x11   : > { %s7789_s30 = scalar_lea.hbm %s7927_s26, 76800  ;;  %p7791_p12 = pneg %p7920_p10 }
  0x12   : > { %p7790_p11 = scmp.ne.s32.totalorder %s7927_s26, %s7789_s30  ;;  %s7794_s5 = scalar_lea.hbm %s9809_s1, 153600 }
  0x13   : > { %p7795_p1 = scmp.lt.s32.totalorder %s7927_s26, %s9809_s1  ;;  %p7796_p2 = scmp.lt.s32.totalorder %s7794_s5, %s7789_s30 }
  0x14   : > { %p7792_p13 = pnand %p7791_p12, %p7790_p11 }
  0x15   : > { %p7797_p3 = por %p7796_p2, %p7795_p1 }
  0x16   : > { %p7793_p0 = pneg %p7792_p13 }
  0x18   : > { %p7798_p4 = pnand %p7797_p3, %p7793_p0 }
  0x1a   : > { %7801 = shalt.err (!%p7798_p4)
}
  0x1b   : > { %s7802_s8 = scalar_lea.vmem %s7929_s28, 76800  ;;  %s7853_s9 = smov [#allocation2]  }
  0x1c   : > { %p7803_p5 = scmp.ne.s32.totalorder %s7929_s28, %s7802_s8  ;;  %s7807_s15 = sshll.u32 %s7853_s9, 4  ;;  %s7808_s15 = int_to_ptr.vmem [resolvable:$false] %s7807_s15 }
  0x1d   : > { %s7809_s16 = scalar_lea.vmem %s7808_s15, 153600  ;;  %p7810_p11 = scmp.lt.s32.totalorder %s7929_s28, %s7808_s15 }
  0x1e   : > { %p7805_p6 = pnand %p7803_p5, %p7791_p12  ;;  %p7811_p13 = scmp.lt.s32.totalorder %s7809_s16, %s7802_s8 }
  0x20   : > { %p7806_p8 = pneg %p7805_p6  ;;  %p7812_p9 = por %p7811_p13, %p7810_p11 }
  0x22   : > { %p7813_p7 = pnand %p7812_p9, %p7806_p8 }
  0x24   : > { %7816 = shalt.err (!%p7813_p7)
}
  0x25   : > { %s7854_s20 = smov 1920   ;;  %s7855_s21 = smov 960  }
  0x26   : > { %s7856_s22 = smov 60   ;;  %p6047_p12 = scmp.ge.s32.totalorder %s7851_s12, 1 }
  0x27   : > { %6797 = dma.hbm_to_vmem [thread:$0]  (!%p7920_p10), %s7927_s26, 76800, %s7929_s28, %s7931_s29, %s7854_s20, %s7855_s21, %s7856_s22  }
  0x28   : > { %p128_p0 = scmp.lt.s32.totalorder %s7851_s12, 3 }
  0x2a   : > { %p129_p1 = pnand %p6047_p12, %p128_p0 }
  0x2b   : > { %s7955_s24 = sand.u32 (!%p129_p1), 1, %s7843_s10   ;;  %p9815_p7 = scmp.ne.s32.totalorder (!%p129_p1), %s9812_s18, 0 }
  0x2c   : > { %132 = sbr.rel (%p129_p1) target bundleno = 904 (0x388), region = 28  ;;  %s135_s27 = scalar_lea.sflag (!%p129_p1), [#allocation3], %s7955_s24 }
  0x2d   : > { %s6790_s25 = smul.u32 (!%p129_p1), 4800, %s7955_s24 }
  0x2f   : > { %s7959_s30 = scalar_lea.vmem (!%p129_p1), [#allocation2], %s6790_s25 }
  0x31   : > { %7834 = dma.done.wait (%p9815_p7), %s135_s27, 76800  }
  0x32   : > { %7836 = vsyncadd (%p9815_p7), %s135_s27, 4294890496  ;;  %v6835_v0 = vld [vmem:[%s7959_s30 + $0x34c] ss:$60 sps:$4 sm:$0xff]   ;;  %v6841_v4 = vld [vmem:[%s7959_s30 + $0x2d4] ss:$60 sps:$4 sm:$0xff]   ;;  %s6791_s5 = smul.u32 840, %s7955_s24 }
  0x33   : > { %v6837_v1 = vld [vmem:[%s7959_s30 + $0xacc] ss:$60 sps:$4 sm:$0xff]   ;;  %3958 = vmatprep.subr.bf16.mxu0 %v6835_v0  ;;  %v6843_v5 = vld [vmem:[%s7959_s30 + $0xa54] ss:$60 sps:$4 sm:$0xff]   ;;  %v6847_v8 = vld [vmem:[%s7959_s30 + $0x25c] ss:$60 sps:$4 sm:$0xff]  }
  0x34   : > { %v6839_v2 = vld [vmem:[%s7959_s30 + $0x348] ss:$60 sps:$4 sm:$0xff]   ;;  %4029 = vmatprep.subr.bf16.mxu1 %v6837_v1  ;;  %v6845_v6 = vld [vmem:[%s7959_s30 + $0x2d0] ss:$60 sps:$4 sm:$0xff]   ;;  %v6849_v9 = vld [vmem:[%s7959_s30 + $0x9dc] ss:$60 sps:$4 sm:$0xff]  }
  0x35   : > { %v6840_v3 = vld [vmem:[%s7959_s30 + $0xac8] ss:$60 sps:$4 sm:$0xff]   ;;  %3959 = vmatpush1.bf16.msra.mxu0 %v6839_v2  ;;  %v6846_v7 = vld [vmem:[%s7959_s30 + $0xa50] ss:$60 sps:$4 sm:$0xff]   ;;  %v6851_v10 = vld [vmem:[%s7959_s30 + $0x258] ss:$60 sps:$4 sm:$0xff]  }
  0x36   : > { %4030 = vmatpush1.bf16.msra.mxu1 %v6840_v3  ;;  %3960 = vmatprep.subr.bf16.mxu0 %v6841_v4  ;;  %v6852_v11 = vld [vmem:[%s7959_s30 + $0x9d8] ss:$60 sps:$4 sm:$0xff]   ;;  %v6853_v12 = vld [vmem:[%s7959_s30 + $0x1e4] ss:$60 sps:$4 sm:$0xff]   ;;  %v6859_v16 = vld [vmem:[%s7959_s30 + $0x16c] ss:$60 sps:$4 sm:$0xff]  }
  0x37   : > { %4031 = vmatprep.subr.bf16.mxu1 %v6843_v5  ;;  %v6855_v13 = vld [vmem:[%s7959_s30 + $0x964] ss:$60 sps:$4 sm:$0xff]   ;;  %v6861_v17 = vld [vmem:[%s7959_s30 + $0x8ec] ss:$60 sps:$4 sm:$0xff]   ;;  %v6865_v20 = vld [vmem:[%s7959_s30 + $0xf4] ss:$60 sps:$4 sm:$0xff]  }
  0x38   : > { %v6857_v14 = vld [vmem:[%s7959_s30 + $0x1e0] ss:$60 sps:$4 sm:$0xff]   ;;  %v6863_v18 = vld [vmem:[%s7959_s30 + $0x168] ss:$60 sps:$4 sm:$0xff]   ;;  %v6867_v21 = vld [vmem:[%s7959_s30 + $0x874] ss:$60 sps:$4 sm:$0xff]  }
  0x39   : > { %3961 = vmatpush1.bf16.msra.mxu0 %v6845_v6  ;;  %v6858_v15 = vld [vmem:[%s7959_s30 + $0x960] ss:$60 sps:$4 sm:$0xff]   ;;  %v6864_v19 = vld [vmem:[%s7959_s30 + $0x8e8] ss:$60 sps:$4 sm:$0xff]   ;;  %v6869_v22 = vld [vmem:[%s7959_s30 + $0xf0] ss:$60 sps:$4 sm:$0xff]  }
  0x3a   : > { %4032 = vmatpush1.bf16.msra.mxu1 %v6846_v7  ;;  %3962 = vmatprep.subr.bf16.mxu0 %v6847_v8  ;;  %v6870_v23 = vld [vmem:[%s7959_s30 + $0x870] ss:$60 sps:$4 sm:$0xff]   ;;  %v6871_v24 = vld [vmem:[%s7959_s30 + $0x7c] ss:$60 sps:$4 sm:$0xff]   ;;  %v6877_v28 = vld [vmem:[%s7959_s30 + $0x4] ss:$60 sps:$4 sm:$0xff]  }
  0x3b   : > { %4033 = vmatprep.subr.bf16.mxu1 %v6849_v9  ;;  %v6873_v25 = vld [vmem:[%s7959_s30 + $0x7fc] ss:$60 sps:$4 sm:$0xff]   ;;  %v6879_v29 = vld [vmem:[%s7959_s30 + $0x784] ss:$60 sps:$4 sm:$0xff]   ;;  %v6883_v32 = vld [vmem:[%s7959_s30 + $0x70c] ss:$60 sps:$4 sm:$0xff]  }
  0x3c   : > { %v6875_v26 = vld [vmem:[%s7959_s30 + $0x78] ss:$60 sps:$4 sm:$0xff]   ;;  %v6881_v30 = vld [vmem:[%s7959_s30] ss:$60 sps:$4 sm:$0xff]   ;;  %v6885_v33 = vld [vmem:[%s7959_s30 + $0xe8c] ss:$60 sps:$4 sm:$0xff]  }
  0x3d   : > { %3963 = vmatpush1.bf16.msra.mxu0 %v6851_v10  ;;  %v6876_v27 = vld [vmem:[%s7959_s30 + $0x7f8] ss:$60 sps:$4 sm:$0xff]   ;;  %v6882_v31 = vld [vmem:[%s7959_s30 + $0x780] ss:$60 sps:$4 sm:$0xff]   ;;  %v6887_v34 = vld [vmem:[%s7959_s30 + $0x708] ss:$60 sps:$4 sm:$0xff]  }
  0x3e   : > { %4034 = vmatpush1.bf16.msra.mxu1 %v6852_v11  ;;  %3964 = vmatprep.subr.bf16.mxu0 %v6853_v12  ;;  %v6888_v35 = vld [vmem:[%s7959_s30 + $0xe88] ss:$60 sps:$4 sm:$0xff]   ;;  %v6889_v36 = vld [vmem:[%s7959_s30 + $0x694] ss:$60 sps:$4 sm:$0xff]   ;;  %v6895_v40 = vld [vmem:[%s7959_s30 + $0x61c] ss:$60 sps:$4 sm:$0xff]  }
  0x3f   : > { %4035 = vmatprep.subr.bf16.mxu1 %v6855_v13  ;;  %v6891_v37 = vld [vmem:[%s7959_s30 + $0xe14] ss:$60 sps:$4 sm:$0xff]   ;;  %v6897_v41 = vld [vmem:[%s7959_s30 + $0xd9c] ss:$60 sps:$4 sm:$0xff]   ;;  %v6901_v44 = vld [vmem:[%s7959_s30 + $0x5a4] ss:$60 sps:$4 sm:$0xff]  }
  0x40   : > { %v6893_v38 = vld [vmem:[%s7959_s30 + $0x690] ss:$60 sps:$4 sm:$0xff]   ;;  %v6899_v42 = vld [vmem:[%s7959_s30 + $0x618] ss:$60 sps:$4 sm:$0xff]   ;;  %v6903_v45 = vld [vmem:[%s7959_s30 + $0xd24] ss:$60 sps:$4 sm:$0xff]  }
  0x41   : > { %3965 = vmatpush1.bf16.msra.mxu0 %v6857_v14  ;;  %v6894_v39 = vld [vmem:[%s7959_s30 + $0xe10] ss:$60 sps:$4 sm:$0xff]   ;;  %v6900_v43 = vld [vmem:[%s7959_s30 + $0xd98] ss:$60 sps:$4 sm:$0xff]   ;;  %v6905_v46 = vld [vmem:[%s7959_s30 + $0x5a0] ss:$60 sps:$4 sm:$0xff]  }
  0x42   : > { %4036 = vmatpush1.bf16.msra.mxu1 %v6858_v15  ;;  %3966 = vmatprep.subr.bf16.mxu0 %v6859_v16  ;;  %v6906_v47 = vld [vmem:[%s7959_s30 + $0xd20] ss:$60 sps:$4 sm:$0xff]   ;;  %v8016_v48 = vld [vmem:[%s9808_s0 + $0x4] ss:$20 sps:$4 sm:$0xff]   ;;  %v6907_v49 = vld [vmem:[%s7959_s30 + $0x52c] ss:$60 sps:$4 sm:$0xff]  }
  0x43   : > { %4037 = vmatprep.subr.bf16.mxu1 %v6861_v17  ;;  %v8022_v50 = vld [vmem:[%s9808_s0 + $0xc] ss:$20 sps:$4 sm:$0xff]   ;;  %3990 = vmatprep.mubr.bf16.mxu0 %v8016_v48  ;;  %v6911_v52 = vld [vmem:[%s7959_s30 + $0x528] ss:$60 sps:$4 sm:$0xff]   ;;  %v6913_v54 = vld [vmem:[%s7959_s30 + $0x4b4] ss:$60 sps:$4 sm:$0xff]  }
  0x44   : > { %v6909_v51 = vld [vmem:[%s7959_s30 + $0xcac] ss:$60 sps:$4 sm:$0xff]   ;;  %4061 = vmatprep.mubr.bf16.mxu1 %v8022_v50  ;;  %v6915_v55 = vld [vmem:[%s7959_s30 + $0xc34] ss:$60 sps:$4 sm:$0xff]   ;;  %v6919_v58 = vld [vmem:[%s7959_s30 + $0x43c] ss:$60 sps:$4 sm:$0xff]  }
  0x45   : > { %3967 = vmatpush1.bf16.msra.mxu0 %v6863_v18  ;;  %v6912_v53 = vld [vmem:[%s7959_s30 + $0xca8] ss:$60 sps:$4 sm:$0xff]   ;;  %v6917_v56 = vld [vmem:[%s7959_s30 + $0x4b0] ss:$60 sps:$4 sm:$0xff]   ;;  %v6921_v59 = vld [vmem:[%s7959_s30 + $0xbbc] ss:$60 sps:$4 sm:$0xff]  }
  0x46   : > { %4038 = vmatpush1.bf16.msra.mxu1 %v6864_v19  ;;  %3968 = vmatprep.subr.bf16.mxu0 %v6865_v20  ;;  %v6918_v57 = vld [vmem:[%s7959_s30 + $0xc30] ss:$60 sps:$4 sm:$0xff]   ;;  %v6923_v60 = vld [vmem:[%s7959_s30 + $0x438] ss:$60 sps:$4 sm:$0xff]   ;;  %v6925_v62 = vld [vmem:[%s7959_s30 + $0x3c4] ss:$60 sps:$4 sm:$0xff]  }
  0x47   : > { %4039 = vmatprep.subr.bf16.mxu1 %v6867_v21  ;;  %v6924_v61 = vld [vmem:[%s7959_s30 + $0xbb8] ss:$60 sps:$4 sm:$0xff]   ;;  %v6927_v63 = vld [vmem:[%s7959_s30 + $0xb44] ss:$60 sps:$4 sm:$0xff]   ;;  %v6939_v2 = vld [vmem:[%s7959_s30 + $0x124c] ss:$60 sps:$4 sm:$0xff]  }
  0x48   : > { %v6929_v0 = vld [vmem:[%s7959_s30 + $0x3c0] ss:$60 sps:$4 sm:$0xff]   ;;  %v6942_v3 = vld [vmem:[%s7959_s30 + $0x354] ss:$60 sps:$4 sm:$0xff]   ;;  %v6937_v6 = vld [vmem:[%s7959_s30 + $0x1248] ss:$60 sps:$4 sm:$0xff]  }
  0x49   : > { %3969 = vmatpush1.bf16.msra.mxu0 %v6869_v22  ;;  %v6930_v1 = vld [vmem:[%s7959_s30 + $0xb40] ss:$60 sps:$4 sm:$0xff]   ;;  %v6940_v7 = vld [vmem:[%s7959_s30 + $0x350] ss:$60 sps:$4 sm:$0xff]   ;;  %v8065_v11 = vld [vmem:[%s9808_s0 + $0x34] ss:$20 sps:$4 sm:$0xff]  }
  0x4a   : > { %4040 = vmatpush1.bf16.msra.mxu1 %v6870_v23  ;;  %3970 = vmatprep.subr.bf16.mxu0 %v6871_v24  ;;  %v8046_v4 = vld [vmem:[%s9808_s0] ss:$20 sps:$4 sm:$0xff]   ;;  %v8051_v5 = vld [vmem:[%s9808_s0 + $0x8] ss:$20 sps:$4 sm:$0xff]   ;;  %v6943_v12 = vld [vmem:[%s7959_s30 + $0x11d0] ss:$60 sps:$4 sm:$0xff]  }
  0x4b   : > { %4041 = vmatprep.subr.bf16.mxu1 %v6873_v25  ;;  %v6945_v8 = vld [vmem:[%s7959_s30 + $0x11d4] ss:$60 sps:$4 sm:$0xff]   ;;  %v6948_v9 = vld [vmem:[%s7959_s30 + $0x2dc] ss:$60 sps:$4 sm:$0xff]   ;;  %v8060_v10 = vld [vmem:[%s9808_s0 + $0x2c] ss:$20 sps:$4 sm:$0xff]  }
  0x4c   : > { %v6946_v13 = vld [vmem:[%s7959_s30 + $0x2d8] ss:$60 sps:$4 sm:$0xff]   ;;  %v8074_v14 = vld [vmem:[%s9808_s0 + $0x28] ss:$20 sps:$4 sm:$0xff]   ;;  %v6960_v16 = vld [vmem:[%s7959_s30 + $0x264] ss:$60 sps:$4 sm:$0xff]  }
  0x4d   : > { %3971 = vmatpush1.bf16.msra.mxu0 %v6875_v26  ;;  %v6957_v15 = vld [vmem:[%s7959_s30 + $0x115c] ss:$60 sps:$4 sm:$0xff]   ;;  %v8083_v17 = vld [vmem:[%s9808_s0 + $0x30] ss:$20 sps:$4 sm:$0xff]   ;;  %v6966_v21 = vld [vmem:[%s7959_s30 + $0x1ec] ss:$60 sps:$4 sm:$0xff]  }
  0x4e   : > { %4042 = vmatpush1.bf16.msra.mxu1 %v6876_v27  ;;  %3972 = vmatprep.subr.bf16.mxu0 %v6877_v28  ;;  %v6955_v18 = vld [vmem:[%s7959_s30 + $0x1158] ss:$60 sps:$4 sm:$0xff]   ;;  %v6958_v19 = vld [vmem:[%s7959_s30 + $0x260] ss:$60 sps:$4 sm:$0xff]   ;;  %v6964_v25 = vld [vmem:[%s7959_s30 + $0x1e8] ss:$60 sps:$4 sm:$0xff]  }
  0x4f   : > { %4043 = vmatprep.subr.bf16.mxu1 %v6879_v29  ;;  %v6963_v20 = vld [vmem:[%s7959_s30 + $0x10e4] ss:$60 sps:$4 sm:$0xff]   ;;  %v8092_v22 = vld [vmem:[%s9808_s0 + $0x54] ss:$20 sps:$4 sm:$0xff]   ;;  %v8097_v23 = vld [vmem:[%s9808_s0 + $0x5c] ss:$20 sps:$4 sm:$0xff]  }
  0x50   : > { %v6961_v24 = vld [vmem:[%s7959_s30 + $0x10e0] ss:$60 sps:$4 sm:$0xff]   ;;  %v8106_v26 = vld [vmem:[%s9808_s0 + $0x50] ss:$20 sps:$4 sm:$0xff]   ;;  %v8111_v27 = vld [vmem:[%s9808_s0 + $0x58] ss:$20 sps:$4 sm:$0xff]  }
  0x51   : > { %3973 = vmatpush1.bf16.msra.mxu0 %v6881_v30  ;;  %v6975_v28 = vld [vmem:[%s7959_s30 + $0x106c] ss:$60 sps:$4 sm:$0xff]   ;;  %v6978_v29 = vld [vmem:[%s7959_s30 + $0x174] ss:$60 sps:$4 sm:$0xff]   ;;  %s8575_s24 = scalar_lea.vmem [#allocation4], %s6791_s5  ;;  %p9816_p9 = scmp.ne.s32.totalorder %s9813_s19, 0 }
  0x52   : > { %4044 = vmatpush1.bf16.msra.mxu1 %v6882_v31  ;;  %3974 = vmatprep.subr.bf16.mxu0 %v6883_v32  ;;  %v6973_v30 = vld [vmem:[%s7959_s30 + $0x1068] ss:$60 sps:$4 sm:$0xff]   ;;  %v6976_v31 = vld [vmem:[%s7959_s30 + $0x170] ss:$60 sps:$4 sm:$0xff]   ;;  %v179_v32 = vld [vmem:[%s9808_s0 + $0x78] sm:$0x11] }
  0x53   : > { %4045 = vmatprep.subr.bf16.mxu1 %v6885_v33  ;;  %v180_v33 = vld [vmem:[%s9808_s0 + $0x80] sm:$0x11] }
  0x55   : > { %3975 = vmatpush2.bf16.msra.mxu0 %v6887_v34  ;;  %v6981_v34 = vld [vmem:[%s7959_s30 + $0xff4] ss:$60 sps:$4 sm:$0xff]  }
  0x56   : > { %4046 = vmatpush2.bf16.msra.mxu1 %v6888_v35  ;;  %3976 = vmatprep.subr.bf16.mxu0 %v6889_v36  ;;  %v6984_v35 = vld [vmem:[%s7959_s30 + $0xfc] ss:$60 sps:$4 sm:$0xff]   ;;  %v8127_v36 = vcombine.high %v179_v32, %v179_v32 }
  0x57   : > { %4047 = vmatprep.subr.bf16.mxu1 %v6891_v37  ;;  %v8129_v37 = vcombine.high %v180_v33, %v180_v33 }
  0x59   : > { %3977 = vmatpush2.bf16.msra.mxu0 %v6893_v38  ;;  %v6979_v38 = vld [vmem:[%s7959_s30 + $0xff0] ss:$60 sps:$4 sm:$0xff]  }
  0x5a   : > { %4048 = vmatpush2.bf16.msra.mxu1 %v6894_v39  ;;  %3978 = vmatprep.subr.bf16.mxu0 %v6895_v40  ;;  %v6982_v39 = vld [vmem:[%s7959_s30 + $0xf8] ss:$60 sps:$4 sm:$0xff]  }
  0x5b   : > { %4049 = vmatprep.subr.bf16.mxu1 %v6897_v41  ;;  %v6991_v40 = vld [vmem:[%s7959_s30 + $0xf7c] ss:$60 sps:$4 sm:$0xff]   ;;  %v6994_v41 = vld [vmem:[%s7959_s30 + $0x84] ss:$60 sps:$4 sm:$0xff]  }
  0x5d   : > { %3979 = vmatpush2.bf16.msra.mxu0 %v6899_v42  ;;  %v8139_v42 = vcombine.low %v179_v32, %v179_v32  ;;  %v7047_v32 = vld [vmem:[%s7959_s30 + $0x3c8] ss:$60 sps:$4 sm:$0xff]  }
  0x5e   : > { %4050 = vmatpush2.bf16.msra.mxu1 %v6900_v43  ;;  %3980 = vmatprep.subr.bf16.mxu0 %v6901_v44  ;;  %v8141_v43 = vcombine.low %v180_v33, %v180_v33  ;;  %v6989_v44 = vld [vmem:[%s7959_s30 + $0xf78] ss:$60 sps:$4 sm:$0xff]   ;;  %v7050_v33 = vld [vmem:[%s7959_s30 + $0x788] ss:$60 sps:$4 sm:$0xff]  }
  0x5f   : > { %4051 = vmatprep.subr.bf16.mxu1 %v6903_v45  ;;  %v6992_v45 = vld [vmem:[%s7959_s30 + $0x80] ss:$60 sps:$4 sm:$0xff]  }
  0x61   : > { %3981 = vmatpush2.bf16.msra.mxu0 %v6905_v46  ;;  %v6997_v46 = vld [vmem:[%s7959_s30 + $0xf04] ss:$60 sps:$4 sm:$0xff]  }
  0x62   : > { %4052 = vmatpush2.bf16.msra.mxu1 %v6906_v47  ;;  %3982 = vmatprep.subr.bf16.mxu0 %v6907_v49  ;;  %v7000_v47 = vld [vmem:[%s7959_s30 + $0xc] ss:$60 sps:$4 sm:$0xff]   ;;  %v6995_v49 = vld [vmem:[%s7959_s30 + $0xf00] ss:$60 sps:$4 sm:$0xff]  }
  0x63   : > { %4053 = vmatprep.subr.bf16.mxu1 %v6909_v51  ;;  %v6998_v51 = vld [vmem:[%s7959_s30 + $0x8] ss:$60 sps:$4 sm:$0xff]  }
  0x65   : > { %3983 = vmatpush2.bf16.msra.mxu0 %v6911_v52  ;;  %v7004_v52 = vld [vmem:[%s7959_s30 + $0x714] ss:$60 sps:$4 sm:$0xff]  }
  0x66   : > { %4054 = vmatpush2.bf16.msra.mxu1 %v6912_v53  ;;  %3984 = vmatprep.subr.bf16.mxu0 %v6913_v54  ;;  %v7007_v53 = vld [vmem:[%s7959_s30 + $0xad4] ss:$60 sps:$4 sm:$0xff]   ;;  %v7857_v54 = vmov 0  }
  0x67   : > { %4055 = vmatprep.subr.bf16.mxu1 %v6915_v55  ;;  %v8157_v55 = vld [vmem:[%s9808_s0 + $0x10] ss:$20 sps:$4 sm:$0xff]  }
  0x69   : > { %3985 = vmatpush2.bf16.msra.mxu0 %v6917_v56  ;;  %v7002_v56 = vld [vmem:[%s7959_s30 + $0x710] ss:$60 sps:$4 sm:$0xff]  }
  0x6a   : > { %4056 = vmatpush2.bf16.msra.mxu1 %v6918_v57  ;;  %3986 = vmatprep.subr.bf16.mxu0 %v6919_v58  ;;  %v7005_v57 = vld [vmem:[%s7959_s30 + $0xad0] ss:$60 sps:$4 sm:$0xff]   ;;  %v7010_v58 = vld [vmem:[%s7959_s30 + $0x69c] ss:$60 sps:$4 sm:$0xff]  }
  0x6b   : > { %4057 = vmatprep.subr.bf16.mxu1 %v6921_v59  ;;  %v7013_v59 = vld [vmem:[%s7959_s30 + $0xa5c] ss:$60 sps:$4 sm:$0xff]  }
  0x6d   : > { %3987 = vmatpush2.bf16.msra.mxu0 %v6923_v60  ;;  %v7008_v60 = vld [vmem:[%s7959_s30 + $0x698] ss:$60 sps:$4 sm:$0xff]  }
  0x6e   : > { %4058 = vmatpush2.bf16.msra.mxu1 %v6924_v61  ;;  %3988 = vmatprep.subr.bf16.mxu0 %v6925_v62  ;;  %v7017_v61 = vld [vmem:[%s7959_s30 + $0x624] ss:$60 sps:$4 sm:$0xff]  }
  0x6f   : > { %4059 = vmatprep.subr.bf16.mxu1 %v6927_v63  ;;  %v7020_v62 = vld [vmem:[%s7959_s30 + $0x9e4] ss:$60 sps:$4 sm:$0xff]   ;;  %v8173_v63 = vld [vmem:[%s9808_s0 + $0x38] ss:$20 sps:$4 sm:$0xff]  }
  0x71   : > { %3989 = vmatpush2.bf16.msra.mxu0 %v6929_v0  ;;  %v7015_v0 = vld [vmem:[%s7959_s30 + $0x620] ss:$60 sps:$4 sm:$0xff]  }
  0x72   : > { %4060 = vmatpush2.bf16.msra.mxu1 %v6930_v1  ;;  %4100 = vmatprep.subr.bf16.mxu0 %v6939_v2  ;;  %v7018_v1 = vld [vmem:[%s7959_s30 + $0x9e0] ss:$60 sps:$4 sm:$0xff]   ;;  %v7023_v2 = vld [vmem:[%s7959_s30 + $0x5ac] ss:$60 sps:$4 sm:$0xff]  }
  0x73   : > { %4171 = vmatprep.subr.bf16.mxu1 %v6942_v3  ;;  %v7026_v3 = vld [vmem:[%s7959_s30 + $0x96c] ss:$60 sps:$4 sm:$0xff]  }
  0x74   : > { %3991 = vmatmul.mubr.bf16.vlgmr.msra.gmra.mxu0 %v8046_v4 }
  0x75   : > { %4062 = vmatmul.mubr.bf16.vlgmr.msra.gmra.mxu1 %v8051_v5  ;;  %4101 = vmatpush1.bf16.msra.mxu0 %v6937_v6  ;;  %v7021_v6 = vld [vmem:[%s7959_s30 + $0x5a8] ss:$60 sps:$4 sm:$0xff]  }
  0x76   : > { %4172 = vmatpush1.bf16.msra.mxu1 %v6940_v7  ;;  %4102 = vmatprep.subr.bf16.mxu0 %v6945_v8  ;;  %v7024_v7 = vld [vmem:[%s7959_s30 + $0x968] ss:$60 sps:$4 sm:$0xff]   ;;  %v7030_v8 = vld [vmem:[%s7959_s30 + $0x534] ss:$60 sps:$4 sm:$0xff]  }
  0x77   : > { %4173 = vmatprep.subr.bf16.mxu1 %v6948_v9  ;;  %4000 = vmatprep.mubr.bf16.mxu0 %v8060_v10  ;;  %v7033_v9 = vld [vmem:[%s7959_s30 + $0x8f4] ss:$60 sps:$4 sm:$0xff]  }
  0x78   : > { %4071 = vmatprep.mubr.bf16.mxu1 %v8065_v11 }
  0x79   : > { %4103 = vmatpush1.bf16.msra.mxu0 %v6943_v12  ;;  %v8188_v12 = vld [vmem:[%s9808_s0 + $0x60] ss:$20 sps:$4 sm:$0xff]  }
  0x7a   : > { %4174 = vmatpush1.bf16.msra.mxu1 %v6946_v13  ;;  %4104 = vmatprep.subr.bf16.mxu0 %v6957_v15  ;;  %v7028_v13 = vld [vmem:[%s7959_s30 + $0x530] ss:$60 sps:$4 sm:$0xff]  }
  0x7b   : > { %4175 = vmatprep.subr.bf16.mxu1 %v6960_v16  ;;  %v7031_v15 = vld [vmem:[%s7959_s30 + $0x8f0] ss:$60 sps:$4 sm:$0xff]   ;;  %v7036_v16 = vld [vmem:[%s7959_s30 + $0x4bc] ss:$60 sps:$4 sm:$0xff]  }
  0x7c   : > { %4001 = vmatmul.mubr.bf16.gmra.mxu0 %v8074_v14 }
  0x7d   : > { %4072 = vmatmul.mubr.bf16.gmra.mxu1 %v8083_v17  ;;  %4105 = vmatpush1.bf16.msra.mxu0 %v6955_v18  ;;  %v7039_v18 = vld [vmem:[%s7959_s30 + $0x87c] ss:$60 sps:$4 sm:$0xff]  }
  0x7e   : > { %4176 = vmatpush1.bf16.msra.mxu1 %v6958_v19  ;;  %4106 = vmatprep.subr.bf16.mxu0 %v6963_v20  ;;  %v7034_v19 = vld [vmem:[%s7959_s30 + $0x4b8] ss:$60 sps:$4 sm:$0xff]  }
  0x7f   : > { %4177 = vmatprep.subr.bf16.mxu1 %v6966_v21  ;;  %4010 = vmatprep.mubr.bf16.mxu0 %v8092_v22  ;;  %v7037_v20 = vld [vmem:[%s7959_s30 + $0x878] ss:$60 sps:$4 sm:$0xff]   ;;  %v7043_v21 = vld [vmem:[%s7959_s30 + $0x444] ss:$60 sps:$4 sm:$0xff]  }
  0x80   : > { %4081 = vmatprep.mubr.bf16.mxu1 %v8097_v23 }
  0x81   : > { %4107 = vmatpush1.bf16.msra.mxu0 %v6961_v24  ;;  %v7046_v24 = vld [vmem:[%s7959_s30 + $0x804] ss:$60 sps:$4 sm:$0xff]  }
  0x82   : > { %4178 = vmatpush1.bf16.msra.mxu1 %v6964_v25  ;;  %4108 = vmatprep.subr.bf16.mxu0 %v6975_v28  ;;  %v8203_v25 = vld [vmem:[%s9808_s0 + $0x88] ss:$0 sps:$4 sm:$0x11]   ;;  %v7041_v28 = vld [vmem:[%s7959_s30 + $0x440] ss:$60 sps:$4 sm:$0xff]  }
  0x83   : > { %4179 = vmatprep.subr.bf16.mxu1 %v6978_v29  ;;  %v7044_v29 = vld [vmem:[%s7959_s30 + $0x800] ss:$60 sps:$4 sm:$0xff]  }
  0x84   : > { %4011 = vmatmul.mubr.bf16.gmra.mxu0 %v8106_v26 }
  0x85   : > { %4082 = vmatmul.mubr.bf16.gmra.mxu1 %v8111_v27  ;;  %4109 = vmatpush1.bf16.msra.mxu0 %v6973_v30  ;;  %v7049_v30 = vld [vmem:[%s7959_s30 + $0x3cc] ss:$60 sps:$4 sm:$0xff]  }
  0x86   : > { %4180 = vmatpush1.bf16.msra.mxu1 %v6976_v31  ;;  %4110 = vmatprep.subr.bf16.mxu0 %v6981_v34  ;;  %v7052_v31 = vld [vmem:[%s7959_s30 + $0x78c] ss:$60 sps:$4 sm:$0xff]   ;;  %v7055_v34 = vld [vmem:[%s7959_s30 + $0xe94] ss:$60 sps:$4 sm:$0xff]  }
  0x87   : > { %4181 = vmatprep.subr.bf16.mxu1 %v6984_v35  ;;  %4020 = vmatprep.mubr.bf16.mxu0 %v8127_v36  ;;  %v7058_v35 = vld [vmem:[%s7959_s30 + $0x1254] ss:$60 sps:$4 sm:$0xff]  }
  0x88   : > { %4091 = vmatprep.mubr.bf16.mxu1 %v8129_v37 }
  0x89   : > { %4111 = vmatpush1.bf16.msra.mxu0 %v6979_v38  ;;  %v7053_v38 = vld [vmem:[%s7959_s30 + $0xe90] ss:$60 sps:$4 sm:$0xff]  }
  0x8a   : > { %4182 = vmatpush1.bf16.msra.mxu1 %v6982_v39  ;;  %4112 = vmatprep.subr.bf16.mxu0 %v6991_v40  ;;  %v7056_v39 = vld [vmem:[%s7959_s30 + $0x1250] ss:$60 sps:$4 sm:$0xff]   ;;  %v7061_v40 = vld [vmem:[%s7959_s30 + $0xe1c] ss:$60 sps:$4 sm:$0xff]  }
  0x8b   : > { %4183 = vmatprep.subr.bf16.mxu1 %v6994_v41  ;;  %v7064_v41 = vld [vmem:[%s7959_s30 + $0x11dc] ss:$60 sps:$4 sm:$0xff]  }
  0x8c   : > { %4021 = vmatmul.mubr.bf16.gmra.mxu0 %v8139_v42 }
  0x8d   : > { %4092 = vmatmul.mubr.bf16.gmra.mxu1 %v8141_v43  ;;  %4113 = vmatpush1.bf16.msra.mxu0 %v6989_v44  ;;  %v7059_v44 = vld [vmem:[%s7959_s30 + $0xe18] ss:$60 sps:$4 sm:$0xff]  }
  0x8e   : > { %4184 = vmatpush1.bf16.msra.mxu1 %v6992_v45  ;;  %4114 = vmatprep.subr.bf16.mxu0 %v6997_v46  ;;  %v7067_v45 = vld [vmem:[%s7959_s30 + $0xda4] ss:$60 sps:$4 sm:$0xff]  }
  0x8f   : > { %4185 = vmatprep.subr.bf16.mxu1 %v7000_v47  ;;  %4132 = vmatprep.mubr.bf16.mxu0 %v7857_v54  ;;  %v7070_v46 = vld [vmem:[%s7959_s30 + $0x1164] ss:$60 sps:$4 sm:$0xff]  }
  0x90   : > { %4203 = vmatprep.mubr.bf16.mxu1 %v8016_v48  ;;  %v7011_v48 = vld [vmem:[%s7959_s30 + $0xa58] ss:$60 sps:$4 sm:$0xff]   ;;  %v7065_v47 = vld [vmem:[%s7959_s30 + $0xda0] ss:$60 sps:$4 sm:$0xff]  }
  0x91   : > { %4115 = vmatpush1.bf16.msra.mxu0 %v6995_v49  ;;  %v7073_v49 = vld [vmem:[%s7959_s30 + $0xd2c] ss:$60 sps:$4 sm:$0xff]  }
  0x92   : > { %4186 = vmatpush1.bf16.msra.mxu1 %v6998_v51  ;;  %4242 = vmatprep.subr.bf16.mxu0 %v7007_v53  ;;  %v7076_v51 = vld [vmem:[%s7959_s30 + $0x10ec] ss:$60 sps:$4 sm:$0xff]   ;;  %v7079_v53 = vld [vmem:[%s7959_s30 + $0xcb4] ss:$60 sps:$4 sm:$0xff]  }
  0x93   : > { %4187 = vmatprep.subr.bf16.mxu1 %v7004_v52  ;;  %v7071_v52 = vld [vmem:[%s7959_s30 + $0xd28] ss:$60 sps:$4 sm:$0xff]  }
  0x94   : > { %4133 = vmatmul.mubr.bf16.vlgmr.msra.gmra.mxu0 %v8157_v55 }
  0x95   : > { %4243 = vmatpush1.bf16.msra.mxu0 %v7005_v57  ;;  %4142 = vmatprep.mubr.bf16.mxu0 %v7857_v54  ;;  %v7077_v57 = vld [vmem:[%s7959_s30 + $0xcb0] ss:$60 sps:$4 sm:$0xff]  }
  0x96   : > { %4188 = vmatpush2.bf16.msra.mxu1 %v7002_v56  ;;  %4244 = vmatprep.subr.bf16.mxu0 %v7013_v59  ;;  %v7082_v56 = vld [vmem:[%s7959_s30 + $0x1074] ss:$60 sps:$4 sm:$0xff]   ;;  %v7088_v59 = vld [vmem:[%s7959_s30 + $0xffc] ss:$60 sps:$4 sm:$0xff]  }
  0x97   : > { %4189 = vmatprep.subr.bf16.mxu1 %v7010_v58  ;;  %v7085_v58 = vld [vmem:[%s7959_s30 + $0xc3c] ss:$60 sps:$4 sm:$0xff]  }
  0x99   : > { %4245 = vmatpush1.bf16.msra.mxu0 %v7011_v48  ;;  %v7091_v48 = vld [vmem:[%s7959_s30 + $0xbc4] ss:$60 sps:$4 sm:$0xff]  }
  0x9a   : > { %4190 = vmatpush2.bf16.msra.mxu1 %v7008_v60  ;;  %4246 = vmatprep.subr.bf16.mxu0 %v7020_v62  ;;  %v7083_v60 = vld [vmem:[%s7959_s30 + $0xc38] ss:$60 sps:$4 sm:$0xff]   ;;  %v7089_v62 = vld [vmem:[%s7959_s30 + $0xbc0] ss:$60 sps:$4 sm:$0xff]  }
  0x9b   : > { %4191 = vmatprep.subr.bf16.mxu1 %v7017_v61  ;;  %v7094_v61 = vld [vmem:[%s7959_s30 + $0xf84] ss:$60 sps:$4 sm:$0xff]  }
  0x9c   : > { %4143 = vmatmul.mubr.bf16.gmra.mxu0 %v8173_v63 }
  0x9d   : > { %4247 = vmatpush1.bf16.msra.mxu0 %v7018_v1  ;;  %4152 = vmatprep.mubr.bf16.mxu0 %v7857_v54  ;;  %v7100_v1 = vld [vmem:[%s7959_s30 + $0xf0c] ss:$60 sps:$4 sm:$0xff]  }
  0x9e   : > { %4192 = vmatpush2.bf16.msra.mxu1 %v7015_v0  ;;  %4248 = vmatprep.subr.bf16.mxu0 %v7026_v3  ;;  %v7097_v0 = vld [vmem:[%s7959_s30 + $0xb4c] ss:$60 sps:$4 sm:$0xff]  }
  0x9f   : > { %4193 = vmatprep.subr.bf16.mxu1 %v7023_v2  ;;  %v7095_v2 = vld [vmem:[%s7959_s30 + $0xb48] ss:$60 sps:$4 sm:$0xff]  }
  0xa0   : > { %v7098_v3 = vld [vmem:[%s7959_s30 + $0xf08] ss:$60 sps:$4 sm:$0xff]  }
  0xa1   : > { %4249 = vmatpush1.bf16.msra.mxu0 %v7024_v7  ;;  %v7106_v7 = vld [vmem:[%s7959_s30 + $0xadc] ss:$60 sps:$4 sm:$0xff]  }
  0xa2   : > { %4194 = vmatpush2.bf16.msra.mxu1 %v7021_v6  ;;  %4250 = vmatprep.subr.bf16.mxu0 %v7033_v9  ;;  %v7103_v6 = vld [vmem:[%s7959_s30 + $0x35c] ss:$60 sps:$4 sm:$0xff]  }
  0xa3   : > { %4195 = vmatprep.subr.bf16.mxu1 %v7030_v8  ;;  %v7101_v8 = vld [vmem:[%s7959_s30 + $0x358] ss:$60 sps:$4 sm:$0xff]  }
  0xa4   : > { %4153 = vmatmul.mubr.bf16.gmra.mxu0 %v8188_v12  ;;  %v7104_v9 = vld [vmem:[%s7959_s30 + $0xad8] ss:$60 sps:$4 sm:$0xff]  }
  0xa5   : > { %4251 = vmatpush1.bf16.msra.mxu0 %v7031_v15  ;;  %4162 = vmatprep.mubr.bf16.mxu0 %v7857_v54  ;;  %v7112_v15 = vld [vmem:[%s7959_s30 + $0xa64] ss:$60 sps:$4 sm:$0xff]  }
  0xa6   : > { %4196 = vmatpush2.bf16.msra.mxu1 %v7028_v13  ;;  %4252 = vmatprep.subr.bf16.mxu0 %v7039_v18  ;;  %v7109_v13 = vld [vmem:[%s7959_s30 + $0x2e4] ss:$60 sps:$4 sm:$0xff]  }
  0xa7   : > { %4197 = vmatprep.subr.bf16.mxu1 %v7036_v16  ;;  %v7107_v16 = vld [vmem:[%s7959_s30 + $0x2e0] ss:$60 sps:$4 sm:$0xff]  }
  0xa8   : > { %v7110_v18 = vld [vmem:[%s7959_s30 + $0xa60] ss:$60 sps:$4 sm:$0xff]  }
  0xa9   : > { %4253 = vmatpush1.bf16.msra.mxu0 %v7037_v20  ;;  %v7118_v20 = vld [vmem:[%s7959_s30 + $0x9ec] ss:$60 sps:$4 sm:$0xff]  }
  0xaa   : > { %4198 = vmatpush2.bf16.msra.mxu1 %v7034_v19  ;;  %4254 = vmatprep.subr.bf16.mxu0 %v7046_v24  ;;  %v7115_v19 = vld [vmem:[%s7959_s30 + $0x26c] ss:$60 sps:$4 sm:$0xff]   ;;  %v7124_v24 = vld [vmem:[%s7959_s30 + $0x974] ss:$60 sps:$4 sm:$0xff]  }
  0xab   : > { %4199 = vmatprep.subr.bf16.mxu1 %v7043_v21  ;;  %v7113_v21 = vld [vmem:[%s7959_s30 + $0x268] ss:$60 sps:$4 sm:$0xff]  }
  0xac   : > { %4163 = vmatmul.mubr.bf16.gmra.mxu0 %v8203_v25 }
  0xad   : > { %4255 = vmatpush1.bf16.msra.mxu0 %v7044_v29  ;;  %4274 = vmatprep.mubr.bf16.mxu0 %v8022_v50  ;;  %v7062_v50 = vld [vmem:[%s7959_s30 + $0x11d8] ss:$60 sps:$4 sm:$0xff]  }
  0xae   : > { %4200 = vmatpush2.bf16.msra.mxu1 %v7041_v28  ;;  %4256 = vmatprep.subr.bf16.mxu0 %v7052_v31  ;;  %v7119_v28 = vld [vmem:[%s7959_s30 + $0x1f0] ss:$60 sps:$4 sm:$0xff]   ;;  %v7127_v29 = vld [vmem:[%s7959_s30 + $0x17c] ss:$60 sps:$4 sm:$0xff]  }
  0xaf   : > { %4201 = vmatprep.subr.bf16.mxu1 %v7049_v30  ;;  %v7130_v30 = vld [vmem:[%s7959_s30 + $0x8fc] ss:$60 sps:$4 sm:$0xff]  }
  0xb0   : > { %v7125_v31 = vld [vmem:[%s7959_s30 + $0x178] ss:$60 sps:$4 sm:$0xff]  }
  0xb1   : > { %4257 = vmatpush1.bf16.msra.mxu0 %v7050_v33  ;;  %v7131_v33 = vld [vmem:[%s7959_s30 + $0x100] ss:$60 sps:$4 sm:$0xff]  }
  0xb2   : > { %4202 = vmatpush2.bf16.msra.mxu1 %v7047_v32  ;;  %4258 = vmatprep.subr.bf16.mxu0 %v7055_v34  ;;  %v7136_v32 = vld [vmem:[%s7959_s30 + $0x884] ss:$60 sps:$4 sm:$0xff]   ;;  %v7139_v34 = vld [vmem:[%s7959_s30 + $0x8c] ss:$60 sps:$4 sm:$0xff]  }
  0xb3   : > { %4313 = vmatprep.subr.bf16.mxu1 %v7058_v35  ;;  %v7142_v35 = vld [vmem:[%s7959_s30 + $0x80c] ss:$60 sps:$4 sm:$0xff]  }
  0xb5   : > { %4204 = vmatmul.mubr.bf16.vlgmr.msra.gmra.mxu1 %v8046_v4  ;;  %4259 = vmatpush2.bf16.msra.mxu0 %v7053_v38  ;;  %v7068_v4 = vld [vmem:[%s7959_s30 + $0x1160] ss:$60 sps:$4 sm:$0xff]   ;;  %v7137_v38 = vld [vmem:[%s7959_s30 + $0x88] ss:$60 sps:$4 sm:$0xff]  }
  0xb6   : > { %4314 = vmatpush1.bf16.msra.mxu1 %v7056_v39  ;;  %4260 = vmatprep.subr.bf16.mxu0 %v7061_v40  ;;  %v7148_v39 = vld [vmem:[%s7959_s30 + $0x794] ss:$60 sps:$4 sm:$0xff]  }
  0xb7   : > { %4315 = vmatprep.subr.bf16.mxu1 %v7064_v41  ;;  %4213 = vmatprep.mubr.bf16.mxu1 %v8060_v10  ;;  %v7074_v10 = vld [vmem:[%s7959_s30 + $0x10e8] ss:$60 sps:$4 sm:$0xff]   ;;  %v7143_v40 = vld [vmem:[%s7959_s30 + $0x10] ss:$60 sps:$4 sm:$0xff]  }
  0xb8   : > { %v7146_v41 = vld [vmem:[%s7959_s30 + $0x790] ss:$60 sps:$4 sm:$0xff]  }
  0xb9   : > { %4261 = vmatpush2.bf16.msra.mxu0 %v7059_v44  ;;  %v7151_v44 = vld [vmem:[%s7959_s30 + $0x71c] ss:$60 sps:$4 sm:$0xff]  }
  0xba   : > { %4316 = vmatpush1.bf16.msra.mxu1 %v7062_v50  ;;  %4262 = vmatprep.subr.bf16.mxu0 %v7067_v45  ;;  %v7154_v50 = vld [vmem:[%s7959_s30 + $0xe9c] ss:$60 sps:$4 sm:$0xff]  }
  0xbb   : > { %4317 = vmatprep.subr.bf16.mxu1 %v7070_v46  ;;  %v8304_v45 = vld [vmem:[%s9808_s0 + $0x4] ss:$20 sps:$4 sm:$0xff]  }
  0xbc   : > { %v7149_v46 = vld [vmem:[%s7959_s30 + $0x718] ss:$60 sps:$4 sm:$0xff]  }
  0xbd   : > { %4214 = vmatmul.mubr.bf16.gmra.mxu1 %v8074_v14  ;;  %4263 = vmatpush2.bf16.msra.mxu0 %v7065_v47  ;;  %v7080_v14 = vld [vmem:[%s7959_s30 + $0x1070] ss:$60 sps:$4 sm:$0xff]   ;;  %v7152_v47 = vld [vmem:[%s7959_s30 + $0xe98] ss:$60 sps:$4 sm:$0xff]  }
  0xbe   : > { %4318 = vmatpush1.bf16.msra.mxu1 %v7068_v4  ;;  %4264 = vmatprep.subr.bf16.mxu0 %v7073_v49  ;;  %v7157_v4 = vld [vmem:[%s7959_s30 + $0x6a4] ss:$60 sps:$4 sm:$0xff]  }
  0xbf   : > { %4319 = vmatprep.subr.bf16.mxu1 %v7076_v51  ;;  %4223 = vmatprep.mubr.bf16.mxu1 %v8092_v22  ;;  %v7086_v22 = vld [vmem:[%s7959_s30 + $0xff8] ss:$60 sps:$4 sm:$0xff]   ;;  %v7160_v49 = vld [vmem:[%s7959_s30 + $0xe24] ss:$60 sps:$4 sm:$0xff]  }
  0xc0   : > { %v7155_v51 = vld [vmem:[%s7959_s30 + $0x6a0] ss:$60 sps:$4 sm:$0xff]  }
  0xc1   : > { %4265 = vmatpush2.bf16.msra.mxu0 %v7071_v52  ;;  %v7158_v52 = vld [vmem:[%s7959_s30 + $0xe20] ss:$60 sps:$4 sm:$0xff]  }
  0xc2   : > { %4320 = vmatpush1.bf16.msra.mxu1 %v7074_v10  ;;  %4266 = vmatprep.subr.bf16.mxu0 %v7079_v53  ;;  %v7163_v10 = vld [vmem:[%s7959_s30 + $0x62c] ss:$60 sps:$4 sm:$0xff]  }
  0xc3   : > { %4321 = vmatprep.subr.bf16.mxu1 %v7082_v56  ;;  %v7166_v53 = vld [vmem:[%s7959_s30 + $0xdac] ss:$60 sps:$4 sm:$0xff]  }
  0xc4   : > { %v7161_v56 = vld [vmem:[%s7959_s30 + $0x628] ss:$60 sps:$4 sm:$0xff]  }
  0xc5   : > { %4224 = vmatmul.mubr.bf16.gmra.mxu1 %v8106_v26  ;;  %4267 = vmatpush2.bf16.msra.mxu0 %v7077_v57  ;;  %v7092_v26 = vld [vmem:[%s7959_s30 + $0xf80] ss:$60 sps:$4 sm:$0xff]   ;;  %v7164_v57 = vld [vmem:[%s7959_s30 + $0xda8] ss:$60 sps:$4 sm:$0xff]  }
  0xc6   : > { %4322 = vmatpush1.bf16.msra.mxu1 %v7080_v14  ;;  %4268 = vmatprep.subr.bf16.mxu0 %v7085_v58  ;;  %v7169_v14 = vld [vmem:[%s7959_s30 + $0x5b4] ss:$60 sps:$4 sm:$0xff]  }
  0xc7   : > { %4323 = vmatprep.subr.bf16.mxu1 %v7088_v59  ;;  %4233 = vmatprep.mubr.bf16.mxu1 %v8127_v36  ;;  %v7172_v58 = vld [vmem:[%s7959_s30 + $0xd34] ss:$60 sps:$4 sm:$0xff]  }
  0xc8   : > { %v7167_v59 = vld [vmem:[%s7959_s30 + $0x5b0] ss:$60 sps:$4 sm:$0xff]  }
  0xc9   : > { %4269 = vmatpush2.bf16.msra.mxu0 %v7083_v60  ;;  %v7170_v60 = vld [vmem:[%s7959_s30 + $0xd30] ss:$60 sps:$4 sm:$0xff]  }
  0xca   : > { %4324 = vmatpush1.bf16.msra.mxu1 %v7086_v22  ;;  %4270 = vmatprep.subr.bf16.mxu0 %v7091_v48  ;;  %v7175_v22 = vld [vmem:[%s7959_s30 + $0x53c] ss:$60 sps:$4 sm:$0xff]  }
  0xcb   : > { %4325 = vmatprep.subr.bf16.mxu1 %v7094_v61  ;;  %v7178_v48 = vld [vmem:[%s7959_s30 + $0xcbc] ss:$60 sps:$4 sm:$0xff]  }
  0xcc   : > { %v7173_v61 = vld [vmem:[%s7959_s30 + $0x538] ss:$60 sps:$4 sm:$0xff]  }
  0xcd   : > { %4234 = vmatmul.mubr.bf16.gmra.mxu1 %v8139_v42  ;;  %4271 = vmatpush2.bf16.msra.mxu0 %v7089_v62  ;;  %v7176_v62 = vld [vmem:[%s7959_s30 + $0xcb8] ss:$60 sps:$4 sm:$0xff]  }
  0xce   : > { %4326 = vmatpush1.bf16.msra.mxu1 %v7092_v26  ;;  %4272 = vmatprep.subr.bf16.mxu0 %v7097_v0  ;;  %v7181_v26 = vld [vmem:[%s7959_s30 + $0x4c4] ss:$60 sps:$4 sm:$0xff]  }
  0xcf   : > { %4327 = vmatprep.subr.bf16.mxu1 %v7100_v1  ;;  %4345 = vmatprep.mubr.bf16.mxu1 %v7857_v54  ;;  %v7184_v0 = vld [vmem:[%s7959_s30 + $0xc44] ss:$60 sps:$4 sm:$0xff]  }
  0xd0   : > { %v7179_v1 = vld [vmem:[%s7959_s30 + $0x4c0] ss:$60 sps:$4 sm:$0xff]  }
  0xd1   : > { %4273 = vmatpush2.bf16.msra.mxu0 %v7095_v2  ;;  %v7182_v2 = vld [vmem:[%s7959_s30 + $0xc40] ss:$60 sps:$4 sm:$0xff]  }
  0xd2   : > { %4328 = vmatpush1.bf16.msra.mxu1 %v7098_v3  ;;  %4384 = vmatprep.subr.bf16.mxu0 %v7103_v6  ;;  %v7187_v3 = vld [vmem:[%s7959_s30 + $0x44c] ss:$60 sps:$4 sm:$0xff]  }
  0xd3   : > { %4455 = vmatprep.subr.bf16.mxu1 %v7106_v7  ;;  %v7190_v6 = vld [vmem:[%s7959_s30 + $0xbcc] ss:$60 sps:$4 sm:$0xff]  }
  0xd4   : > { %4275 = vmatmul.mubr.bf16.vlgmr.msra.gmra.mxu0 %v8051_v5  ;;  %v7116_v5 = vld [vmem:[%s7959_s30 + $0x9e8] ss:$60 sps:$4 sm:$0xff]  }
  0xd5   : > { %4346 = vmatmul.mubr.bf16.vlgmr.msra.gmra.mxu1 %v8157_v55  ;;  %4385 = vmatpush1.bf16.msra.mxu0 %v7101_v8  ;;  %v7121_v55 = vld [vmem:[%s7959_s30 + $0x1f4] ss:$60 sps:$4 sm:$0xff]   ;;  %v7185_v7 = vld [vmem:[%s7959_s30 + $0x448] ss:$60 sps:$4 sm:$0xff]  }
  0xd6   : > { %4456 = vmatpush1.bf16.msra.mxu1 %v7104_v9  ;;  %4386 = vmatprep.subr.bf16.mxu0 %v7109_v13  ;;  %v7188_v8 = vld [vmem:[%s7959_s30 + $0xbc8] ss:$60 sps:$4 sm:$0xff]   ;;  %v7193_v9 = vld [vmem:[%s7959_s30 + $0x3d4] ss:$60 sps:$4 sm:$0xff]  }
  0xd7   : > { %4457 = vmatprep.subr.bf16.mxu1 %v7112_v15  ;;  %4284 = vmatprep.mubr.bf16.mxu0 %v8065_v11  ;;  %v7122_v11 = vld [vmem:[%s7959_s30 + $0x970] ss:$60 sps:$4 sm:$0xff]  }
  0xd8   : > { %4355 = vmatprep.mubr.bf16.mxu1 %v7857_v54  ;;  %v7196_v13 = vld [vmem:[%s7959_s30 + $0xb54] ss:$60 sps:$4 sm:$0xff]  }
  0xd9   : > { %4387 = vmatpush1.bf16.msra.mxu0 %v7107_v16  ;;  %v7191_v15 = vld [vmem:[%s7959_s30 + $0x3d0] ss:$60 sps:$4 sm:$0xff]  }
  0xda   : > { %4458 = vmatpush1.bf16.msra.mxu1 %v7110_v18  ;;  %4388 = vmatprep.subr.bf16.mxu0 %v7115_v19  ;;  %v7194_v16 = vld [vmem:[%s7959_s30 + $0xb50] ss:$60 sps:$4 sm:$0xff]   ;;  %v7199_v18 = vld [vmem:[%s7959_s30 + $0x125c] ss:$60 sps:$4 sm:$0xff]   ;;  %v7202_v19 = vld [vmem:[%s7959_s30 + $0x364] ss:$60 sps:$4 sm:$0xff]  }
  0xdb   : > { %4459 = vmatprep.subr.bf16.mxu1 %v7118_v20  ;;  %v7197_v20 = vld [vmem:[%s7959_s30 + $0x1258] ss:$60 sps:$4 sm:$0xff]  }
  0xdc   : > { %4285 = vmatmul.mubr.bf16.gmra.mxu0 %v8083_v17  ;;  %v7128_v17 = vld [vmem:[%s7959_s30 + $0x8f8] ss:$60 sps:$4 sm:$0xff]  }
  0xdd   : > { %4356 = vmatmul.mubr.bf16.gmra.mxu1 %v8173_v63  ;;  %4389 = vmatpush1.bf16.msra.mxu0 %v7113_v21  ;;  %v7133_v63 = vld [vmem:[%s7959_s30 + $0x104] ss:$60 sps:$4 sm:$0xff]  }
  0xde   : > { %4460 = vmatpush1.bf16.msra.mxu1 %v7116_v5  ;;  %4390 = vmatprep.subr.bf16.mxu0 %v7121_v55  ;;  %v7200_v21 = vld [vmem:[%s7959_s30 + $0x360] ss:$60 sps:$4 sm:$0xff]   ;;  %v7208_v55 = vld [vmem:[%s7959_s30 + $0x2ec] ss:$60 sps:$4 sm:$0xff]  }
  0xdf   : > { %4461 = vmatprep.subr.bf16.mxu1 %v7124_v24  ;;  %4294 = vmatprep.mubr.bf16.mxu0 %v8097_v23  ;;  %v7134_v23 = vld [vmem:[%s7959_s30 + $0x880] ss:$60 sps:$4 sm:$0xff]  }
  0xe0   : > { %4365 = vmatprep.mubr.bf16.mxu1 %v7857_v54  ;;  %v7205_v5 = vld [vmem:[%s7959_s30 + $0x11e4] ss:$60 sps:$4 sm:$0xff]  }
  0xe1   : > { %4391 = vmatpush1.bf16.msra.mxu0 %v7119_v28  ;;  %v8352_v24 = vld [vmem:[%s9808_s0] ss:$20 sps:$4 sm:$0xff]   ;;  %v8358_v28 = vld [vmem:[%s9808_s0 + $0x8] ss:$20 sps:$4 sm:$0xff]  }
  0xe2   : > { %4462 = vmatpush1.bf16.msra.mxu1 %v7122_v11  ;;  %4392 = vmatprep.subr.bf16.mxu0 %v7127_v29  ;;  %v7203_v11 = vld [vmem:[%s7959_s30 + $0x11e0] ss:$60 sps:$4 sm:$0xff]   ;;  %v7206_v29 = vld [vmem:[%s7959_s30 + $0x2e8] ss:$60 sps:$4 sm:$0xff]  }
  0xe3   : > { %4463 = vmatprep.subr.bf16.mxu1 %v7130_v30  ;;  %v7211_v30 = vld [vmem:[%s7959_s30 + $0x116c] ss:$60 sps:$4 sm:$0xff]  }
  0xe4   : > { %4295 = vmatmul.mubr.bf16.gmra.mxu0 %v8111_v27  ;;  %v7140_v27 = vld [vmem:[%s7959_s30 + $0x808] ss:$60 sps:$4 sm:$0xff]  }
  0xe5   : > { %4366 = vmatmul.mubr.bf16.gmra.mxu1 %v8188_v12  ;;  %4393 = vmatpush1.bf16.msra.mxu0 %v7125_v31  ;;  %v7145_v12 = vld [vmem:[%s7959_s30 + $0x14] ss:$60 sps:$4 sm:$0xff]  }
  0xe6   : > { %4464 = vmatpush1.bf16.msra.mxu1 %v7128_v17  ;;  %4394 = vmatprep.subr.bf16.mxu0 %v7133_v63  ;;  %v7214_v31 = vld [vmem:[%s7959_s30 + $0x274] ss:$60 sps:$4 sm:$0xff]   ;;  %v8368_v17 = vld [vmem:[%s9808_s0 + $0x2c] ss:$20 sps:$4 sm:$0xff]  }
  0xe7   : > { %4465 = vmatprep.subr.bf16.mxu1 %v7136_v32  ;;  %4304 = vmatprep.mubr.bf16.mxu0 %v8129_v37  ;;  %v8374_v63 = vld [vmem:[%s9808_s0 + $0x34] ss:$20 sps:$4 sm:$0xff]  }
  0xe8   : > { %4375 = vmatprep.mubr.bf16.mxu1 %v7857_v54  ;;  %v7209_v32 = vld [vmem:[%s7959_s30 + $0x1168] ss:$60 sps:$4 sm:$0xff]  }
  0xe9   : > { %4395 = vmatpush1.bf16.msra.mxu0 %v7131_v33  ;;  %v7212_v33 = vld [vmem:[%s7959_s30 + $0x270] ss:$60 sps:$4 sm:$0xff]  }
  0xea   : > { %4466 = vmatpush1.bf16.msra.mxu1 %v7134_v23  ;;  %4396 = vmatprep.subr.bf16.mxu0 %v7139_v34  ;;  %v7217_v23 = vld [vmem:[%s7959_s30 + $0x10f4] ss:$60 sps:$4 sm:$0xff]   ;;  %v7220_v34 = vld [vmem:[%s7959_s30 + $0x1fc] ss:$60 sps:$4 sm:$0xff]  }
  0xeb   : > { %4467 = vmatprep.subr.bf16.mxu1 %v7142_v35  ;;  %v8384_v35 = vld [vmem:[%s9808_s0 + $0x28] ss:$20 sps:$4 sm:$0xff]  }
  0xec   : > { %4305 = vmatmul.mubr.bf16.gmra.mxu0 %v8141_v43 }
  0xed   : > { %4376 = vmatmul.mubr.bf16.gmra.mxu1 %v8203_v25  ;;  %4397 = vmatpush1.bf16.msra.mxu0 %v7137_v38  ;;  %v8310_v25 = vld [vmem:[%s9808_s0 + $0xc] ss:$20 sps:$4 sm:$0xff]   ;;  %v8390_v38 = vld [vmem:[%s9808_s0 + $0x30] ss:$20 sps:$4 sm:$0xff]  }
  0xee   : > { %4468 = vmatpush1.bf16.msra.mxu1 %v7140_v27  ;;  %4398 = vmatprep.subr.bf16.mxu0 %v7145_v12  ;;  %v7215_v27 = vld [vmem:[%s7959_s30 + $0x10f0] ss:$60 sps:$4 sm:$0xff]   ;;  %v7218_v12 = vld [vmem:[%s7959_s30 + $0x1f8] ss:$60 sps:$4 sm:$0xff]  }
  0xef   : > { %4469 = vmatprep.subr.bf16.mxu1 %v7148_v39  ;;  %4416 = vmatprep.mubr.bf16.mxu0 %v8304_v45  ;;  %v7223_v39 = vld [vmem:[%s7959_s30 + $0x107c] ss:$60 sps:$4 sm:$0xff]  }
  0xf0   : > { %4487 = vmatprep.mubr.bf16.mxu1 %v8310_v25 }
  0xf1   : > { %4399 = vmatpush1.bf16.msra.mxu0 %v7143_v40  ;;  %v7226_v40 = vld [vmem:[%s7959_s30 + $0x184] ss:$60 sps:$4 sm:$0xff]  }
  0xf2   : > { %4470 = vmatpush1.bf16.msra.mxu1 %v7146_v41  ;;  %4400 = vmatprep.subr.bf16.mxu0 %v7151_v44  ;;  %v8400_v41 = vld [vmem:[%s9808_s0 + $0x54] ss:$20 sps:$4 sm:$0xff]   ;;  %v8406_v44 = vld [vmem:[%s9808_s0 + $0x5c] ss:$20 sps:$4 sm:$0xff]  }
  0xf3   : > { %4471 = vmatprep.subr.bf16.mxu1 %v7154_v50  ;;  %v7221_v50 = vld [vmem:[%s7959_s30 + $0x1078] ss:$60 sps:$4 sm:$0xff]  }
  0xf5   : > { %4401 = vmatpush2.bf16.msra.mxu0 %v7149_v46  ;;  %v7224_v46 = vld [vmem:[%s7959_s30 + $0x180] ss:$60 sps:$4 sm:$0xff]  }
  0xf6   : > { %4472 = vmatpush2.bf16.msra.mxu1 %v7152_v47  ;;  %4402 = vmatprep.subr.bf16.mxu0 %v7157_v4  ;;  %v7229_v47 = vld [vmem:[%s7959_s30 + $0x1004] ss:$60 sps:$4 sm:$0xff]   ;;  %v7232_v4 = vld [vmem:[%s7959_s30 + $0x10c] ss:$60 sps:$4 sm:$0xff]  }
  0xf7   : > { %4473 = vmatprep.subr.bf16.mxu1 %v7160_v49  ;;  %v8416_v49 = vld [vmem:[%s9808_s0 + $0x50] ss:$20 sps:$4 sm:$0xff]  }
  0xf9   : > { %4403 = vmatpush2.bf16.msra.mxu0 %v7155_v51  ;;  %v8422_v51 = vld [vmem:[%s9808_s0 + $0x58] ss:$20 sps:$4 sm:$0xff]  }
  0xfa   : > { %4474 = vmatpush2.bf16.msra.mxu1 %v7158_v52  ;;  %4404 = vmatprep.subr.bf16.mxu0 %v7163_v10  ;;  %v7227_v52 = vld [vmem:[%s7959_s30 + $0x1000] ss:$60 sps:$4 sm:$0xff]   ;;  %v7230_v10 = vld [vmem:[%s7959_s30 + $0x108] ss:$60 sps:$4 sm:$0xff]  }
  0xfb   : > { %4475 = vmatprep.subr.bf16.mxu1 %v7166_v53  ;;  %v7235_v53 = vld [vmem:[%s7959_s30 + $0xf8c] ss:$60 sps:$4 sm:$0xff]  }
  0xfd   : > { %4405 = vmatpush2.bf16.msra.mxu0 %v7161_v56  ;;  %v7238_v56 = vld [vmem:[%s7959_s30 + $0x94] ss:$60 sps:$4 sm:$0xff]  }
  0xfe   : > { %4476 = vmatpush2.bf16.msra.mxu1 %v7164_v57  ;;  %4406 = vmatprep.subr.bf16.mxu0 %v7169_v14  ;;  %v7233_v57 = vld [vmem:[%s7959_s30 + $0xf88] ss:$60 sps:$4 sm:$0xff]   ;;  %v7236_v14 = vld [vmem:[%s7959_s30 + $0x90] ss:$60 sps:$4 sm:$0xff]  }
  0xff   : > { %4477 = vmatprep.subr.bf16.mxu1 %v7172_v58  ;;  %v7241_v58 = vld [vmem:[%s7959_s30 + $0xf14] ss:$60 sps:$4 sm:$0xff]  }
 0x101   : > { %4407 = vmatpush2.bf16.msra.mxu0 %v7167_v59  ;;  %v7244_v59 = vld [vmem:[%s7959_s30 + $0x1c] ss:$60 sps:$4 sm:$0xff]  }
 0x102   : > { %4478 = vmatpush2.bf16.msra.mxu1 %v7170_v60  ;;  %4408 = vmatprep.subr.bf16.mxu0 %v7175_v22  ;;  %v7239_v60 = vld [vmem:[%s7959_s30 + $0xf10] ss:$60 sps:$4 sm:$0xff]   ;;  %v7242_v22 = vld [vmem:[%s7959_s30 + $0x18] ss:$60 sps:$4 sm:$0xff]  }
 0x103   : > { %4479 = vmatprep.subr.bf16.mxu1 %v7178_v48  ;;  %v7247_v48 = vld [vmem:[%s7959_s30 + $0x724] ss:$60 sps:$4 sm:$0xff]  }
 0x105   : > { %4409 = vmatpush2.bf16.msra.mxu0 %v7173_v61  ;;  %v7250_v61 = vld [vmem:[%s7959_s30 + $0xae4] ss:$60 sps:$4 sm:$0xff]  }
 0x106   : > { %4480 = vmatpush2.bf16.msra.mxu1 %v7176_v62  ;;  %4410 = vmatprep.subr.bf16.mxu0 %v7181_v26  ;;  %v7245_v62 = vld [vmem:[%s7959_s30 + $0x720] ss:$60 sps:$4 sm:$0xff]  }
 0x107   : > { %4481 = vmatprep.subr.bf16.mxu1 %v7184_v0  ;;  %v7248_v26 = vld [vmem:[%s7959_s30 + $0xae0] ss:$60 sps:$4 sm:$0xff]   ;;  %v7253_v0 = vld [vmem:[%s7959_s30 + $0x6ac] ss:$60 sps:$4 sm:$0xff]  }
 0x109   : > { %4411 = vmatpush2.bf16.msra.mxu0 %v7179_v1  ;;  %v7256_v1 = vld [vmem:[%s7959_s30 + $0xa6c] ss:$60 sps:$4 sm:$0xff]  }
 0x10a   : > { %4482 = vmatpush2.bf16.msra.mxu1 %v7182_v2  ;;  %4412 = vmatprep.subr.bf16.mxu0 %v7187_v3 }
 0x10b   : > { %4483 = vmatprep.subr.bf16.mxu1 %v7190_v6  ;;  %v7251_v6 = vld [vmem:[%s7959_s30 + $0x6a8] ss:$60 sps:$4 sm:$0xff]  }
 0x10d   : > { %4413 = vmatpush2.bf16.msra.mxu0 %v7185_v7  ;;  %v7254_v7 = vld [vmem:[%s7959_s30 + $0xa68] ss:$60 sps:$4 sm:$0xff]  }
 0x10e   : > { %4484 = vmatpush2.bf16.msra.mxu1 %v7188_v8  ;;  %4414 = vmatprep.subr.bf16.mxu0 %v7193_v9 }
 0x10f   : > { %4485 = vmatprep.subr.bf16.mxu1 %v7196_v13  ;;  %v7259_v13 = vld [vmem:[%s7959_s30 + $0x634] ss:$60 sps:$4 sm:$0xff]  }
 0x111   : > { %4415 = vmatpush2.bf16.msra.mxu0 %v7191_v15  ;;  %v7262_v15 = vld [vmem:[%s7959_s30 + $0x9f4] ss:$60 sps:$4 sm:$0xff]  }
 0x112   : > { %4486 = vmatpush2.bf16.msra.mxu1 %v7194_v16  ;;  %4526 = vmatprep.subr.bf16.mxu0 %v7199_v18 }
 0x113   : > { %4597 = vmatprep.subr.bf16.mxu1 %v7202_v19  ;;  %v7257_v19 = vld [vmem:[%s7959_s30 + $0x630] ss:$60 sps:$4 sm:$0xff]  }
 0x114   : > { %4417 = vmatmul.mubr.bf16.vlgmr.msra.gmra.mxu0 %v8352_v24 }
 0x115   : > { %4488 = vmatmul.mubr.bf16.vlgmr.msra.gmra.mxu1 %v8358_v28  ;;  %4527 = vmatpush1.bf16.msra.mxu0 %v7197_v20  ;;  %v7260_v20 = vld [vmem:[%s7959_s30 + $0x9f0] ss:$60 sps:$4 sm:$0xff]  }
 0x116   : > { %4598 = vmatpush1.bf16.msra.mxu1 %v7200_v21  ;;  %4528 = vmatprep.subr.bf16.mxu0 %v7205_v5 }
 0x117   : > { %4599 = vmatprep.subr.bf16.mxu1 %v7208_v55  ;;  %4426 = vmatprep.mubr.bf16.mxu0 %v8368_v17  ;;  %v7265_v55 = vld [vmem:[%s7959_s30 + $0x5bc] ss:$60 sps:$4 sm:$0xff]  }
 0x118   : > { %4497 = vmatprep.mubr.bf16.mxu1 %v8374_v63 }
 0x119   : > { %4529 = vmatpush1.bf16.msra.mxu0 %v7203_v11  ;;  %v7268_v11 = vld [vmem:[%s7959_s30 + $0x97c] ss:$60 sps:$4 sm:$0xff]  }
 0x11a   : > { %4600 = vmatpush1.bf16.msra.mxu1 %v7206_v29  ;;  %4530 = vmatprep.subr.bf16.mxu0 %v7211_v30 }
 0x11b   : > { %4601 = vmatprep.subr.bf16.mxu1 %v7214_v31  ;;  %v8485_v31 = vld [vmem:[%s9808_s0 + $0x38] ss:$20 sps:$4 sm:$0xff]  }
 0x11c   : > { %4427 = vmatmul.mubr.bf16.gmra.mxu0 %v8384_v35 }
 0x11d   : > { %4498 = vmatmul.mubr.bf16.gmra.mxu1 %v8390_v38  ;;  %4531 = vmatpush1.bf16.msra.mxu0 %v7209_v32  ;;  %v7263_v32 = vld [vmem:[%s7959_s30 + $0x5b8] ss:$60 sps:$4 sm:$0xff]  }
 0x11e   : > { %4602 = vmatpush1.bf16.msra.mxu1 %v7212_v33  ;;  %4532 = vmatprep.subr.bf16.mxu0 %v7217_v23  ;;  %v7266_v33 = vld [vmem:[%s7959_s30 + $0x978] ss:$60 sps:$4 sm:$0xff]  }
 0x11f   : > { %4603 = vmatprep.subr.bf16.mxu1 %v7220_v34  ;;  %4436 = vmatprep.mubr.bf16.mxu0 %v8400_v41 }
 0x120   : > { %4507 = vmatprep.mubr.bf16.mxu1 %v8406_v44 }
 0x121   : > { %4533 = vmatpush1.bf16.msra.mxu0 %v7215_v27  ;;  %v7271_v27 = vld [vmem:[%s7959_s30 + $0x544] ss:$60 sps:$4 sm:$0xff]  }
 0x122   : > { %4604 = vmatpush1.bf16.msra.mxu1 %v7218_v12  ;;  %4534 = vmatprep.subr.bf16.mxu0 %v7223_v39  ;;  %v7274_v12 = vld [vmem:[%s7959_s30 + $0x904] ss:$60 sps:$4 sm:$0xff]  }
 0x123   : > { %4605 = vmatprep.subr.bf16.mxu1 %v7226_v40 }
 0x124   : > { %4437 = vmatmul.mubr.bf16.gmra.mxu0 %v8416_v49 }
 0x125   : > { %4508 = vmatmul.mubr.bf16.gmra.mxu1 %v8422_v51  ;;  %4535 = vmatpush1.bf16.msra.mxu0 %v7221_v50  ;;  %v7269_v50 = vld [vmem:[%s7959_s30 + $0x540] ss:$60 sps:$4 sm:$0xff]  }
 0x126   : > { %4606 = vmatpush1.bf16.msra.mxu1 %v7224_v46  ;;  %4536 = vmatprep.subr.bf16.mxu0 %v7229_v47  ;;  %v7272_v46 = vld [vmem:[%s7959_s30 + $0x900] ss:$60 sps:$4 sm:$0xff]  }
 0x127   : > { %4607 = vmatprep.subr.bf16.mxu1 %v7232_v4  ;;  %4446 = vmatprep.mubr.bf16.mxu0 %v8127_v36 }
 0x128   : > { %4517 = vmatprep.mubr.bf16.mxu1 %v8129_v37 }
 0x129   : > { %4537 = vmatpush1.bf16.msra.mxu0 %v7227_v52  ;;  %v7277_v52 = vld [vmem:[%s7959_s30 + $0x4cc] ss:$60 sps:$4 sm:$0xff]  }
 0x12a   : > { %4608 = vmatpush1.bf16.msra.mxu1 %v7230_v10  ;;  %4538 = vmatprep.subr.bf16.mxu0 %v7235_v53  ;;  %v7280_v10 = vld [vmem:[%s7959_s30 + $0x88c] ss:$60 sps:$4 sm:$0xff]  }
 0x12b   : > { %4609 = vmatprep.subr.bf16.mxu1 %v7238_v56 }
 0x12c   : > { %4447 = vmatmul.mubr.bf16.gmra.mxu0 %v8139_v42 }
 0x12d   : > { %4518 = vmatmul.mubr.bf16.gmra.mxu1 %v8141_v43  ;;  %4539 = vmatpush1.bf16.msra.mxu0 %v7233_v57  ;;  %v8516_v57 = vld [vmem:[%s9808_s0 + $0x60] ss:$20 sps:$4 sm:$0xff]  }
 0x12e   : > { %4610 = vmatpush1.bf16.msra.mxu1 %v7236_v14  ;;  %4540 = vmatprep.subr.bf16.mxu0 %v7241_v58  ;;  %v7275_v14 = vld [vmem:[%s7959_s30 + $0x4c8] ss:$60 sps:$4 sm:$0xff]  }
 0x12f   : > { %4611 = vmatprep.subr.bf16.mxu1 %v7244_v59  ;;  %4558 = vmatprep.mubr.bf16.mxu0 %v7857_v54  ;;  %v7278_v58 = vld [vmem:[%s7959_s30 + $0x888] ss:$60 sps:$4 sm:$0xff]  }
 0x130   : > { %4629 = vmatprep.mubr.bf16.mxu1 %v8304_v45  ;;  %v8454_v45 = vld [vmem:[%s9808_s0 + $0x10] ss:$20 sps:$4 sm:$0xff]  }
 0x131   : > { %4541 = vmatpush1.bf16.msra.mxu0 %v7239_v60 }
 0x132   : > { %4612 = vmatpush1.bf16.msra.mxu1 %v7242_v22  ;;  %4668 = vmatprep.subr.bf16.mxu0 %v7250_v61  ;;  %v7283_v22 = vld [vmem:[%s7959_s30 + $0x454] ss:$60 sps:$4 sm:$0xff]  }
 0x133   : > { %4613 = vmatprep.subr.bf16.mxu1 %v7247_v48  ;;  %v7286_v48 = vld [vmem:[%s7959_s30 + $0x814] ss:$60 sps:$4 sm:$0xff]  }
 0x134   : > { %v8447_v2 = vpop.f32.mrf.mxu0  ;;  %4559 = vmatmul.mubr.bf16.vlgmr.msra.gmra.mxu0 %v8454_v45 }
 0x135   : > { %v8449_v3 = vpop.f32.mrf.mxu1  ;;  %4669 = vmatpush1.bf16.msra.mxu0 %v7248_v26  ;;  %4568 = vmatprep.mubr.bf16.mxu0 %v7857_v54  ;;  %v7281_v26 = vld [vmem:[%s7959_s30 + $0x450] ss:$60 sps:$4 sm:$0xff]  }
 0x136   : > { %4614 = vmatpush2.bf16.msra.mxu1 %v7245_v62  ;;  %v8459_v8 = vpop.f32.mrf.mxu0  ;;  %4670 = vmatprep.subr.bf16.mxu0 %v7256_v1 }
 0x137   : > { %v8461_v9 = vpop.f32.mrf.mxu1  ;;  %4615 = vmatprep.subr.bf16.mxu1 %v7253_v0  ;;  %v7284_v0 = vld [vmem:[%s7959_s30 + $0x810] ss:$60 sps:$4 sm:$0xff]  }
 0x138   : > { %v8466_v16 = vpop.f32.mrf.mxu0 }
 0x139   : > { %v8468_v18 = vpop.f32.mrf.mxu1  ;;  %4671 = vmatpush1.bf16.msra.mxu0 %v7254_v7  ;;  %v7289_v7 = vld [vmem:[%s7959_s30 + $0x3dc] ss:$60 sps:$4 sm:$0xff]  }
 0x13a   : > { %4616 = vmatpush2.bf16.msra.mxu1 %v7251_v6  ;;  %v8472_v21 = vpop.f32.mrf.mxu0  ;;  %4672 = vmatprep.subr.bf16.mxu0 %v7262_v15 }
 0x13b   : > { %v8474_v5 = vpop.f32.mrf.mxu1  ;;  %4617 = vmatprep.subr.bf16.mxu1 %v7259_v13  ;;  %v7292_v13 = vld [vmem:[%s7959_s30 + $0x79c] ss:$60 sps:$4 sm:$0xff]  }
 0x13c   : > { %v8478_v29 = vpop.f32.mrf.mxu0  ;;  %4569 = vmatmul.mubr.bf16.gmra.mxu0 %v8485_v31 }
 0x13d   : > { %v8480_v30 = vpop.f32.mrf.mxu1  ;;  %4673 = vmatpush1.bf16.msra.mxu0 %v7260_v20  ;;  %4578 = vmatprep.mubr.bf16.mxu0 %v7857_v54  ;;  %v8547_v20 = vld [vmem:[%s9808_s0 + $0x88] ss:$0 sps:$4 sm:$0x11]  }
 0x13e   : > { %4618 = vmatpush2.bf16.msra.mxu1 %v7257_v19  ;;  %v8490_v23 = vpop.f32.mrf.mxu0  ;;  %4674 = vmatprep.subr.bf16.mxu0 %v7268_v11  ;;  %v7290_v11 = vld [vmem:[%s7959_s30 + $0x798] ss:$60 sps:$4 sm:$0xff]  }
 0x13f   : > { %v8492_v34 = vpop.f32.mrf.mxu1  ;;  %4619 = vmatprep.subr.bf16.mxu1 %v7265_v55  ;;  %v7287_v55 = vld [vmem:[%s7959_s30 + $0x3d8] ss:$60 sps:$4 sm:$0xff]  }
 0x140   : > { %v8497_v39 = vpop.f32.mrf.mxu0 }
 0x141   : > { %v8499_v40 = vpop.f32.mrf.mxu1  ;;  %4675 = vmatpush1.bf16.msra.mxu0 %v7266_v33 }
 0x142   : > { %4620 = vmatpush2.bf16.msra.mxu1 %v7263_v32  ;;  %v8503_v47 = vpop.f32.mrf.mxu0  ;;  %4676 = vmatprep.subr.bf16.mxu0 %v7274_v12  ;;  %v7298_v12 = vld [vmem:[%s7959_s30 + $0x1264] ss:$60 sps:$4 sm:$0xff]  }
 0x143   : > { %v8505_v4 = vpop.f32.mrf.mxu1  ;;  %4621 = vmatprep.subr.bf16.mxu1 %v7271_v27  ;;  %v7295_v27 = vld [vmem:[%s7959_s30 + $0xea4] ss:$60 sps:$4 sm:$0xff]  }
 0x144   : > { %v8509_v53 = vpop.f32.mrf.mxu0  ;;  %4579 = vmatmul.mubr.bf16.gmra.mxu0 %v8516_v57 }
 0x145   : > { %v8511_v56 = vpop.f32.mrf.mxu1  ;;  %4677 = vmatpush1.bf16.msra.mxu0 %v7272_v46  ;;  %4588 = vmatprep.mubr.bf16.mxu0 %v7857_v54  ;;  %v7293_v46 = vld [vmem:[%s7959_s30 + $0xea0] ss:$60 sps:$4 sm:$0xff]  }
 0x146   : > { %4622 = vmatpush2.bf16.msra.mxu1 %v7269_v50  ;;  %v8521_v59 = vpop.f32.mrf.mxu0  ;;  %4678 = vmatprep.subr.bf16.mxu0 %v7280_v10  ;;  %v7296_v10 = vld [vmem:[%s7959_s30 + $0x1260] ss:$60 sps:$4 sm:$0xff]  }
 0x147   : > { %v8523_v60 = vpop.f32.mrf.mxu1  ;;  %4623 = vmatprep.subr.bf16.mxu1 %v7277_v52 }
 0x148   : > { %v8528_v61 = vpop.f32.mrf.mxu0 }
 0x149   : > { %v8530_v62 = vpop.f32.mrf.mxu1  ;;  %4679 = vmatpush1.bf16.msra.mxu0 %v7278_v58  ;;  %v7301_v58 = vld [vmem:[%s7959_s30 + $0xe2c] ss:$60 sps:$4 sm:$0xff]  }
 0x14a   : > { %4624 = vmatpush2.bf16.msra.mxu1 %v7275_v14  ;;  %v8534_v1 = vpop.f32.mrf.mxu0  ;;  %4680 = vmatprep.subr.bf16.mxu0 %v7286_v48 }
 0x14b   : > { %v8536_v6 = vpop.f32.mrf.mxu1  ;;  %4625 = vmatprep.subr.bf16.mxu1 %v7283_v22  ;;  %v7304_v22 = vld [vmem:[%s7959_s30 + $0x11ec] ss:$60 sps:$4 sm:$0xff]  }
 0x14c   : > { %v8540_v15 = vpop.f32.mrf.mxu0  ;;  %4589 = vmatmul.mubr.bf16.gmra.mxu0 %v8547_v20 }
 0x14d   : > { %v8542_v19 = vpop.f32.mrf.mxu1  ;;  %4681 = vmatpush1.bf16.msra.mxu0 %v7284_v0  ;;  %4700 = vmatprep.mubr.bf16.mxu0 %v8310_v25  ;;  %v7299_v25 = vld [vmem:[%s7959_s30 + $0xe28] ss:$60 sps:$4 sm:$0xff]  }
 0x14e   : > { %4626 = vmatpush2.bf16.msra.mxu1 %v7281_v26  ;;  %v8552_v32 = vpop.f32.mrf.mxu0  ;;  %4682 = vmatprep.subr.bf16.mxu0 %v7292_v13  ;;  %v4064_v26 = vadd.f32 %v8449_v3, %v8447_v2  ;;  %v4066_v13 = vadd.f32 %v8461_v9, %v8459_v8  ;;  %v4068_v2 = vadd.f32 %v8468_v18, %v8466_v16  ;;  %v7305_v3 = vld [vmem:[%s7959_s30 + $0xdb0] ss:$60 sps:$4 sm:$0xff]  }
 0x14f   : > { %v8554_v33 = vpop.f32.mrf.mxu1  ;;  %4627 = vmatprep.subr.bf16.mxu1 %v7289_v7  ;;  %v7302_v7 = vld [vmem:[%s7959_s30 + $0x11e8] ss:$60 sps:$4 sm:$0xff]   ;;  %v7308_v8 = vld [vmem:[%s7959_s30 + $0x1170] ss:$60 sps:$4 sm:$0xff]  }
 0x150   : > { %v4026_v50 = vpop.f32.mrf.mxu0 }
 0x151   : > { %v4097_v52 = vpop.f32.mrf.mxu1  ;;  %4683 = vmatpush1.bf16.msra.mxu0 %v7290_v11  ;;  %v7307_v11 = vld [vmem:[%s7959_s30 + $0xdb4] ss:$60 sps:$4 sm:$0xff]   ;;  %v4070_v50 = vadd.f32 %v8474_v5, %v8472_v21 }
 0x152   : > { %4628 = vmatpush2.bf16.msra.mxu1 %v7287_v55  ;;  %v4027_v14 = vpop.f32.mrf.mxu0  ;;  %4684 = vmatprep.subr.bf16.mxu0 %v7295_v27  ;;  %v7316_v52 = vld [vmem:[%s7959_s30 + $0x10fc] ss:$60 sps:$4 sm:$0xff]  }
 0x153   : > { %4739 = vmatprep.subr.bf16.mxu1 %v7298_v12  ;;  %v4098_v48 = vpop.f32.mrf.mxu1  ;;  %v7310_v12 = vld [vmem:[%s7959_s30 + $0x1174] ss:$60 sps:$4 sm:$0xff]  }
 0x154   : > { %v4134_v0 = vpop.f32.mrf.mxu0  ;;  %v7311_v14 = vld [vmem:[%s7959_s30 + $0xd38] ss:$60 sps:$4 sm:$0xff]   ;;  %v7322_v48 = vld [vmem:[%s7959_s30 + $0x1084] ss:$60 sps:$4 sm:$0xff]  }
 0x155   : > { %4630 = vmatmul.mubr.bf16.vlgmr.msra.gmra.mxu1 %v8352_v24  ;;  %v4135_v55 = vadd.f32 %v4134_v0, %v4064_v26  ;;  %4685 = vmatpush2.bf16.msra.mxu0 %v7293_v46  ;;  %v7313_v46 = vld [vmem:[%s7959_s30 + $0xd3c] ss:$60 sps:$4 sm:$0xff]   ;;  %v4078_v26 = vadd.f32 %v8499_v40, %v8497_v39  ;;  %v4080_v0 = vadd.f32 %v8505_v4, %v8503_v47  ;;  %v7325_v40 = vld [vmem:[%s7959_s30 + $0xc4c] ss:$60 sps:$4 sm:$0xff]  }
 0x156   : > { %4740 = vmatpush1.bf16.msra.mxu1 %v7296_v10  ;;  %v4136_v27 = vpop.f32.mrf.mxu0  ;;  %4686 = vmatprep.subr.bf16.mxu0 %v7301_v58  ;;  %v7314_v21 = vld [vmem:[%s7959_s30 + $0x10f8] ss:$60 sps:$4 sm:$0xff]   ;;  %v4076_v58 = vadd.f32 %v8492_v34, %v8490_v23  ;;  %v7317_v23 = vld [vmem:[%s7959_s30 + $0xcc0] ss:$60 sps:$4 sm:$0xff]   ;;  %v7326_v47 = vld [vmem:[%s7959_s30 + $0x1008] ss:$60 sps:$4 sm:$0xff]  }
 0x157   : > { %4741 = vmatprep.subr.bf16.mxu1 %v7304_v22  ;;  %5641 = vst [vmem:[%s8575_s24] sm:$0xff] %v4135_v55  ;;  %v4137_v24 = vadd.f32 %v4136_v27, %v4066_v13  ;;  %4639 = vmatprep.mubr.bf16.mxu1 %v8368_v17  ;;  %v4074_v17 = vadd.f32 %v8480_v30, %v8478_v29  ;;  %v7319_v30 = vld [vmem:[%s7959_s30 + $0xcc4] ss:$60 sps:$4 sm:$0xff]   ;;  %v7328_v13 = vld [vmem:[%s7959_s30 + $0x100c] ss:$60 sps:$4 sm:$0xff]  }
 0x158   : > { %v4138_v9 = vpop.f32.mrf.mxu0  ;;  %v7320_v34 = vld [vmem:[%s7959_s30 + $0x1080] ss:$60 sps:$4 sm:$0xff]   ;;  %v4086_v27 = vadd.f32 %v8523_v60, %v8521_v59  ;;  %v7329_v59 = vld [vmem:[%s7959_s30 + $0xbd0] ss:$60 sps:$4 sm:$0xff]  }
 0x159   : > { %5642 = vst [vmem:[%s8575_s24 + $0x8] sm:$0xff] %v4137_v24  ;;  %v4139_v16 = vadd.f32 %v4138_v9, %v4068_v2  ;;  %4687 = vmatpush2.bf16.msra.mxu0 %v7299_v25  ;;  %v7334_v2 = vld [vmem:[%s7959_s30 + $0xf94] ss:$60 sps:$4 sm:$0xff]   ;;  %v4088_v24 = vadd.f32 %v8530_v62, %v8528_v61  ;;  %v7337_v62 = vld [vmem:[%s7959_s30 + $0xb5c] ss:$60 sps:$4 sm:$0xff]  }
 0x15a   : > { %4742 = vmatpush1.bf16.msra.mxu1 %v7302_v7  ;;  %v4140_v18 = vpop.f32.mrf.mxu0  ;;  %4688 = vmatprep.subr.bf16.mxu0 %v7307_v11  ;;  %v7323_v11 = vld [vmem:[%s7959_s30 + $0xc48] ss:$60 sps:$4 sm:$0xff]   ;;  %v7332_v60 = vld [vmem:[%s7959_s30 + $0xf90] ss:$60 sps:$4 sm:$0xff]  }
 0x15b   : > { %4743 = vmatprep.subr.bf16.mxu1 %v7310_v12  ;;  %5656 = vst [vmem:[%s8575_s24 + $0x78] sm:$0xff] %v4139_v16  ;;  %v4141_v10 = vadd.f32 %v4140_v18, %v4070_v50  ;;  %v7340_v50 = vld [vmem:[%s7959_s30 + $0xf1c] ss:$60 sps:$4 sm:$0xff]   ;;  %v4094_v16 = vadd.f32 %v8542_v19, %v8540_v15  ;;  %v7343_v19 = vld [vmem:[%s7959_s30 + $0x36c] ss:$60 sps:$4 sm:$0xff]  }
 0x15c   : > { %v4144_v5 = vpop.f32.mrf.mxu0 }
 0x15d   : > { %4640 = vmatmul.mubr.bf16.gmra.mxu1 %v8384_v35  ;;  %5657 = vst [vmem:[%s8575_s24 + $0x80] sm:$0xff] %v4141_v10  ;;  %v4145_v22 = vadd.f32 %v4144_v5, %v4074_v17  ;;  %4689 = vmatpush2.bf16.msra.mxu0 %v7305_v3  ;;  %v7346_v10 = vld [vmem:[%s7959_s30 + $0xaec] ss:$60 sps:$4 sm:$0xff]   ;;  %v7349_v5 = vld [vmem:[%s7959_s30 + $0x2f4] ss:$60 sps:$4 sm:$0xff]  }
 0x15e   : > { %4744 = vmatpush1.bf16.msra.mxu1 %v7308_v8  ;;  %v4146_v29 = vpop.f32.mrf.mxu0  ;;  %4690 = vmatprep.subr.bf16.mxu0 %v7313_v46  ;;  %v4090_v8 = vadd.f32 %v8536_v6, %v8534_v1  ;;  %v7335_v46 = vld [vmem:[%s7959_s30 + $0xb58] ss:$60 sps:$4 sm:$0xff]  }
 0x15f   : > { %4745 = vmatprep.subr.bf16.mxu1 %v7316_v52  ;;  %5671 = vst [vmem:[%s8575_s24 + $0xf0] sm:$0xff] %v4145_v22  ;;  %v4147_v35 = vadd.f32 %v4146_v29, %v4076_v58  ;;  %4649 = vmatprep.mubr.bf16.mxu1 %v8400_v41  ;;  %v4084_v41 = vadd.f32 %v8511_v56, %v8509_v53  ;;  %v7331_v56 = vld [vmem:[%s7959_s30 + $0xbd4] ss:$60 sps:$4 sm:$0xff]  }
 0x160   : > { %v4148_v25 = vpop.f32.mrf.mxu0  ;;  %v7338_v1 = vld [vmem:[%s7959_s30 + $0xf18] ss:$60 sps:$4 sm:$0xff]   ;;  %v4096_v52 = vadd.f32 %v8554_v33, %v8552_v32  ;;  %v7344_v32 = vld [vmem:[%s7959_s30 + $0xae8] ss:$60 sps:$4 sm:$0xff]   ;;  %v7347_v29 = vld [vmem:[%s7959_s30 + $0x2f0] ss:$60 sps:$4 sm:$0xff]  }
 0x161   : > { %5672 = vst [vmem:[%s8575_s24 + $0xf8] sm:$0xff] %v4147_v35  ;;  %v4149_v7 = vadd.f32 %v4148_v25, %v4078_v26  ;;  %4691 = vmatpush2.bf16.msra.mxu0 %v7311_v14  ;;  %v7352_v58 = vld [vmem:[%s7959_s30 + $0xa74] ss:$60 sps:$4 sm:$0xff]   ;;  %v7355_v35 = vld [vmem:[%s7959_s30 + $0x27c] ss:$60 sps:$4 sm:$0xff]  }
 0x162   : > { %4746 = vmatpush1.bf16.msra.mxu1 %v7314_v21  ;;  %v4150_v39 = vpop.f32.mrf.mxu0  ;;  %4692 = vmatprep.subr.bf16.mxu0 %v7319_v30  ;;  %v7341_v21 = vld [vmem:[%s7959_s30 + $0x368] ss:$60 sps:$4 sm:$0xff]   ;;  %v7350_v30 = vld [vmem:[%s7959_s30 + $0xa70] ss:$60 sps:$4 sm:$0xff]  }
 0x163   : > { %4747 = vmatprep.subr.bf16.mxu1 %v7322_v48  ;;  %5686 = vst [vmem:[%s8575_s24 + $0x168] sm:$0xff] %v4149_v7  ;;  %v4151_v55 = vadd.f32 %v4150_v39, %v4080_v0  ;;  %v7361_v0 = vld [vmem:[%s7959_s30 + $0x204] ss:$60 sps:$4 sm:$0xff]  }
 0x164   : > { %v4154_v4 = vpop.f32.mrf.mxu0  ;;  %v7364_v7 = vld [vmem:[%s7959_s30 + $0x984] ss:$60 sps:$4 sm:$0xff]  }
 0x165   : > { %4650 = vmatmul.mubr.bf16.gmra.mxu1 %v8416_v49  ;;  %5687 = vst [vmem:[%s8575_s24 + $0x170] sm:$0xff] %v4151_v55  ;;  %v4155_v12 = vadd.f32 %v4154_v4, %v4084_v41  ;;  %4693 = vmatpush2.bf16.msra.mxu0 %v7317_v23  ;;  %v7358_v23 = vld [vmem:[%s7959_s30 + $0x9fc] ss:$60 sps:$4 sm:$0xff]   ;;  %v7367_v41 = vld [vmem:[%s7959_s30 + $0x18c] ss:$60 sps:$4 sm:$0xff]  }
 0x166   : > { %4748 = vmatpush1.bf16.msra.mxu1 %v7320_v34  ;;  %v4156_v53 = vpop.f32.mrf.mxu0  ;;  %4694 = vmatprep.subr.bf16.mxu0 %v7325_v40  ;;  %v7353_v34 = vld [vmem:[%s7959_s30 + $0x278] ss:$60 sps:$4 sm:$0xff]   ;;  %v7359_v39 = vld [vmem:[%s7959_s30 + $0x200] ss:$60 sps:$4 sm:$0xff]   ;;  %v7370_v55 = vld [vmem:[%s7959_s30 + $0x90c] ss:$60 sps:$4 sm:$0xff]  }
 0x167   : > { %4749 = vmatprep.subr.bf16.mxu1 %v7328_v13  ;;  %5701 = vst [vmem:[%s8575_s24 + $0x1e0] sm:$0xff] %v4155_v12  ;;  %v4157_v49 = vadd.f32 %v4156_v53, %v4086_v27  ;;  %4659 = vmatprep.mubr.bf16.mxu1 %v8127_v36  ;;  %v7373_v4 = vld [vmem:[%s7959_s30 + $0x114] ss:$60 sps:$4 sm:$0xff]  }
 0x168   : > { %v4158_v3 = vpop.f32.mrf.mxu0  ;;  %v7376_v27 = vld [vmem:[%s7959_s30 + $0x894] ss:$60 sps:$4 sm:$0xff]  }
 0x169   : > { %5702 = vst [vmem:[%s8575_s24 + $0x1e8] sm:$0xff] %v4157_v49  ;;  %v4159_v9 = vadd.f32 %v4158_v3, %v4088_v24  ;;  %4695 = vmatpush2.bf16.msra.mxu0 %v7323_v11  ;;  %v7365_v11 = vld [vmem:[%s7959_s30 + $0x188] ss:$60 sps:$4 sm:$0xff]   ;;  %v7371_v12 = vld [vmem:[%s7959_s30 + $0x110] ss:$60 sps:$4 sm:$0xff]  }
 0x16a   : > { %4750 = vmatpush1.bf16.msra.mxu1 %v7326_v47  ;;  %v4160_v61 = vpop.f32.mrf.mxu0  ;;  %4696 = vmatprep.subr.bf16.mxu0 %v7331_v56  ;;  %v7382_v24 = vld [vmem:[%s7959_s30 + $0x81c] ss:$60 sps:$4 sm:$0xff]   ;;  %v7388_v3 = vld [vmem:[%s7959_s30 + $0x7a4] ss:$60 sps:$4 sm:$0xff]  }
 0x16b   : > { %4751 = vmatprep.subr.bf16.mxu1 %v7334_v2  ;;  %5716 = vst [vmem:[%s8575_s24 + $0x258] sm:$0xff] %v4159_v9  ;;  %v4161_v18 = vadd.f32 %v4160_v61, %v4090_v8  ;;  %v7379_v2 = vld [vmem:[%s7959_s30 + $0x9c] ss:$60 sps:$4 sm:$0xff]  }
 0x16c   : > { %v4164_v6 = vpop.f32.mrf.mxu0  ;;  %v7377_v49 = vld [vmem:[%s7959_s30 + $0x98] ss:$60 sps:$4 sm:$0xff]   ;;  %v7383_v8 = vld [vmem:[%s7959_s30 + $0x20] ss:$60 sps:$4 sm:$0xff]  }
 0x16d   : > { %4660 = vmatmul.mubr.bf16.gmra.mxu1 %v8139_v42  ;;  %5717 = vst [vmem:[%s8575_s24 + $0x260] sm:$0xff] %v4161_v18  ;;  %v4165_v17 = vadd.f32 %v4164_v6, %v4094_v16  ;;  %4697 = vmatpush2.bf16.msra.mxu0 %v7329_v59  ;;  %v7386_v9 = vld [vmem:[%s7959_s30 + $0x7a0] ss:$60 sps:$4 sm:$0xff]   ;;  %v7394_v16 = vld [vmem:[%s7959_s30 + $0xeac] ss:$60 sps:$4 sm:$0xff]  }
 0x16e   : > { %4752 = vmatpush1.bf16.msra.mxu1 %v7332_v60  ;;  %v4166_v15 = vpop.f32.mrf.mxu0  ;;  %4698 = vmatprep.subr.bf16.mxu0 %v7337_v62  ;;  %v7385_v60 = vld [vmem:[%s7959_s30 + $0x24] ss:$60 sps:$4 sm:$0xff]  }
 0x16f   : > { %4753 = vmatprep.subr.bf16.mxu1 %v7340_v50  ;;  %5731 = vst [vmem:[%s8575_s24 + $0x2d0] sm:$0x1] %v4165_v17  ;;  %v4167_v14 = vadd.f32 %v4166_v15, %v4096_v52  ;;  %4771 = vmatprep.mubr.bf16.mxu1 %v7857_v54  ;;  %v7391_v50 = vld [vmem:[%s7959_s30 + $0x72c] ss:$60 sps:$4 sm:$0xff]   ;;  %v7397_v17 = vld [vmem:[%s7959_s30 + $0x6b4] ss:$60 sps:$4 sm:$0xff]  }
 0x170   : > { %v4168_v33 = vpop.f32.mrf.mxu0  ;;  %v7389_v18 = vld [vmem:[%s7959_s30 + $0x728] ss:$60 sps:$4 sm:$0xff]   ;;  %v7400_v15 = vld [vmem:[%s7959_s30 + $0xe34] ss:$60 sps:$4 sm:$0xff]  }
 0x171   : > { %5732 = vst [vmem:[%s8575_s24 + $0x2d8] sm:$0x1] %v4167_v14  ;;  %4699 = vmatpush2.bf16.msra.mxu0 %v7335_v46  ;;  %v7392_v46 = vld [vmem:[%s7959_s30 + $0xea8] ss:$60 sps:$4 sm:$0xff]  }
 0x172   : > { %4754 = vmatpush1.bf16.msra.mxu1 %v7338_v1  ;;  %4810 = vmatprep.subr.bf16.mxu0 %v7343_v19  ;;  %v4169_v22 = vpop.f32.mrf.mxu0  ;;  %v8723_v1 = vld [vmem:[%s9808_s0 + $0x4] ss:$20 sps:$4 sm:$0xff]   ;;  %v7395_v19 = vld [vmem:[%s7959_s30 + $0x6b0] ss:$60 sps:$4 sm:$0xff]  }
 0x173   : > { %4881 = vmatprep.subr.bf16.mxu1 %v7346_v10  ;;  %v7398_v10 = vld [vmem:[%s7959_s30 + $0xe30] ss:$60 sps:$4 sm:$0xff]   ;;  %v7406_v22 = vld [vmem:[%s7959_s30 + $0xdbc] ss:$60 sps:$4 sm:$0xff]  }
 0x174   : > { %4701 = vmatmul.mubr.bf16.vlgmr.msra.gmra.mxu0 %v8358_v28  ;;  %v7356_v28 = vld [vmem:[%s7959_s30 + $0x9f8] ss:$60 sps:$4 sm:$0xff]  }
 0x175   : > { %4772 = vmatmul.mubr.bf16.vlgmr.msra.gmra.mxu1 %v8454_v45  ;;  %v8652_v48 = vpop.f32.mrf.mxu1  ;;  %4811 = vmatpush1.bf16.msra.mxu0 %v7341_v21 }
 0x176   : > { %4882 = vmatpush1.bf16.msra.mxu1 %v7344_v32  ;;  %4812 = vmatprep.subr.bf16.mxu0 %v7349_v5 }
 0x177   : > { %v8654_v26 = vpop.f32.mrf.mxu1  ;;  %4883 = vmatprep.subr.bf16.mxu1 %v7352_v58  ;;  %4710 = vmatprep.mubr.bf16.mxu0 %v8374_v63  ;;  %v7362_v63 = vld [vmem:[%s7959_s30 + $0x980] ss:$60 sps:$4 sm:$0xff]  }
 0x178   : > { %4781 = vmatprep.mubr.bf16.mxu1 %v7857_v54  ;;  %v7403_v58 = vld [vmem:[%s7959_s30 + $0x63c] ss:$60 sps:$4 sm:$0xff]  }
 0x179   : > { %v8662_v45 = vpop.f32.mrf.mxu1  ;;  %4813 = vmatpush1.bf16.msra.mxu0 %v7347_v29 }
 0x17a   : > { %4884 = vmatpush1.bf16.msra.mxu1 %v7350_v30  ;;  %4814 = vmatprep.subr.bf16.mxu0 %v7355_v35  ;;  %v7401_v35 = vld [vmem:[%s7959_s30 + $0x638] ss:$60 sps:$4 sm:$0xff]  }
 0x17b   : > { %v8664_v25 = vpop.f32.mrf.mxu1  ;;  %4885 = vmatprep.subr.bf16.mxu1 %v7358_v23  ;;  %v7404_v23 = vld [vmem:[%s7959_s30 + $0xdb8] ss:$60 sps:$4 sm:$0xff]  }
 0x17c   : > { %4711 = vmatmul.mubr.bf16.gmra.mxu0 %v8390_v38  ;;  %v7368_v38 = vld [vmem:[%s7959_s30 + $0x908] ss:$60 sps:$4 sm:$0xff]  }
 0x17d   : > { %v8671_v40 = vpop.f32.mrf.mxu1  ;;  %4782 = vmatmul.mubr.bf16.gmra.mxu1 %v8485_v31  ;;  %4815 = vmatpush1.bf16.msra.mxu0 %v7353_v34 }
 0x17e   : > { %4886 = vmatpush1.bf16.msra.mxu1 %v7356_v28  ;;  %4816 = vmatprep.subr.bf16.mxu0 %v7361_v0 }
 0x17f   : > { %v8674_v13 = vpop.f32.mrf.mxu1  ;;  %4887 = vmatprep.subr.bf16.mxu1 %v7364_v7  ;;  %4720 = vmatprep.mubr.bf16.mxu0 %v8406_v44  ;;  %v7374_v44 = vld [vmem:[%s7959_s30 + $0x890] ss:$60 sps:$4 sm:$0xff]  }
 0x180   : > { %4791 = vmatprep.mubr.bf16.mxu1 %v7857_v54 }
 0x181   : > { %v8682_v47 = vpop.f32.mrf.mxu1  ;;  %4817 = vmatpush1.bf16.msra.mxu0 %v7359_v39 }
 0x182   : > { %4888 = vmatpush1.bf16.msra.mxu1 %v7362_v63  ;;  %4818 = vmatprep.subr.bf16.mxu0 %v7367_v41  ;;  %v7412_v63 = vld [vmem:[%s7959_s30 + $0xd44] ss:$60 sps:$4 sm:$0xff]  }
 0x183   : > { %v8684_v31 = vpop.f32.mrf.mxu1  ;;  %4889 = vmatprep.subr.bf16.mxu1 %v7370_v55 }
 0x184   : > { %4721 = vmatmul.mubr.bf16.gmra.mxu0 %v8422_v51  ;;  %v7380_v51 = vld [vmem:[%s7959_s30 + $0x818] ss:$60 sps:$4 sm:$0xff]  }
 0x185   : > { %v8691_v53 = vpop.f32.mrf.mxu1  ;;  %4792 = vmatmul.mubr.bf16.gmra.mxu1 %v8516_v57  ;;  %4819 = vmatpush1.bf16.msra.mxu0 %v7365_v11  ;;  %v7407_v11 = vld [vmem:[%s7959_s30 + $0x5c0] ss:$60 sps:$4 sm:$0xff]  }
 0x186   : > { %4890 = vmatpush1.bf16.msra.mxu1 %v7368_v38  ;;  %4820 = vmatprep.subr.bf16.mxu0 %v7373_v4  ;;  %v7410_v38 = vld [vmem:[%s7959_s30 + $0xd40] ss:$60 sps:$4 sm:$0xff]  }
 0x187   : > { %v8694_v56 = vpop.f32.mrf.mxu1  ;;  %4891 = vmatprep.subr.bf16.mxu1 %v7376_v27  ;;  %4730 = vmatprep.mubr.bf16.mxu0 %v8129_v37 }
 0x188   : > { %4801 = vmatprep.mubr.bf16.mxu1 %v7857_v54 }
 0x189   : > { %v8702_v59 = vpop.f32.mrf.mxu1  ;;  %4821 = vmatpush1.bf16.msra.mxu0 %v7371_v12 }
 0x18a   : > { %4892 = vmatpush1.bf16.msra.mxu1 %v7374_v44  ;;  %4822 = vmatprep.subr.bf16.mxu0 %v7379_v2 }
 0x18b   : > { %v8704_v57 = vpop.f32.mrf.mxu1  ;;  %4893 = vmatprep.subr.bf16.mxu1 %v7382_v24  ;;  %v7418_v24 = vld [vmem:[%s7959_s30 + $0xccc] ss:$60 sps:$4 sm:$0xff]  }
 0x18c   : > { %4731 = vmatmul.mubr.bf16.gmra.mxu0 %v8141_v43 }
 0x18d   : > { %v8711_v61 = vpop.f32.mrf.mxu1  ;;  %4802 = vmatmul.mubr.bf16.gmra.mxu1 %v8547_v20  ;;  %4823 = vmatpush1.bf16.msra.mxu0 %v7377_v49  ;;  %v8729_v20 = vld [vmem:[%s9808_s0 + $0xc] ss:$20 sps:$4 sm:$0xff]  }
 0x18e   : > { %4894 = vmatpush1.bf16.msra.mxu1 %v7380_v51  ;;  %4824 = vmatprep.subr.bf16.mxu0 %v7385_v60  ;;  %v7413_v60 = vld [vmem:[%s7959_s30 + $0x548] ss:$60 sps:$4 sm:$0xff]  }
 0x18f   : > { %v8714_v62 = vpop.f32.mrf.mxu1  ;;  %4895 = vmatprep.subr.bf16.mxu1 %v7388_v3  ;;  %4842 = vmatprep.mubr.bf16.mxu0 %v8723_v1  ;;  %v7416_v3 = vld [vmem:[%s7959_s30 + $0xcc8] ss:$60 sps:$4 sm:$0xff]  }
 0x190   : > { %4913 = vmatprep.mubr.bf16.mxu1 %v8729_v20 }
 0x191   : > { %v4239_v6 = vpop.f32.mrf.mxu1  ;;  %4825 = vmatpush1.bf16.msra.mxu0 %v7383_v8 }
 0x192   : > { %4896 = vmatpush1.bf16.msra.mxu1 %v7386_v9  ;;  %4826 = vmatprep.subr.bf16.mxu0 %v7391_v50 }
 0x193   : > { %v4240_v52 = vpop.f32.mrf.mxu1  ;;  %4897 = vmatprep.subr.bf16.mxu1 %v7394_v16 }
 0x194   : > { %v4276_v14 = vpop.f32.mrf.mxu0 }
 0x195   : > { %v4347_v21 = vpop.f32.mrf.mxu1  ;;  %v4277_v32 = vadd.f32 %v4276_v14, %v8652_v48  ;;  %4827 = vmatpush2.bf16.msra.mxu0 %v7389_v18 }
 0x196   : > { %4898 = vmatpush2.bf16.msra.mxu1 %v7392_v46  ;;  %v4278_v33 = vpop.f32.mrf.mxu0  ;;  %4828 = vmatprep.subr.bf16.mxu0 %v7397_v17  ;;  %v7424_v46 = vld [vmem:[%s7959_s30 + $0xc54] ss:$60 sps:$4 sm:$0xff]  }
 0x197   : > { %v4349_v5 = vpop.f32.mrf.mxu1  ;;  %4899 = vmatprep.subr.bf16.mxu1 %v7400_v15  ;;  %v4279_v29 = vadd.f32 %v4278_v33, %v8654_v26  ;;  %v4348_v30 = vadd.f32 %v4347_v21, %v4277_v32  ;;  %v7409_v26 = vld [vmem:[%s7959_s30 + $0x5c4] ss:$60 sps:$4 sm:$0xff]   ;;  %v7419_v17 = vld [vmem:[%s7959_s30 + $0x4d0] ss:$60 sps:$4 sm:$0xff]   ;;  %v7430_v33 = vld [vmem:[%s7959_s30 + $0xbdc] ss:$60 sps:$4 sm:$0xff]  }
 0x198   : > { %v4280_v34 = vpop.f32.mrf.mxu0  ;;  %v7422_v15 = vld [vmem:[%s7959_s30 + $0xc50] ss:$60 sps:$4 sm:$0xff]  }
 0x199   : > { %v4351_v28 = vpop.f32.mrf.mxu1  ;;  %5643 = vst [vmem:[%s8575_s24 + $0x10] sm:$0xff] %v4348_v30  ;;  %v4281_v48 = vadd.f32 %v4280_v34, %v8662_v45  ;;  %v4350_v0 = vadd.f32 %v4349_v5, %v4279_v29  ;;  %4829 = vmatpush2.bf16.msra.mxu0 %v7395_v19  ;;  %v7428_v29 = vld [vmem:[%s7959_s30 + $0xbd8] ss:$60 sps:$4 sm:$0xff]  }
 0x19a   : > { %4900 = vmatpush2.bf16.msra.mxu1 %v7398_v10  ;;  %v4282_v7 = vpop.f32.mrf.mxu0  ;;  %4830 = vmatprep.subr.bf16.mxu0 %v7403_v58 }
 0x19b   : > { %v4353_v39 = vpop.f32.mrf.mxu1  ;;  %4901 = vmatprep.subr.bf16.mxu1 %v7406_v22  ;;  %5644 = vst [vmem:[%s8575_s24 + $0x18] sm:$0xff] %v4350_v0  ;;  %v4283_v41 = vadd.f32 %v4282_v7, %v8664_v25  ;;  %v4352_v55 = vadd.f32 %v4351_v28, %v4281_v48  ;;  %v7415_v25 = vld [vmem:[%s7959_s30 + $0x54c] ss:$60 sps:$4 sm:$0xff]   ;;  %v7425_v22 = vld [vmem:[%s7959_s30 + $0x458] ss:$60 sps:$4 sm:$0xff]  }
 0x19c   : > { %v4286_v45 = vpop.f32.mrf.mxu0  ;;  %v7436_v48 = vld [vmem:[%s7959_s30 + $0xb64] ss:$60 sps:$4 sm:$0xff]  }
 0x19d   : > { %v4357_v4 = vpop.f32.mrf.mxu1  ;;  %5658 = vst [vmem:[%s8575_s24 + $0x88] sm:$0xff] %v4352_v55  ;;  %v4287_v27 = vadd.f32 %v4286_v45, %v8671_v40  ;;  %v4354_v12 = vadd.f32 %v4353_v39, %v4283_v41  ;;  %4831 = vmatpush2.bf16.msra.mxu0 %v7401_v35  ;;  %v7431_v39 = vld [vmem:[%s7959_s30 + $0x3e0] ss:$60 sps:$4 sm:$0xff]   ;;  %v7442_v45 = vld [vmem:[%s7959_s30 + $0x374] ss:$60 sps:$4 sm:$0xff]  }
 0x19e   : > { %4902 = vmatpush2.bf16.msra.mxu1 %v7404_v23  ;;  %v4288_v44 = vpop.f32.mrf.mxu0  ;;  %4832 = vmatprep.subr.bf16.mxu0 %v7409_v26  ;;  %v7434_v26 = vld [vmem:[%s7959_s30 + $0xb60] ss:$60 sps:$4 sm:$0xff]  }
 0x19f   : > { %v4359_v2 = vpop.f32.mrf.mxu1  ;;  %4903 = vmatprep.subr.bf16.mxu1 %v7412_v63  ;;  %5659 = vst [vmem:[%s8575_s24 + $0x90] sm:$0xff] %v4354_v12  ;;  %v4289_v49 = vadd.f32 %v4288_v44, %v8674_v13  ;;  %v4358_v51 = vadd.f32 %v4357_v4, %v4287_v27  ;;  %v7421_v13 = vld [vmem:[%s7959_s30 + $0x4d4] ss:$60 sps:$4 sm:$0xff]   ;;  %v7437_v12 = vld [vmem:[%s7959_s30 + $0x1268] ss:$60 sps:$4 sm:$0xff]  }
 0x1a0   : > { %v4290_v40 = vpop.f32.mrf.mxu0 }
 0x1a1   : > { %v4361_v8 = vpop.f32.mrf.mxu1  ;;  %5673 = vst [vmem:[%s8575_s24 + $0x100] sm:$0xff] %v4358_v51  ;;  %v4291_v9 = vadd.f32 %v4290_v40, %v8682_v47  ;;  %v4360_v50 = vadd.f32 %v4359_v2, %v4289_v49  ;;  %4833 = vmatpush2.bf16.msra.mxu0 %v7407_v11  ;;  %v7448_v49 = vld [vmem:[%s7959_s30 + $0x2fc] ss:$60 sps:$4 sm:$0xff]   ;;  %v8799_v40 = vld [vmem:[%s9808_s0] ss:$20 sps:$4 sm:$0xff]  }
 0x1a2   : > { %4904 = vmatpush2.bf16.msra.mxu1 %v7410_v38  ;;  %v4292_v16 = vpop.f32.mrf.mxu0  ;;  %4834 = vmatprep.subr.bf16.mxu0 %v7415_v25 }
 0x1a3   : > { %v4363_v18 = vpop.f32.mrf.mxu1  ;;  %4905 = vmatprep.subr.bf16.mxu1 %v7418_v24  ;;  %5674 = vst [vmem:[%s8575_s24 + $0x108] sm:$0xff] %v4360_v50  ;;  %v4293_v6 = vadd.f32 %v4292_v16, %v8684_v31  ;;  %v4362_v52 = vadd.f32 %v4361_v8, %v4291_v9  ;;  %v7427_v31 = vld [vmem:[%s7959_s30 + $0x45c] ss:$60 sps:$4 sm:$0xff]   ;;  %v7445_v24 = vld [vmem:[%s7959_s30 + $0x11f4] ss:$60 sps:$4 sm:$0xff]  }
 0x1a4   : > { %v4296_v47 = vpop.f32.mrf.mxu0  ;;  %v8805_v8 = vld [vmem:[%s9808_s0 + $0x8] ss:$20 sps:$4 sm:$0xff]   ;;  %v7454_v50 = vld [vmem:[%s7959_s30 + $0x284] ss:$60 sps:$4 sm:$0xff]  }
 0x1a5   : > { %v4367_v19 = vpop.f32.mrf.mxu1  ;;  %5688 = vst [vmem:[%s8575_s24 + $0x178] sm:$0xff] %v4362_v52  ;;  %v4297_v10 = vadd.f32 %v4296_v47, %v8691_v53  ;;  %v4364_v14 = vadd.f32 %v4363_v18, %v4293_v6  ;;  %4835 = vmatpush2.bf16.msra.mxu0 %v7413_v60  ;;  %v7443_v60 = vld [vmem:[%s7959_s30 + $0x11f0] ss:$60 sps:$4 sm:$0xff]   ;;  %v7451_v9 = vld [vmem:[%s7959_s30 + $0x117c] ss:$60 sps:$4 sm:$0xff]  }
 0x1a6   : > { %4906 = vmatpush2.bf16.msra.mxu1 %v7416_v3  ;;  %v4298_v21 = vpop.f32.mrf.mxu0  ;;  %4836 = vmatprep.subr.bf16.mxu0 %v7421_v13  ;;  %v7446_v3 = vld [vmem:[%s7959_s30 + $0x2f8] ss:$60 sps:$4 sm:$0xff]   ;;  %v8813_v16 = vld [vmem:[%s9808_s0 + $0x2c] ss:$20 sps:$4 sm:$0xff]   ;;  %v8831_v47 = vld [vmem:[%s9808_s0 + $0x28] ss:$20 sps:$4 sm:$0xff]  }
 0x1a7   : > { %v4369_v32 = vpop.f32.mrf.mxu1  ;;  %4907 = vmatprep.subr.bf16.mxu1 %v7424_v46  ;;  %5689 = vst [vmem:[%s8575_s24 + $0x180] sm:$0xff] %v4364_v14  ;;  %v4299_v5 = vadd.f32 %v4298_v21, %v8694_v56  ;;  %v4368_v58 = vadd.f32 %v4367_v19, %v4297_v10  ;;  %v7433_v56 = vld [vmem:[%s7959_s30 + $0x3e4] ss:$60 sps:$4 sm:$0xff]   ;;  %v8819_v18 = vld [vmem:[%s9808_s0 + $0x34] ss:$20 sps:$4 sm:$0xff]  }
 0x1a8   : > { %v4300_v53 = vpop.f32.mrf.mxu0  ;;  %v7449_v13 = vld [vmem:[%s7959_s30 + $0x1178] ss:$60 sps:$4 sm:$0xff]   ;;  %v7452_v46 = vld [vmem:[%s7959_s30 + $0x280] ss:$60 sps:$4 sm:$0xff]   ;;  %v7460_v52 = vld [vmem:[%s7959_s30 + $0x20c] ss:$60 sps:$4 sm:$0xff]  }
 0x1a9   : > { %v4371_v30 = vpop.f32.mrf.mxu1  ;;  %5703 = vst [vmem:[%s8575_s24 + $0x1f0] sm:$0xff] %v4368_v58  ;;  %v4301_v35 = vadd.f32 %v4300_v53, %v8702_v59  ;;  %v4370_v23 = vadd.f32 %v4369_v32, %v4299_v5  ;;  %4837 = vmatpush2.bf16.msra.mxu0 %v7419_v17  ;;  %v7457_v6 = vld [vmem:[%s7959_s30 + $0x1104] ss:$60 sps:$4 sm:$0xff]   ;;  %v7463_v10 = vld [vmem:[%s7959_s30 + $0x108c] ss:$60 sps:$4 sm:$0xff]  }
 0x1aa   : > { %4908 = vmatpush2.bf16.msra.mxu1 %v7422_v15  ;;  %v4302_v34 = vpop.f32.mrf.mxu0  ;;  %4838 = vmatprep.subr.bf16.mxu0 %v7427_v31  ;;  %v7455_v17 = vld [vmem:[%s7959_s30 + $0x1100] ss:$60 sps:$4 sm:$0xff]   ;;  %v7458_v15 = vld [vmem:[%s7959_s30 + $0x208] ss:$60 sps:$4 sm:$0xff]   ;;  %v7466_v14 = vld [vmem:[%s7959_s30 + $0x194] ss:$60 sps:$4 sm:$0xff]  }
 0x1ab   : > { %v4373_v28 = vpop.f32.mrf.mxu1  ;;  %4909 = vmatprep.subr.bf16.mxu1 %v7430_v33  ;;  %5704 = vst [vmem:[%s8575_s24 + $0x1f8] sm:$0xff] %v4370_v23  ;;  %v4303_v0 = vadd.f32 %v4302_v34, %v8704_v57  ;;  %v4372_v7 = vadd.f32 %v4371_v30, %v4301_v35  ;;  %v7439_v57 = vld [vmem:[%s7959_s30 + $0x126c] ss:$60 sps:$4 sm:$0xff]   ;;  %v8837_v19 = vld [vmem:[%s9808_s0 + $0x30] ss:$20 sps:$4 sm:$0xff]  }
 0x1ac   : > { %v4306_v59 = vpop.f32.mrf.mxu0  ;;  %v8845_v21 = vld [vmem:[%s9808_s0 + $0x54] ss:$20 sps:$4 sm:$0xff]   ;;  %v8851_v32 = vld [vmem:[%s9808_s0 + $0x5c] ss:$20 sps:$4 sm:$0xff]   ;;  %v7478_v23 = vld [vmem:[%s7959_s30 + $0xa4] ss:$60 sps:$4 sm:$0xff]  }
 0x1ad   : > { %v4377_v63 = vpop.f32.mrf.mxu1  ;;  %5718 = vst [vmem:[%s8575_s24 + $0x268] sm:$0xff] %v4372_v7  ;;  %v4307_v41 = vadd.f32 %v4306_v59, %v8711_v61  ;;  %v4374_v55 = vadd.f32 %v4373_v28, %v4303_v0  ;;  %4839 = vmatpush2.bf16.msra.mxu0 %v7425_v22  ;;  %v7440_v61 = vld [vmem:[%s7959_s30 + $0x370] ss:$60 sps:$4 sm:$0xff]   ;;  %v7461_v31 = vld [vmem:[%s7959_s30 + $0x1088] ss:$60 sps:$4 sm:$0xff]  }
 0x1ae   : > { %4910 = vmatpush2.bf16.msra.mxu1 %v7428_v29  ;;  %v4308_v11 = vpop.f32.mrf.mxu0  ;;  %4840 = vmatprep.subr.bf16.mxu0 %v7433_v56  ;;  %v7464_v33 = vld [vmem:[%s7959_s30 + $0x190] ss:$60 sps:$4 sm:$0xff]   ;;  %v7472_v58 = vld [vmem:[%s7959_s30 + $0x11c] ss:$60 sps:$4 sm:$0xff]   ;;  %v7481_v56 = vld [vmem:[%s7959_s30 + $0xf24] ss:$60 sps:$4 sm:$0xff]  }
 0x1af   : > { %v4379_v38 = vpop.f32.mrf.mxu1  ;;  %4911 = vmatprep.subr.bf16.mxu1 %v7436_v48  ;;  %5719 = vst [vmem:[%s8575_s24 + $0x270] sm:$0xff] %v4374_v55  ;;  %v4309_v4 = vadd.f32 %v4308_v11, %v8714_v62  ;;  %v4378_v27 = vadd.f32 %v4377_v63, %v4307_v41  ;;  %v7469_v5 = vld [vmem:[%s7959_s30 + $0x1014] ss:$60 sps:$4 sm:$0xff]   ;;  %v8867_v29 = vld [vmem:[%s9808_s0 + $0x58] ss:$20 sps:$4 sm:$0xff]  }
 0x1b0   : > { %v4310_v44 = vpop.f32.mrf.mxu0  ;;  %v8861_v22 = vld [vmem:[%s9808_s0 + $0x50] ss:$20 sps:$4 sm:$0xff]   ;;  %v7470_v30 = vld [vmem:[%s7959_s30 + $0x118] ss:$60 sps:$4 sm:$0xff]   ;;  %v7476_v28 = vld [vmem:[%s7959_s30 + $0xa0] ss:$60 sps:$4 sm:$0xff]  }
 0x1b1   : > { %v4381_v2 = vpop.f32.mrf.mxu1  ;;  %5733 = vst [vmem:[%s8575_s24 + $0x2e0] sm:$0x1] %v4378_v27  ;;  %v4380_v25 = vadd.f32 %v4379_v38, %v4309_v4  ;;  %4841 = vmatpush2.bf16.msra.mxu0 %v7431_v39  ;;  %v7467_v53 = vld [vmem:[%s7959_s30 + $0x1010] ss:$60 sps:$4 sm:$0xff]   ;;  %v7475_v35 = vld [vmem:[%s7959_s30 + $0xf9c] ss:$60 sps:$4 sm:$0xff]  }
 0x1b2   : > { %4912 = vmatpush2.bf16.msra.mxu1 %v7434_v26  ;;  %4952 = vmatprep.subr.bf16.mxu0 %v7439_v57  ;;  %v4311_v51 = vpop.f32.mrf.mxu0  ;;  %v7473_v34 = vld [vmem:[%s7959_s30 + $0xf98] ss:$60 sps:$4 sm:$0xff]   ;;  %v7484_v48 = vld [vmem:[%s7959_s30 + $0x2c] ss:$60 sps:$4 sm:$0xff]   ;;  %v7479_v0 = vld [vmem:[%s7959_s30 + $0xf20] ss:$60 sps:$4 sm:$0xff]  }
 0x1b3   : > { %5023 = vmatprep.subr.bf16.mxu1 %v7442_v45  ;;  %v4382_v62 = vpop.f32.mrf.mxu1  ;;  %5734 = vst [vmem:[%s8575_s24 + $0x2e8] sm:$0x1] %v4380_v25  ;;  %v7482_v7 = vld [vmem:[%s7959_s30 + $0x28] ss:$60 sps:$4 sm:$0xff]   ;;  %v7487_v39 = vld [vmem:[%s7959_s30 + $0x734] ss:$60 sps:$4 sm:$0xff]  }
 0x1b4   : > { %4843 = vmatmul.mubr.bf16.vlgmr.msra.gmra.mxu0 %v8799_v40  ;;  %v7490_v26 = vld [vmem:[%s7959_s30 + $0xaf4] ss:$60 sps:$4 sm:$0xff]   ;;  %v7493_v41 = vld [vmem:[%s7959_s30 + $0x6bc] ss:$60 sps:$4 sm:$0xff]   ;;  %v7505_v62 = vld [vmem:[%s7959_s30 + $0x5cc] ss:$60 sps:$4 sm:$0xff]  }
 0x1b5   : > { %4914 = vmatmul.mubr.bf16.vlgmr.msra.gmra.mxu1 %v8805_v8  ;;  %4953 = vmatpush1.bf16.msra.mxu0 %v7437_v12  ;;  %v7485_v59 = vld [vmem:[%s7959_s30 + $0x730] ss:$60 sps:$4 sm:$0xff]   ;;  %v7496_v55 = vld [vmem:[%s7959_s30 + $0xa7c] ss:$60 sps:$4 sm:$0xff]   ;;  %v7499_v12 = vld [vmem:[%s7959_s30 + $0x644] ss:$60 sps:$4 sm:$0xff]  }
 0x1b6   : > { %5024 = vmatpush1.bf16.msra.mxu1 %v7440_v61  ;;  %4954 = vmatprep.subr.bf16.mxu0 %v7445_v24  ;;  %v7488_v63 = vld [vmem:[%s7959_s30 + $0xaf0] ss:$60 sps:$4 sm:$0xff]   ;;  %v7494_v45 = vld [vmem:[%s7959_s30 + $0xa78] ss:$60 sps:$4 sm:$0xff]   ;;  %v7502_v61 = vld [vmem:[%s7959_s30 + $0xa04] ss:$60 sps:$4 sm:$0xff]  }
 0x1b7   : > { %5025 = vmatprep.subr.bf16.mxu1 %v7448_v49  ;;  %4852 = vmatprep.mubr.bf16.mxu0 %v8813_v16  ;;  %v8899_v57 = vld [vmem:[%s9808_s0 + $0x10] ss:$20 sps:$4 sm:$0xff]   ;;  %v7497_v25 = vld [vmem:[%s7959_s30 + $0x640] ss:$60 sps:$4 sm:$0xff]  }
 0x1b8   : > { %4923 = vmatprep.mubr.bf16.mxu1 %v8819_v18  ;;  %v7500_v24 = vld [vmem:[%s7959_s30 + $0xa00] ss:$60 sps:$4 sm:$0xff]  }
 0x1b9   : > { %4955 = vmatpush1.bf16.msra.mxu0 %v7443_v60  ;;  %v7508_v60 = vld [vmem:[%s7959_s30 + $0x98c] ss:$60 sps:$4 sm:$0xff]  }
 0x1ba   : > { %5026 = vmatpush1.bf16.msra.mxu1 %v7446_v3  ;;  %4956 = vmatprep.subr.bf16.mxu0 %v7451_v9 }
 0x1bb   : > { %5027 = vmatprep.subr.bf16.mxu1 %v7454_v50  ;;  %v8930_v50 = vld [vmem:[%s9808_s0 + $0x38] ss:$20 sps:$4 sm:$0xff]  }
 0x1bc   : > { %4853 = vmatmul.mubr.bf16.gmra.mxu0 %v8831_v47 }
 0x1bd   : > { %4924 = vmatmul.mubr.bf16.gmra.mxu1 %v8837_v19  ;;  %4957 = vmatpush1.bf16.msra.mxu0 %v7449_v13  ;;  %v7503_v13 = vld [vmem:[%s7959_s30 + $0x5c8] ss:$60 sps:$4 sm:$0xff]  }
 0x1be   : > { %5028 = vmatpush1.bf16.msra.mxu1 %v7452_v46  ;;  %4958 = vmatprep.subr.bf16.mxu0 %v7457_v6  ;;  %v7506_v46 = vld [vmem:[%s7959_s30 + $0x988] ss:$60 sps:$4 sm:$0xff]  }
 0x1bf   : > { %5029 = vmatprep.subr.bf16.mxu1 %v7460_v52  ;;  %4862 = vmatprep.mubr.bf16.mxu0 %v8845_v21 }
 0x1c0   : > { %4933 = vmatprep.mubr.bf16.mxu1 %v8851_v32 }
 0x1c1   : > { %4959 = vmatpush1.bf16.msra.mxu0 %v7455_v17  ;;  %v7511_v17 = vld [vmem:[%s7959_s30 + $0x554] ss:$60 sps:$4 sm:$0xff]  }
 0x1c2   : > { %5030 = vmatpush1.bf16.msra.mxu1 %v7458_v15  ;;  %4960 = vmatprep.subr.bf16.mxu0 %v7463_v10  ;;  %v7514_v15 = vld [vmem:[%s7959_s30 + $0x914] ss:$60 sps:$4 sm:$0xff]  }
 0x1c3   : > { %5031 = vmatprep.subr.bf16.mxu1 %v7466_v14 }
 0x1c4   : > { %4863 = vmatmul.mubr.bf16.gmra.mxu0 %v8861_v22 }
 0x1c5   : > { %4934 = vmatmul.mubr.bf16.gmra.mxu1 %v8867_v29  ;;  %4961 = vmatpush1.bf16.msra.mxu0 %v7461_v31  ;;  %v7509_v31 = vld [vmem:[%s7959_s30 + $0x550] ss:$60 sps:$4 sm:$0xff]  }
 0x1c6   : > { %5032 = vmatpush1.bf16.msra.mxu1 %v7464_v33  ;;  %4962 = vmatprep.subr.bf16.mxu0 %v7469_v5  ;;  %v7512_v33 = vld [vmem:[%s7959_s30 + $0x910] ss:$60 sps:$4 sm:$0xff]  }
 0x1c7   : > { %5033 = vmatprep.subr.bf16.mxu1 %v7472_v58  ;;  %4872 = vmatprep.mubr.bf16.mxu0 %v8127_v36 }
 0x1c8   : > { %4943 = vmatprep.mubr.bf16.mxu1 %v8129_v37 }
 0x1c9   : > { %4963 = vmatpush1.bf16.msra.mxu0 %v7467_v53  ;;  %v7517_v53 = vld [vmem:[%s7959_s30 + $0x4dc] ss:$60 sps:$4 sm:$0xff]  }
 0x1ca   : > { %5034 = vmatpush1.bf16.msra.mxu1 %v7470_v30  ;;  %4964 = vmatprep.subr.bf16.mxu0 %v7475_v35  ;;  %v7520_v30 = vld [vmem:[%s7959_s30 + $0x89c] ss:$60 sps:$4 sm:$0xff]  }
 0x1cb   : > { %5035 = vmatprep.subr.bf16.mxu1 %v7478_v23 }
 0x1cc   : > { %4873 = vmatmul.mubr.bf16.gmra.mxu0 %v8139_v42 }
 0x1cd   : > { %4944 = vmatmul.mubr.bf16.gmra.mxu1 %v8141_v43  ;;  %4965 = vmatpush1.bf16.msra.mxu0 %v7473_v34  ;;  %v8961_v34 = vld [vmem:[%s9808_s0 + $0x60] ss:$20 sps:$4 sm:$0xff]  }
 0x1ce   : > { %5036 = vmatpush1.bf16.msra.mxu1 %v7476_v28  ;;  %4966 = vmatprep.subr.bf16.mxu0 %v7481_v56  ;;  %v7515_v28 = vld [vmem:[%s7959_s30 + $0x4d8] ss:$60 sps:$4 sm:$0xff]  }
 0x1cf   : > { %5037 = vmatprep.subr.bf16.mxu1 %v7484_v48  ;;  %4984 = vmatprep.mubr.bf16.mxu0 %v7857_v54  ;;  %v7518_v56 = vld [vmem:[%s7959_s30 + $0x898] ss:$60 sps:$4 sm:$0xff]  }
 0x1d0   : > { %5055 = vmatprep.mubr.bf16.mxu1 %v8723_v1  ;;  %v7491_v1 = vld [vmem:[%s7959_s30 + $0x6b8] ss:$60 sps:$4 sm:$0xff]  }
 0x1d1   : > { %4967 = vmatpush1.bf16.msra.mxu0 %v7479_v0 }
 0x1d2   : > { %5038 = vmatpush1.bf16.msra.mxu1 %v7482_v7  ;;  %5094 = vmatprep.subr.bf16.mxu0 %v7490_v26  ;;  %v7523_v7 = vld [vmem:[%s7959_s30 + $0x464] ss:$60 sps:$4 sm:$0xff]  }
 0x1d3   : > { %5039 = vmatprep.subr.bf16.mxu1 %v7487_v39  ;;  %v7526_v39 = vld [vmem:[%s7959_s30 + $0x824] ss:$60 sps:$4 sm:$0xff]  }
 0x1d4   : > { %v8892_v11 = vpop.f32.mrf.mxu0  ;;  %4985 = vmatmul.mubr.bf16.vlgmr.msra.gmra.mxu0 %v8899_v57 }
 0x1d5   : > { %v8894_v38 = vpop.f32.mrf.mxu1  ;;  %5095 = vmatpush1.bf16.msra.mxu0 %v7488_v63  ;;  %4994 = vmatprep.mubr.bf16.mxu0 %v7857_v54  ;;  %v7521_v63 = vld [vmem:[%s7959_s30 + $0x460] ss:$60 sps:$4 sm:$0xff]  }
 0x1d6   : > { %5040 = vmatpush2.bf16.msra.mxu1 %v7485_v59  ;;  %v8904_v4 = vpop.f32.mrf.mxu0  ;;  %5096 = vmatprep.subr.bf16.mxu0 %v7496_v55 }
 0x1d7   : > { %v8906_v27 = vpop.f32.mrf.mxu1  ;;  %5041 = vmatprep.subr.bf16.mxu1 %v7493_v41  ;;  %v7524_v41 = vld [vmem:[%s7959_s30 + $0x820] ss:$60 sps:$4 sm:$0xff]  }
 0x1d8   : > { %v8911_v44 = vpop.f32.mrf.mxu0 }
 0x1d9   : > { %v8913_v2 = vpop.f32.mrf.mxu1  ;;  %5097 = vmatpush1.bf16.msra.mxu0 %v7494_v45  ;;  %v7529_v45 = vld [vmem:[%s7959_s30 + $0x3ec] ss:$60 sps:$4 sm:$0xff]  }
 0x1da   : > { %5042 = vmatpush2.bf16.msra.mxu1 %v7491_v1  ;;  %v8917_v49 = vpop.f32.mrf.mxu0  ;;  %5098 = vmatprep.subr.bf16.mxu0 %v7502_v61 }
 0x1db   : > { %v8919_v51 = vpop.f32.mrf.mxu1  ;;  %5043 = vmatprep.subr.bf16.mxu1 %v7499_v12  ;;  %v7532_v12 = vld [vmem:[%s7959_s30 + $0x7ac] ss:$60 sps:$4 sm:$0xff]  }
 0x1dc   : > { %v8923_v3 = vpop.f32.mrf.mxu0  ;;  %4995 = vmatmul.mubr.bf16.gmra.mxu0 %v8930_v50 }
 0x1dd   : > { %v8925_v9 = vpop.f32.mrf.mxu1  ;;  %5099 = vmatpush1.bf16.msra.mxu0 %v7500_v24  ;;  %5004 = vmatprep.mubr.bf16.mxu0 %v7857_v54  ;;  %v8992_v24 = vld [vmem:[%s9808_s0 + $0x88] ss:$0 sps:$4 sm:$0x11]  }
 0x1de   : > { %5044 = vmatpush2.bf16.msra.mxu1 %v7497_v25  ;;  %v8935_v6 = vpop.f32.mrf.mxu0  ;;  %5100 = vmatprep.subr.bf16.mxu0 %v7508_v60  ;;  %v7530_v60 = vld [vmem:[%s7959_s30 + $0x7a8] ss:$60 sps:$4 sm:$0xff]  }
 0x1df   : > { %v8937_v52 = vpop.f32.mrf.mxu1  ;;  %5045 = vmatprep.subr.bf16.mxu1 %v7505_v62  ;;  %v7527_v62 = vld [vmem:[%s7959_s30 + $0x3e8] ss:$60 sps:$4 sm:$0xff]  }
 0x1e0   : > { %v8942_v10 = vpop.f32.mrf.mxu0 }
 0x1e1   : > { %v8944_v14 = vpop.f32.mrf.mxu1  ;;  %5101 = vmatpush1.bf16.msra.mxu0 %v7506_v46 }
 0x1e2   : > { %5046 = vmatpush2.bf16.msra.mxu1 %v7503_v13  ;;  %v8948_v5 = vpop.f32.mrf.mxu0  ;;  %5102 = vmatprep.subr.bf16.mxu0 %v7514_v15  ;;  %v7538_v15 = vld [vmem:[%s7959_s30 + $0x1274] ss:$60 sps:$4 sm:$0xff]  }
 0x1e3   : > { %v8950_v58 = vpop.f32.mrf.mxu1  ;;  %5047 = vmatprep.subr.bf16.mxu1 %v7511_v17  ;;  %v7535_v17 = vld [vmem:[%s7959_s30 + $0xeb4] ss:$60 sps:$4 sm:$0xff]  }
 0x1e4   : > { %v8954_v35 = vpop.f32.mrf.mxu0  ;;  %5005 = vmatmul.mubr.bf16.gmra.mxu0 %v8961_v34 }
 0x1e5   : > { %v8956_v23 = vpop.f32.mrf.mxu1  ;;  %5103 = vmatpush1.bf16.msra.mxu0 %v7512_v33  ;;  %5014 = vmatprep.mubr.bf16.mxu0 %v7857_v54 }
 0x1e6   : > { %5048 = vmatpush2.bf16.msra.mxu1 %v7509_v31  ;;  %v8966_v48 = vpop.f32.mrf.mxu0  ;;  %5104 = vmatprep.subr.bf16.mxu0 %v7520_v30  ;;  %v7536_v30 = vld [vmem:[%s7959_s30 + $0x1270] ss:$60 sps:$4 sm:$0xff]  }
 0x1e7   : > { %v8968_v0 = vpop.f32.mrf.mxu1  ;;  %5049 = vmatprep.subr.bf16.mxu1 %v7517_v53  ;;  %v7533_v53 = vld [vmem:[%s7959_s30 + $0xeb0] ss:$60 sps:$4 sm:$0xff]  }
 0x1e8   : > { %v8973_v26 = vpop.f32.mrf.mxu0 }
 0x1e9   : > { %v8975_v59 = vpop.f32.mrf.mxu1  ;;  %5105 = vmatpush1.bf16.msra.mxu0 %v7518_v56  ;;  %v7541_v56 = vld [vmem:[%s7959_s30 + $0xe3c] ss:$60 sps:$4 sm:$0xff]  }
 0x1ea   : > { %5050 = vmatpush2.bf16.msra.mxu1 %v7515_v28  ;;  %v8979_v55 = vpop.f32.mrf.mxu0  ;;  %5106 = vmatprep.subr.bf16.mxu0 %v7526_v39 }
 0x1eb   : > { %v8981_v1 = vpop.f32.mrf.mxu1  ;;  %5051 = vmatprep.subr.bf16.mxu1 %v7523_v7  ;;  %v7544_v7 = vld [vmem:[%s7959_s30 + $0x11fc] ss:$60 sps:$4 sm:$0xff]  }
 0x1ec   : > { %v8985_v61 = vpop.f32.mrf.mxu0  ;;  %5015 = vmatmul.mubr.bf16.gmra.mxu0 %v8992_v24 }
 0x1ed   : > { %v8987_v25 = vpop.f32.mrf.mxu1  ;;  %5107 = vmatpush1.bf16.msra.mxu0 %v7524_v41  ;;  %5126 = vmatprep.mubr.bf16.mxu0 %v8729_v20  ;;  %v4490_v20 = vadd.f32 %v8894_v38, %v8892_v11  ;;  %v4492_v41 = vadd.f32 %v8906_v27, %v8904_v4  ;;  %v4496_v4 = vadd.f32 %v8919_v51, %v8917_v49 }
 0x1ee   : > { %5052 = vmatpush2.bf16.msra.mxu1 %v7521_v63  ;;  %v8997_v13 = vpop.f32.mrf.mxu0  ;;  %5108 = vmatprep.subr.bf16.mxu0 %v7532_v12  ;;  %v7539_v12 = vld [vmem:[%s7959_s30 + $0xe38] ss:$60 sps:$4 sm:$0xff]  }
 0x1ef   : > { %v8999_v46 = vpop.f32.mrf.mxu1  ;;  %5053 = vmatprep.subr.bf16.mxu1 %v7529_v45 }
 0x1f0   : > { %v4452_v31 = vpop.f32.mrf.mxu0 }
 0x1f1   : > { %v4523_v33 = vpop.f32.mrf.mxu1  ;;  %5109 = vmatpush1.bf16.msra.mxu0 %v7530_v60  ;;  %v7545_v31 = vld [vmem:[%s7959_s30 + $0xdc0] ss:$60 sps:$4 sm:$0xff]  }
 0x1f2   : > { %5054 = vmatpush2.bf16.msra.mxu1 %v7527_v62  ;;  %v4453_v28 = vpop.f32.mrf.mxu0  ;;  %5110 = vmatprep.subr.bf16.mxu0 %v7535_v17  ;;  %v7542_v62 = vld [vmem:[%s7959_s30 + $0x11f8] ss:$60 sps:$4 sm:$0xff]   ;;  %v7547_v17 = vld [vmem:[%s7959_s30 + $0xdc4] ss:$60 sps:$4 sm:$0xff]  }
 0x1f3   : > { %5165 = vmatprep.subr.bf16.mxu1 %v7538_v15  ;;  %v4524_v39 = vpop.f32.mrf.mxu1  ;;  %v7550_v15 = vld [vmem:[%s7959_s30 + $0x1184] ss:$60 sps:$4 sm:$0xff]  }
 0x1f4   : > { %v4560_v63 = vpop.f32.mrf.mxu0  ;;  %v7548_v33 = vld [vmem:[%s7959_s30 + $0x1180] ss:$60 sps:$4 sm:$0xff]  }
 0x1f5   : > { %5056 = vmatmul.mubr.bf16.vlgmr.msra.gmra.mxu1 %v8799_v40  ;;  %v4561_v45 = vadd.f32 %v4560_v63, %v4490_v20  ;;  %5111 = vmatpush2.bf16.msra.mxu0 %v7533_v53  ;;  %v4494_v40 = vadd.f32 %v8913_v2, %v8911_v44  ;;  %v7553_v44 = vld [vmem:[%s7959_s30 + $0xd4c] ss:$60 sps:$4 sm:$0xff]   ;;  %v4506_v20 = vadd.f32 %v8950_v58, %v8948_v5 }
 0x1f6   : > { %5166 = vmatpush1.bf16.msra.mxu1 %v7536_v30  ;;  %v4562_v60 = vpop.f32.mrf.mxu0  ;;  %5112 = vmatprep.subr.bf16.mxu0 %v7541_v56  ;;  %v7556_v2 = vld [vmem:[%s7959_s30 + $0x110c] ss:$60 sps:$4 sm:$0xff]   ;;  %v4502_v30 = vadd.f32 %v8937_v52, %v8935_v6 }
 0x1f7   : > { %5167 = vmatprep.subr.bf16.mxu1 %v7544_v7  ;;  %5645 = vst [vmem:[%s8575_s24 + $0x20] sm:$0xff] %v4561_v45  ;;  %v4563_v11 = vadd.f32 %v4562_v60, %v4492_v41  ;;  %5065 = vmatprep.mubr.bf16.mxu1 %v8813_v16  ;;  %v4500_v16 = vadd.f32 %v8925_v9, %v8923_v3  ;;  %v7551_v56 = vld [vmem:[%s7959_s30 + $0xd48] ss:$60 sps:$4 sm:$0xff]   ;;  %v7559_v3 = vld [vmem:[%s7959_s30 + $0xcd4] ss:$60 sps:$4 sm:$0xff]  }
 0x1f8   : > { %v4564_v38 = vpop.f32.mrf.mxu0  ;;  %v7554_v7 = vld [vmem:[%s7959_s30 + $0x1108] ss:$60 sps:$4 sm:$0xff]   ;;  %v7562_v9 = vld [vmem:[%s7959_s30 + $0x1094] ss:$60 sps:$4 sm:$0xff]  }
 0x1f9   : > { %5646 = vst [vmem:[%s8575_s24 + $0x28] sm:$0xff] %v4563_v11  ;;  %v4565_v27 = vadd.f32 %v4564_v38, %v4494_v40  ;;  %5113 = vmatpush2.bf16.msra.mxu0 %v7539_v12  ;;  %v7557_v41 = vld [vmem:[%s7959_s30 + $0xcd0] ss:$60 sps:$4 sm:$0xff]   ;;  %v4516_v11 = vadd.f32 %v8981_v1, %v8979_v55 }
 0x1fa   : > { %5168 = vmatpush1.bf16.msra.mxu1 %v7542_v62  ;;  %v4566_v53 = vpop.f32.mrf.mxu0  ;;  %5114 = vmatprep.subr.bf16.mxu0 %v7547_v17  ;;  %v7560_v45 = vld [vmem:[%s7959_s30 + $0x1090] ss:$60 sps:$4 sm:$0xff]   ;;  %v4512_v62 = vadd.f32 %v8968_v0, %v8966_v48  ;;  %v7563_v17 = vld [vmem:[%s7959_s30 + $0xc58] ss:$60 sps:$4 sm:$0xff]  }
 0x1fb   : > { %5169 = vmatprep.subr.bf16.mxu1 %v7550_v15  ;;  %5660 = vst [vmem:[%s8575_s24 + $0x98] sm:$0xff] %v4565_v27  ;;  %v4567_v49 = vadd.f32 %v4566_v53, %v4496_v4  ;;  %v7566_v15 = vld [vmem:[%s7959_s30 + $0x1018] ss:$60 sps:$4 sm:$0xff]   ;;  %v7569_v4 = vld [vmem:[%s7959_s30 + $0xbe0] ss:$60 sps:$4 sm:$0xff]   ;;  %v4522_v53 = vadd.f32 %v8999_v46, %v8997_v13 }
 0x1fc   : > { %v4570_v51 = vpop.f32.mrf.mxu0  ;;  %v7572_v27 = vld [vmem:[%s7959_s30 + $0xfa0] ss:$60 sps:$4 sm:$0xff]   ;;  %v7581_v46 = vld [vmem:[%s7959_s30 + $0x378] ss:$60 sps:$4 sm:$0xff]  }
 0x1fd   : > { %5066 = vmatmul.mubr.bf16.gmra.mxu1 %v8831_v47  ;;  %5661 = vst [vmem:[%s8575_s24 + $0xa0] sm:$0xff] %v4567_v49  ;;  %v4571_v28 = vadd.f32 %v4570_v51, %v4500_v16  ;;  %5115 = vmatpush2.bf16.msra.mxu0 %v7545_v31  ;;  %v4504_v47 = vadd.f32 %v8944_v14, %v8942_v10  ;;  %v7565_v10 = vld [vmem:[%s7959_s30 + $0xc5c] ss:$60 sps:$4 sm:$0xff]   ;;  %v7578_v16 = vld [vmem:[%s7959_s30 + $0xf28] ss:$60 sps:$4 sm:$0xff]  }
 0x1fe   : > { %5170 = vmatpush1.bf16.msra.mxu1 %v7548_v33  ;;  %v4572_v39 = vpop.f32.mrf.mxu0  ;;  %5116 = vmatprep.subr.bf16.mxu0 %v7553_v44  ;;  %v7568_v14 = vld [vmem:[%s7959_s30 + $0x101c] ss:$60 sps:$4 sm:$0xff]   ;;  %v4520_v33 = vadd.f32 %v8987_v25, %v8985_v61 }
 0x1ff   : > { %5171 = vmatprep.subr.bf16.mxu1 %v7556_v2  ;;  %5675 = vst [vmem:[%s8575_s24 + $0x110] sm:$0xff] %v4571_v28  ;;  %v4573_v6 = vadd.f32 %v4572_v39, %v4502_v30  ;;  %5075 = vmatprep.mubr.bf16.mxu1 %v8845_v21  ;;  %v4510_v21 = vadd.f32 %v8956_v23, %v8954_v35  ;;  %v7571_v35 = vld [vmem:[%s7959_s30 + $0xbe4] ss:$60 sps:$4 sm:$0xff]   ;;  %v7583_v25 = vld [vmem:[%s7959_s30 + $0x37c] ss:$60 sps:$4 sm:$0xff]  }
 0x200   : > { %v4574_v52 = vpop.f32.mrf.mxu0  ;;  %v7574_v23 = vld [vmem:[%s7959_s30 + $0xfa4] ss:$60 sps:$4 sm:$0xff]   ;;  %v7586_v49 = vld [vmem:[%s7959_s30 + $0xafc] ss:$60 sps:$4 sm:$0xff]  }
 0x201   : > { %5676 = vst [vmem:[%s8575_s24 + $0x118] sm:$0xff] %v4573_v6  ;;  %v4575_v63 = vadd.f32 %v4574_v52, %v4504_v47  ;;  %5117 = vmatpush2.bf16.msra.mxu0 %v7551_v56  ;;  %v7575_v2 = vld [vmem:[%s7959_s30 + $0xb68] ss:$60 sps:$4 sm:$0xff]   ;;  %v7584_v30 = vld [vmem:[%s7959_s30 + $0xaf8] ss:$60 sps:$4 sm:$0xff]  }
 0x202   : > { %5172 = vmatpush1.bf16.msra.mxu1 %v7554_v7  ;;  %v4576_v12 = vpop.f32.mrf.mxu0  ;;  %5118 = vmatprep.subr.bf16.mxu0 %v7559_v3  ;;  %v7589_v28 = vld [vmem:[%s7959_s30 + $0x304] ss:$60 sps:$4 sm:$0xff]   ;;  %v7595_v6 = vld [vmem:[%s7959_s30 + $0x28c] ss:$60 sps:$4 sm:$0xff]  }
 0x203   : > { %5173 = vmatprep.subr.bf16.mxu1 %v7562_v9  ;;  %5690 = vst [vmem:[%s8575_s24 + $0x188] sm:$0xff] %v4575_v63  ;;  %v4577_v5 = vadd.f32 %v4576_v12, %v4506_v20  ;;  %v7592_v56 = vld [vmem:[%s7959_s30 + $0xa84] ss:$60 sps:$4 sm:$0xff]   ;;  %v7598_v52 = vld [vmem:[%s7959_s30 + $0xa0c] ss:$60 sps:$4 sm:$0xff]  }
 0x204   : > { %v4580_v58 = vpop.f32.mrf.mxu0  ;;  %v7587_v3 = vld [vmem:[%s7959_s30 + $0x300] ss:$60 sps:$4 sm:$0xff]   ;;  %v7596_v20 = vld [vmem:[%s7959_s30 + $0xa08] ss:$60 sps:$4 sm:$0xff]   ;;  %v7599_v12 = vld [vmem:[%s7959_s30 + $0x210] ss:$60 sps:$4 sm:$0xff]  }
 0x205   : > { %5076 = vmatmul.mubr.bf16.gmra.mxu1 %v8861_v22  ;;  %5691 = vst [vmem:[%s8575_s24 + $0x190] sm:$0xff] %v4577_v5  ;;  %v4581_v60 = vadd.f32 %v4580_v58, %v4510_v21  ;;  %5119 = vmatpush2.bf16.msra.mxu0 %v7557_v41  ;;  %v4514_v22 = vadd.f32 %v8975_v59, %v8973_v26  ;;  %v7577_v26 = vld [vmem:[%s7959_s30 + $0xb6c] ss:$60 sps:$4 sm:$0xff]   ;;  %v7590_v9 = vld [vmem:[%s7959_s30 + $0xa80] ss:$60 sps:$4 sm:$0xff]  }
 0x206   : > { %5174 = vmatpush1.bf16.msra.mxu1 %v7560_v45  ;;  %v4582_v40 = vpop.f32.mrf.mxu0  ;;  %5120 = vmatprep.subr.bf16.mxu0 %v7565_v10  ;;  %v7580_v59 = vld [vmem:[%s7959_s30 + $0xf2c] ss:$60 sps:$4 sm:$0xff]   ;;  %v7601_v41 = vld [vmem:[%s7959_s30 + $0x214] ss:$60 sps:$4 sm:$0xff]   ;;  %v7607_v21 = vld [vmem:[%s7959_s30 + $0x19c] ss:$60 sps:$4 sm:$0xff]  }
 0x207   : > { %5175 = vmatprep.subr.bf16.mxu1 %v7568_v14  ;;  %5705 = vst [vmem:[%s8575_s24 + $0x200] sm:$0xff] %v4581_v60  ;;  %v4583_v48 = vadd.f32 %v4582_v40, %v4512_v62  ;;  %5085 = vmatprep.mubr.bf16.mxu1 %v8127_v36  ;;  %v7604_v45 = vld [vmem:[%s7959_s30 + $0x994] ss:$60 sps:$4 sm:$0xff]   ;;  %v7610_v5 = vld [vmem:[%s7959_s30 + $0x91c] ss:$60 sps:$4 sm:$0xff]  }
 0x208   : > { %v4584_v0 = vpop.f32.mrf.mxu0  ;;  %v7602_v10 = vld [vmem:[%s7959_s30 + $0x990] ss:$60 sps:$4 sm:$0xff]   ;;  %v7608_v58 = vld [vmem:[%s7959_s30 + $0x918] ss:$60 sps:$4 sm:$0xff]   ;;  %v7613_v60 = vld [vmem:[%s7959_s30 + $0x124] ss:$60 sps:$4 sm:$0xff]  }
 0x209   : > { %5706 = vst [vmem:[%s8575_s24 + $0x208] sm:$0xff] %v4583_v48  ;;  %v4585_v38 = vadd.f32 %v4584_v0, %v4514_v22  ;;  %5121 = vmatpush2.bf16.msra.mxu0 %v7563_v17  ;;  %v7616_v17 = vld [vmem:[%s7959_s30 + $0x8a4] ss:$60 sps:$4 sm:$0xff]   ;;  %v7622_v22 = vld [vmem:[%s7959_s30 + $0x82c] ss:$60 sps:$4 sm:$0xff]  }
 0x20a   : > { %5176 = vmatpush1.bf16.msra.mxu1 %v7566_v15  ;;  %v4586_v31 = vpop.f32.mrf.mxu0  ;;  %5122 = vmatprep.subr.bf16.mxu0 %v7571_v35  ;;  %v7611_v15 = vld [vmem:[%s7959_s30 + $0x120] ss:$60 sps:$4 sm:$0xff]   ;;  %v7620_v48 = vld [vmem:[%s7959_s30 + $0x828] ss:$60 sps:$4 sm:$0xff]  }
 0x20b   : > { %5177 = vmatprep.subr.bf16.mxu1 %v7574_v23  ;;  %5720 = vst [vmem:[%s8575_s24 + $0x278] sm:$0xff] %v4585_v38  ;;  %v4587_v55 = vadd.f32 %v4586_v31, %v4516_v11  ;;  %v7614_v40 = vld [vmem:[%s7959_s30 + $0x8a0] ss:$60 sps:$4 sm:$0xff]   ;;  %v7619_v23 = vld [vmem:[%s7959_s30 + $0xac] ss:$60 sps:$4 sm:$0xff]  }
 0x20c   : > { %v4590_v1 = vpop.f32.mrf.mxu0  ;;  %v7625_v11 = vld [vmem:[%s7959_s30 + $0x34] ss:$60 sps:$4 sm:$0xff]  }
 0x20d   : > { %5086 = vmatmul.mubr.bf16.gmra.mxu1 %v8139_v42  ;;  %5721 = vst [vmem:[%s8575_s24 + $0x280] sm:$0xff] %v4587_v55  ;;  %v4591_v44 = vadd.f32 %v4590_v1, %v4520_v33  ;;  %5123 = vmatpush2.bf16.msra.mxu0 %v7569_v4  ;;  %v7628_v38 = vld [vmem:[%s7959_s30 + $0x7b4] ss:$60 sps:$4 sm:$0xff]   ;;  %v7634_v33 = vld [vmem:[%s7959_s30 + $0xebc] ss:$60 sps:$4 sm:$0xff]  }
 0x20e   : > { %5178 = vmatpush1.bf16.msra.mxu1 %v7572_v27  ;;  %v4592_v61 = vpop.f32.mrf.mxu0  ;;  %5124 = vmatprep.subr.bf16.mxu0 %v7577_v26  ;;  %v7623_v27 = vld [vmem:[%s7959_s30 + $0x30] ss:$60 sps:$4 sm:$0xff]   ;;  %v9163_v55 = vld [vmem:[%s9808_s0 + $0x4] ss:$20 sps:$4 sm:$0xff]  }
 0x20f   : > { %5179 = vmatprep.subr.bf16.mxu1 %v7580_v59  ;;  %5735 = vst [vmem:[%s8575_s24 + $0x2f0] sm:$0x1] %v4591_v44  ;;  %v4593_v51 = vadd.f32 %v4592_v61, %v4522_v53  ;;  %5197 = vmatprep.mubr.bf16.mxu1 %v7857_v54  ;;  %v7626_v31 = vld [vmem:[%s7959_s30 + $0x7b0] ss:$60 sps:$4 sm:$0xff]   ;;  %v7631_v59 = vld [vmem:[%s7959_s30 + $0x73c] ss:$60 sps:$4 sm:$0xff]  }
 0x210   : > { %v4594_v13 = vpop.f32.mrf.mxu0  ;;  %v7629_v53 = vld [vmem:[%s7959_s30 + $0x738] ss:$60 sps:$4 sm:$0xff]   ;;  %v7640_v61 = vld [vmem:[%s7959_s30 + $0xe44] ss:$60 sps:$4 sm:$0xff]  }
 0x211   : > { %5736 = vst [vmem:[%s8575_s24 + $0x2f8] sm:$0x1] %v4593_v51  ;;  %5125 = vmatpush2.bf16.msra.mxu0 %v7575_v2  ;;  %v7632_v44 = vld [vmem:[%s7959_s30 + $0xeb8] ss:$60 sps:$4 sm:$0xff]   ;;  %v7635_v13 = vld [vmem:[%s7959_s30 + $0x6c0] ss:$60 sps:$4 sm:$0xff]  }
 0x212   : > { %5180 = vmatpush1.bf16.msra.mxu1 %v7578_v16  ;;  %5236 = vmatprep.subr.bf16.mxu0 %v7583_v25  ;;  %v4595_v7 = vpop.f32.mrf.mxu0  ;;  %v7637_v16 = vld [vmem:[%s7959_s30 + $0x6c4] ss:$60 sps:$4 sm:$0xff]  }
 0x213   : > { %5307 = vmatprep.subr.bf16.mxu1 %v7586_v49  ;;  %v7646_v7 = vld [vmem:[%s7959_s30 + $0xdcc] ss:$60 sps:$4 sm:$0xff]  }
 0x214   : > { %5127 = vmatmul.mubr.bf16.vlgmr.msra.gmra.mxu0 %v8805_v8 }
 0x215   : > { %5198 = vmatmul.mubr.bf16.vlgmr.msra.gmra.mxu1 %v8899_v57  ;;  %v9092_v39 = vpop.f32.mrf.mxu1  ;;  %5237 = vmatpush1.bf16.msra.mxu0 %v7581_v46  ;;  %v7593_v57 = vld [vmem:[%s7959_s30 + $0x288] ss:$60 sps:$4 sm:$0xff]   ;;  %v7638_v46 = vld [vmem:[%s7959_s30 + $0xe40] ss:$60 sps:$4 sm:$0xff]  }
 0x216   : > { %5308 = vmatpush1.bf16.msra.mxu1 %v7584_v30  ;;  %5238 = vmatprep.subr.bf16.mxu0 %v7589_v28 }
 0x217   : > { %v9096_v47 = vpop.f32.mrf.mxu1  ;;  %5309 = vmatprep.subr.bf16.mxu1 %v7592_v56  ;;  %5136 = vmatprep.mubr.bf16.mxu0 %v8819_v18  ;;  %v7643_v56 = vld [vmem:[%s7959_s30 + $0x64c] ss:$60 sps:$4 sm:$0xff]  }
 0x218   : > { %5207 = vmatprep.mubr.bf16.mxu1 %v7857_v54 }
 0x219   : > { %v9102_v8 = vpop.f32.mrf.mxu1  ;;  %5239 = vmatpush1.bf16.msra.mxu0 %v7587_v3 }
 0x21a   : > { %5310 = vmatpush1.bf16.msra.mxu1 %v7590_v9  ;;  %5240 = vmatprep.subr.bf16.mxu0 %v7595_v6 }
 0x21b   : > { %v9106_v63 = vpop.f32.mrf.mxu1  ;;  %5311 = vmatprep.subr.bf16.mxu1 %v7598_v52 }
 0x21c   : > { %5137 = vmatmul.mubr.bf16.gmra.mxu0 %v8837_v19 }
 0x21d   : > { %v9111_v18 = vpop.f32.mrf.mxu1  ;;  %5208 = vmatmul.mubr.bf16.gmra.mxu1 %v8930_v50  ;;  %5241 = vmatpush1.bf16.msra.mxu0 %v7593_v57  ;;  %v7605_v50 = vld [vmem:[%s7959_s30 + $0x198] ss:$60 sps:$4 sm:$0xff]  }
 0x21e   : > { %5312 = vmatpush1.bf16.msra.mxu1 %v7596_v20  ;;  %5242 = vmatprep.subr.bf16.mxu0 %v7601_v41  ;;  %v7641_v20 = vld [vmem:[%s7959_s30 + $0x648] ss:$60 sps:$4 sm:$0xff]  }
 0x21f   : > { %v9116_v14 = vpop.f32.mrf.mxu1  ;;  %5313 = vmatprep.subr.bf16.mxu1 %v7604_v45  ;;  %5146 = vmatprep.mubr.bf16.mxu0 %v8851_v32  ;;  %v7644_v41 = vld [vmem:[%s7959_s30 + $0xdc8] ss:$60 sps:$4 sm:$0xff]  }
 0x220   : > { %5217 = vmatprep.mubr.bf16.mxu1 %v7857_v54 }
 0x221   : > { %v9122_v19 = vpop.f32.mrf.mxu1  ;;  %5243 = vmatpush1.bf16.msra.mxu0 %v7599_v12 }
 0x222   : > { %5314 = vmatpush1.bf16.msra.mxu1 %v7602_v10  ;;  %5244 = vmatprep.subr.bf16.mxu0 %v7607_v21  ;;  %v7652_v10 = vld [vmem:[%s7959_s30 + $0xd54] ss:$60 sps:$4 sm:$0xff]  }
 0x223   : > { %v9126_v62 = vpop.f32.mrf.mxu1  ;;  %5315 = vmatprep.subr.bf16.mxu1 %v7610_v5 }
 0x224   : > { %5147 = vmatmul.mubr.bf16.gmra.mxu0 %v8867_v29 }
 0x225   : > { %v9131_v32 = vpop.f32.mrf.mxu1  ;;  %5218 = vmatmul.mubr.bf16.gmra.mxu1 %v8961_v34  ;;  %5245 = vmatpush1.bf16.msra.mxu0 %v7605_v50  ;;  %v7617_v34 = vld [vmem:[%s7959_s30 + $0xa8] ss:$60 sps:$4 sm:$0xff]  }
 0x226   : > { %5316 = vmatpush1.bf16.msra.mxu1 %v7608_v58  ;;  %5246 = vmatprep.subr.bf16.mxu0 %v7613_v60 }
 0x227   : > { %v9136_v35 = vpop.f32.mrf.mxu1  ;;  %5317 = vmatprep.subr.bf16.mxu1 %v7616_v17  ;;  %5156 = vmatprep.mubr.bf16.mxu0 %v8129_v37  ;;  %v7647_v17 = vld [vmem:[%s7959_s30 + $0x5d0] ss:$60 sps:$4 sm:$0xff]  }
 0x228   : > { %5227 = vmatprep.mubr.bf16.mxu1 %v7857_v54 }
 0x229   : > { %v9142_v29 = vpop.f32.mrf.mxu1  ;;  %5247 = vmatpush1.bf16.msra.mxu0 %v7611_v15  ;;  %v7650_v15 = vld [vmem:[%s7959_s30 + $0xd50] ss:$60 sps:$4 sm:$0xff]  }
 0x22a   : > { %5318 = vmatpush1.bf16.msra.mxu1 %v7614_v40  ;;  %5248 = vmatprep.subr.bf16.mxu0 %v7619_v23 }
 0x22b   : > { %v9146_v0 = vpop.f32.mrf.mxu1  ;;  %5319 = vmatprep.subr.bf16.mxu1 %v7622_v22  ;;  %v7658_v22 = vld [vmem:[%s7959_s30 + $0xcdc] ss:$60 sps:$4 sm:$0xff]  }
 0x22c   : > { %5157 = vmatmul.mubr.bf16.gmra.mxu0 %v8141_v43 }
 0x22d   : > { %v9151_v4 = vpop.f32.mrf.mxu1  ;;  %5228 = vmatmul.mubr.bf16.gmra.mxu1 %v8992_v24  ;;  %5249 = vmatpush1.bf16.msra.mxu0 %v7617_v34  ;;  %v9169_v24 = vld [vmem:[%s9808_s0 + $0xc] ss:$20 sps:$4 sm:$0xff]  }
 0x22e   : > { %5320 = vmatpush1.bf16.msra.mxu1 %v7620_v48  ;;  %5250 = vmatprep.subr.bf16.mxu0 %v7625_v11 }
 0x22f   : > { %v9156_v26 = vpop.f32.mrf.mxu1  ;;  %5321 = vmatprep.subr.bf16.mxu1 %v7628_v38  ;;  %5268 = vmatprep.mubr.bf16.mxu0 %v9163_v55 }
 0x230   : > { %5339 = vmatprep.mubr.bf16.mxu1 %v9169_v24 }
 0x231   : > { %v4665_v1 = vpop.f32.mrf.mxu1  ;;  %5251 = vmatpush1.bf16.msra.mxu0 %v7623_v27 }
 0x232   : > { %5322 = vmatpush1.bf16.msra.mxu1 %v7626_v31  ;;  %5252 = vmatprep.subr.bf16.mxu0 %v7631_v59  ;;  %v7653_v31 = vld [vmem:[%s7959_s30 + $0x558] ss:$60 sps:$4 sm:$0xff]  }
 0x233   : > { %v4666_v2 = vpop.f32.mrf.mxu1  ;;  %5323 = vmatprep.subr.bf16.mxu1 %v7634_v33  ;;  %v7656_v59 = vld [vmem:[%s7959_s30 + $0xcd8] ss:$60 sps:$4 sm:$0xff]  }
 0x234   : > { %v4702_v25 = vpop.f32.mrf.mxu0 }
 0x235   : > { %v4773_v49 = vpop.f32.mrf.mxu1  ;;  %v4703_v51 = vadd.f32 %v4702_v25, %v9092_v39  ;;  %5253 = vmatpush2.bf16.msra.mxu0 %v7629_v53  ;;  %v7664_v53 = vld [vmem:[%s7959_s30 + $0xc64] ss:$60 sps:$4 sm:$0xff]  }
 0x236   : > { %5324 = vmatpush2.bf16.msra.mxu1 %v7632_v44  ;;  %v4704_v30 = vpop.f32.mrf.mxu0  ;;  %5254 = vmatprep.subr.bf16.mxu0 %v7637_v16 }
 0x237   : > { %v4775_v28 = vpop.f32.mrf.mxu1  ;;  %5325 = vmatprep.subr.bf16.mxu1 %v7640_v61  ;;  %v4705_v3 = vadd.f32 %v4704_v30, %v9096_v47  ;;  %v4774_v9 = vadd.f32 %v4773_v49, %v4703_v51  ;;  %v7649_v47 = vld [vmem:[%s7959_s30 + $0x5d4] ss:$60 sps:$4 sm:$0xff]   ;;  %v7659_v49 = vld [vmem:[%s7959_s30 + $0x4e0] ss:$60 sps:$4 sm:$0xff]   ;;  %v7670_v30 = vld [vmem:[%s7959_s30 + $0xbec] ss:$60 sps:$4 sm:$0xff]  }
 0x238   : > { %v4706_v6 = vpop.f32.mrf.mxu0  ;;  %v7662_v51 = vld [vmem:[%s7959_s30 + $0xc60] ss:$60 sps:$4 sm:$0xff]  }
 0x239   : > { %v4777_v39 = vpop.f32.mrf.mxu1  ;;  %5647 = vst [vmem:[%s8575_s24 + $0x30] sm:$0xff] %v4774_v9  ;;  %v4707_v52 = vadd.f32 %v4706_v6, %v9102_v8  ;;  %v4776_v57 = vadd.f32 %v4775_v28, %v4705_v3  ;;  %5255 = vmatpush2.bf16.msra.mxu0 %v7635_v13  ;;  %v7665_v6 = vld [vmem:[%s7959_s30 + $0x468] ss:$60 sps:$4 sm:$0xff]  }
 0x23a   : > { %5326 = vmatpush2.bf16.msra.mxu1 %v7638_v46  ;;  %v4708_v45 = vpop.f32.mrf.mxu0  ;;  %5256 = vmatprep.subr.bf16.mxu0 %v7643_v56 }
 0x23b   : > { %v4779_v12 = vpop.f32.mrf.mxu1  ;;  %5327 = vmatprep.subr.bf16.mxu1 %v7646_v7  ;;  %5648 = vst [vmem:[%s8575_s24 + $0x38] sm:$0xff] %v4776_v57  ;;  %v4709_v21 = vadd.f32 %v4708_v45, %v9106_v63  ;;  %v4778_v8 = vadd.f32 %v4777_v39, %v4707_v52  ;;  %v7655_v63 = vld [vmem:[%s7959_s30 + $0x55c] ss:$60 sps:$4 sm:$0xff]   ;;  %v7668_v39 = vld [vmem:[%s7959_s30 + $0xbe8] ss:$60 sps:$4 sm:$0xff]  }
 0x23c   : > { %v4712_v5 = vpop.f32.mrf.mxu0 }
 0x23d   : > { %v4783_v50 = vpop.f32.mrf.mxu1  ;;  %5662 = vst [vmem:[%s8575_s24 + $0xa8] sm:$0xff] %v4778_v8  ;;  %v4713_v58 = vadd.f32 %v4712_v5, %v9111_v18  ;;  %v4780_v60 = vadd.f32 %v4779_v12, %v4709_v21  ;;  %5257 = vmatpush2.bf16.msra.mxu0 %v7641_v20  ;;  %v7676_v20 = vld [vmem:[%s7959_s30 + $0xb74] ss:$60 sps:$4 sm:$0xff]  }
 0x23e   : > { %5328 = vmatpush2.bf16.msra.mxu1 %v7644_v41  ;;  %v4714_v40 = vpop.f32.mrf.mxu0  ;;  %5258 = vmatprep.subr.bf16.mxu0 %v7649_v47  ;;  %v7671_v21 = vld [vmem:[%s7959_s30 + $0x3f0] ss:$60 sps:$4 sm:$0xff]  }
 0x23f   : > { %v4785_v23 = vpop.f32.mrf.mxu1  ;;  %5329 = vmatprep.subr.bf16.mxu1 %v7652_v10  ;;  %5663 = vst [vmem:[%s8575_s24 + $0xb0] sm:$0xff] %v4780_v60  ;;  %v4715_v34 = vadd.f32 %v4714_v40, %v9116_v14  ;;  %v4784_v18 = vadd.f32 %v4783_v50, %v4713_v58  ;;  %v7661_v14 = vld [vmem:[%s7959_s30 + $0x4e4] ss:$60 sps:$4 sm:$0xff]   ;;  %v7674_v8 = vld [vmem:[%s7959_s30 + $0xb70] ss:$60 sps:$4 sm:$0xff]  }
 0x240   : > { %v4716_v48 = vpop.f32.mrf.mxu0  ;;  %v7683_v58 = vld [vmem:[%s7959_s30 + $0x740] ss:$60 sps:$4 sm:$0xff]  }
 0x241   : > { %v4787_v11 = vpop.f32.mrf.mxu1  ;;  %5677 = vst [vmem:[%s8575_s24 + $0x120] sm:$0xff] %v4784_v18  ;;  %v4717_v38 = vadd.f32 %v4716_v48, %v9122_v19  ;;  %v4786_v27 = vadd.f32 %v4785_v23, %v4715_v34  ;;  %5259 = vmatpush2.bf16.msra.mxu0 %v7647_v17  ;;  %v7677_v23 = vld [vmem:[%s7959_s30 + $0x1278] ss:$60 sps:$4 sm:$0xff]  }
 0x242   : > { %5330 = vmatpush2.bf16.msra.mxu1 %v7650_v15  ;;  %v4718_v33 = vpop.f32.mrf.mxu0  ;;  %5260 = vmatprep.subr.bf16.mxu0 %v7655_v63  ;;  %v7684_v63 = vld [vmem:[%s7959_s30 + $0x380] ss:$60 sps:$4 sm:$0xff]  }
 0x243   : > { %v4789_v1 = vpop.f32.mrf.mxu1  ;;  %5331 = vmatprep.subr.bf16.mxu1 %v7658_v22  ;;  %5678 = vst [vmem:[%s8575_s24 + $0x128] sm:$0xff] %v4786_v27  ;;  %v4719_v44 = vadd.f32 %v4718_v33, %v9126_v62  ;;  %v4788_v19 = vadd.f32 %v4787_v11, %v4717_v38  ;;  %v7667_v62 = vld [vmem:[%s7959_s30 + $0x46c] ss:$60 sps:$4 sm:$0xff]   ;;  %v7682_v22 = vld [vmem:[%s7959_s30 + $0x1204] ss:$60 sps:$4 sm:$0xff]  }
 0x244   : > { %v4722_v2 = vpop.f32.mrf.mxu0  ;;  %v9239_v48 = vld [vmem:[%s9808_s0] ss:$20 sps:$4 sm:$0xff]   ;;  %v9245_v11 = vld [vmem:[%s9808_s0 + $0x8] ss:$20 sps:$4 sm:$0xff]   ;;  %v7693_v33 = vld [vmem:[%s7959_s30 + $0x650] ss:$60 sps:$4 sm:$0xff]  }
 0x245   : > { %v4793_v16 = vpop.f32.mrf.mxu1  ;;  %5692 = vst [vmem:[%s8575_s24 + $0x198] sm:$0xff] %v4788_v19  ;;  %v4723_v61 = vadd.f32 %v4722_v2, %v9131_v32  ;;  %v4790_v25 = vadd.f32 %v4789_v1, %v4719_v44  ;;  %5261 = vmatpush2.bf16.msra.mxu0 %v7653_v31  ;;  %v7680_v38 = vld [vmem:[%s7959_s30 + $0x1200] ss:$60 sps:$4 sm:$0xff]   ;;  %v7689_v27 = vld [vmem:[%s7959_s30 + $0x308] ss:$60 sps:$4 sm:$0xff]  }
 0x246   : > { %5332 = vmatpush2.bf16.msra.mxu1 %v7656_v59  ;;  %v4724_v13 = vpop.f32.mrf.mxu0  ;;  %5262 = vmatprep.subr.bf16.mxu0 %v7661_v14  ;;  %v9253_v31 = vld [vmem:[%s9808_s0 + $0x2c] ss:$20 sps:$4 sm:$0xff]   ;;  %v9261_v1 = vld [vmem:[%s9808_s0 + $0x34] ss:$20 sps:$4 sm:$0xff]  }
 0x247   : > { %v4795_v46 = vpop.f32.mrf.mxu1  ;;  %5333 = vmatprep.subr.bf16.mxu1 %v7664_v53  ;;  %5693 = vst [vmem:[%s8575_s24 + $0x1a0] sm:$0xff] %v4790_v25  ;;  %v4725_v28 = vadd.f32 %v4724_v13, %v9136_v35  ;;  %v4794_v32 = vadd.f32 %v4793_v16, %v4723_v61  ;;  %v7673_v35 = vld [vmem:[%s7959_s30 + $0x3f4] ss:$60 sps:$4 sm:$0xff]   ;;  %v7687_v59 = vld [vmem:[%s7959_s30 + $0x118c] ss:$60 sps:$4 sm:$0xff]  }
 0x248   : > { %v4726_v56 = vpop.f32.mrf.mxu0  ;;  %v7685_v14 = vld [vmem:[%s7959_s30 + $0x1188] ss:$60 sps:$4 sm:$0xff]   ;;  %v7694_v53 = vld [vmem:[%s7959_s30 + $0x290] ss:$60 sps:$4 sm:$0xff]   ;;  %v7698_v19 = vld [vmem:[%s7959_s30 + $0x5d8] ss:$60 sps:$4 sm:$0xff]  }
 0x249   : > { %v4797_v7 = vpop.f32.mrf.mxu1  ;;  %5707 = vst [vmem:[%s8575_s24 + $0x210] sm:$0xff] %v4794_v32  ;;  %v4727_v3 = vadd.f32 %v4726_v56, %v9142_v29  ;;  %v4796_v9 = vadd.f32 %v4795_v46, %v4725_v28  ;;  %5263 = vmatpush2.bf16.msra.mxu0 %v7659_v49  ;;  %v7692_v44 = vld [vmem:[%s7959_s30 + $0x1114] ss:$60 sps:$4 sm:$0xff]   ;;  %v9271_v2 = vld [vmem:[%s9808_s0 + $0x28] ss:$20 sps:$4 sm:$0xff]  }
 0x24a   : > { %5334 = vmatpush2.bf16.msra.mxu1 %v7662_v51  ;;  %v4728_v52 = vpop.f32.mrf.mxu0  ;;  %5264 = vmatprep.subr.bf16.mxu0 %v7667_v62  ;;  %v9277_v16 = vld [vmem:[%s9808_s0 + $0x30] ss:$20 sps:$4 sm:$0xff]   ;;  %v7699_v25 = vld [vmem:[%s7959_s30 + $0x218] ss:$60 sps:$4 sm:$0xff]   ;;  %v7703_v13 = vld [vmem:[%s7959_s30 + $0x560] ss:$60 sps:$4 sm:$0xff]  }
 0x24b   : > { %v4799_v57 = vpop.f32.mrf.mxu1  ;;  %5335 = vmatprep.subr.bf16.mxu1 %v7670_v30  ;;  %5708 = vst [vmem:[%s8575_s24 + $0x218] sm:$0xff] %v4796_v9  ;;  %v4729_v41 = vadd.f32 %v4728_v52, %v9146_v0  ;;  %v4798_v29 = vadd.f32 %v4797_v7, %v4727_v3  ;;  %v7679_v0 = vld [vmem:[%s7959_s30 + $0x127c] ss:$60 sps:$4 sm:$0xff]   ;;  %v7690_v61 = vld [vmem:[%s7959_s30 + $0x1110] ss:$60 sps:$4 sm:$0xff]  }
 0x24c   : > { %v4732_v45 = vpop.f32.mrf.mxu0  ;;  %v9285_v49 = vld [vmem:[%s9808_s0 + $0x54] ss:$20 sps:$4 sm:$0xff]   ;;  %v7697_v51 = vld [vmem:[%s7959_s30 + $0x109c] ss:$60 sps:$4 sm:$0xff]   ;;  %v7702_v28 = vld [vmem:[%s7959_s30 + $0x1024] ss:$60 sps:$4 sm:$0xff]  }
 0x24d   : > { %v4803_v12 = vpop.f32.mrf.mxu1  ;;  %5722 = vst [vmem:[%s8575_s24 + $0x288] sm:$0xff] %v4798_v29  ;;  %v4733_v47 = vadd.f32 %v4732_v45, %v9151_v4  ;;  %v4800_v10 = vadd.f32 %v4799_v57, %v4729_v41  ;;  %5265 = vmatpush2.bf16.msra.mxu0 %v7665_v6  ;;  %v9293_v46 = vld [vmem:[%s9808_s0 + $0x5c] ss:$20 sps:$4 sm:$0xff]   ;;  %v7695_v62 = vld [vmem:[%s7959_s30 + $0x1098] ss:$60 sps:$4 sm:$0xff]  }
 0x24e   : > { %5336 = vmatpush2.bf16.msra.mxu1 %v7668_v39  ;;  %v4734_v5 = vpop.f32.mrf.mxu0  ;;  %5266 = vmatprep.subr.bf16.mxu0 %v7673_v35  ;;  %v7704_v30 = vld [vmem:[%s7959_s30 + $0x1a0] ss:$60 sps:$4 sm:$0xff]   ;;  %v7708_v32 = vld [vmem:[%s7959_s30 + $0x4e8] ss:$60 sps:$4 sm:$0xff]   ;;  %v9309_v7 = vld [vmem:[%s9808_s0 + $0x58] ss:$20 sps:$4 sm:$0xff]  }
 0x24f   : > { %v4805_v50 = vpop.f32.mrf.mxu1  ;;  %5337 = vmatprep.subr.bf16.mxu1 %v7676_v20  ;;  %5723 = vst [vmem:[%s8575_s24 + $0x290] sm:$0xff] %v4800_v10  ;;  %v4735_v60 = vadd.f32 %v4734_v5, %v9156_v26  ;;  %v4804_v4 = vadd.f32 %v4803_v12, %v4733_v47  ;;  %v7688_v26 = vld [vmem:[%s7959_s30 + $0x6c8] ss:$60 sps:$4 sm:$0xff]   ;;  %v7700_v3 = vld [vmem:[%s7959_s30 + $0x1020] ss:$60 sps:$4 sm:$0xff]  }
 0x250   : > { %v4736_v17 = vpop.f32.mrf.mxu0  ;;  %v9303_v56 = vld [vmem:[%s9808_s0 + $0x50] ss:$20 sps:$4 sm:$0xff]   ;;  %v7707_v6 = vld [vmem:[%s7959_s30 + $0xfac] ss:$60 sps:$4 sm:$0xff]   ;;  %v7715_v20 = vld [vmem:[%s7959_s30 + $0x3f8] ss:$60 sps:$4 sm:$0xff]  }
 0x251   : > { %v4807_v15 = vpop.f32.mrf.mxu1  ;;  %5737 = vst [vmem:[%s8575_s24 + $0x300] sm:$0x1] %v4804_v4  ;;  %v4806_v40 = vadd.f32 %v4805_v50, %v4735_v60  ;;  %5267 = vmatpush2.bf16.msra.mxu0 %v7671_v21  ;;  %v7709_v9 = vld [vmem:[%s7959_s30 + $0x128] ss:$60 sps:$4 sm:$0xff]   ;;  %v7713_v39 = vld [vmem:[%s7959_s30 + $0x470] ss:$60 sps:$4 sm:$0xff]  }
 0x252   : > { %5338 = vmatpush2.bf16.msra.mxu1 %v7674_v8  ;;  %5378 = vmatprep.subr.bf16.mxu0 %v7679_v0  ;;  %v4737_v34 = vpop.f32.mrf.mxu0  ;;  %v7705_v52 = vld [vmem:[%s7959_s30 + $0xfa8] ss:$60 sps:$4 sm:$0xff]   ;;  %v7714_v57 = vld [vmem:[%s7959_s30 + $0xb0] ss:$60 sps:$4 sm:$0xff]   ;;  %v7717_v29 = vld [vmem:[%s7959_s30 + $0x38] ss:$60 sps:$4 sm:$0xff]  }
 0x253   : > { %6673 = vmatprep.subr.bf16.mxu1 %v7683_v58  ;;  %v4808_v18 = vpop.f32.mrf.mxu1  ;;  %5738 = vst [vmem:[%s8575_s24 + $0x308] sm:$0x1] %v4806_v40  ;;  %v7712_v35 = vld [vmem:[%s7959_s30 + $0xf34] ss:$60 sps:$4 sm:$0xff]   ;;  %v7716_v45 = vld [vmem:[%s7959_s30 + $0xec0] ss:$60 sps:$4 sm:$0xff]  }
 0x254   : > { %5269 = vmatmul.mubr.bf16.vlgmr.msra.gmra.mxu0 %v9239_v48  ;;  %v7710_v41 = vld [vmem:[%s7959_s30 + $0xf30] ss:$60 sps:$4 sm:$0xff]   ;;  %v7720_v12 = vld [vmem:[%s7959_s30 + $0x1280] ss:$60 sps:$4 sm:$0xff]   ;;  %v7719_v10 = vld [vmem:[%s7959_s30 + $0xe48] ss:$60 sps:$4 sm:$0xff]  }
 0x255   : > { %5340 = vmatmul.mubr.bf16.vlgmr.msra.gmra.mxu1 %v9245_v11  ;;  %5379 = vmatpush1.bf16.msra.mxu0 %v7677_v23  ;;  %v7718_v47 = vld [vmem:[%s7959_s30 + $0xb00] ss:$60 sps:$4 sm:$0xff]   ;;  %v7723_v21 = vld [vmem:[%s7959_s30 + $0x1208] ss:$60 sps:$4 sm:$0xff]   ;;  %v7722_v60 = vld [vmem:[%s7959_s30 + $0xdd0] ss:$60 sps:$4 sm:$0xff]  }
 0x256   : > { %6674 = vmatpush3.bf16.msra.mxu1 %v7684_v63  ;;  %5380 = vmatprep.subr.bf16.mxu0 %v7682_v22  ;;  %v9340_v50 = vld [vmem:[%s9808_s0 + $0x10] ss:$20 sps:$4 sm:$0xff]   ;;  %v7725_v22 = vld [vmem:[%s7959_s30 + $0xd58] ss:$60 sps:$4 sm:$0xff]  }
 0x257   : > { %5278 = vmatprep.mubr.bf16.mxu0 %v9253_v31  ;;  %5349 = vmatprep.mubr.bf16.mxu1 %v9261_v1  ;;  %v7726_v4 = vld [vmem:[%s7959_s30 + $0x1190] ss:$60 sps:$4 sm:$0xff]   ;;  %v7729_v34 = vld [vmem:[%s7959_s30 + $0x1118] ss:$60 sps:$4 sm:$0xff]  }
 0x258   : > { %6675 = vmatprep.subr.bf16.mxu1 %v7688_v26  ;;  %v7724_v40 = vld [vmem:[%s7959_s30 + $0xa10] ss:$60 sps:$4 sm:$0xff]  }
 0x259   : > { %5381 = vmatpush1.bf16.msra.mxu0 %v7680_v38  ;;  %v7727_v38 = vld [vmem:[%s7959_s30 + $0x998] ss:$60 sps:$4 sm:$0xff]  }
 0x25a   : > { %6676 = vmatpush3.bf16.msra.mxu1 %v7689_v27  ;;  %5382 = vmatprep.subr.bf16.mxu0 %v7687_v59  ;;  %v7728_v59 = vld [vmem:[%s7959_s30 + $0xce0] ss:$60 sps:$4 sm:$0xff]  }
 0x25b   : > { %6677 = vmatprep.subr.bf16.mxu1 %v7693_v33  ;;  %v7732_v33 = vld [vmem:[%s7959_s30 + $0x10a0] ss:$60 sps:$4 sm:$0xff]  }
 0x25c   : > { %5279 = vmatmul.mubr.bf16.gmra.mxu0 %v9271_v2 }
 0x25d   : > { %5350 = vmatmul.mubr.bf16.gmra.mxu1 %v9277_v16  ;;  %5383 = vmatpush1.bf16.msra.mxu0 %v7685_v14 }
 0x25e   : > { %6678 = vmatpush3.bf16.msra.mxu1 %v7694_v53  ;;  %5384 = vmatprep.subr.bf16.mxu0 %v7692_v44  ;;  %v7730_v44 = vld [vmem:[%s7959_s30 + $0x920] ss:$60 sps:$4 sm:$0xff]  }
 0x25f   : > { %5288 = vmatprep.mubr.bf16.mxu0 %v9285_v49  ;;  %5359 = vmatprep.mubr.bf16.mxu1 %v9293_v46 }
 0x260   : > { %6679 = vmatprep.subr.bf16.mxu1 %v7698_v19 }
 0x261   : > { %5385 = vmatpush1.bf16.msra.mxu0 %v7690_v61  ;;  %v7731_v61 = vld [vmem:[%s7959_s30 + $0xc68] ss:$60 sps:$4 sm:$0xff]  }
 0x262   : > { %6680 = vmatpush3.bf16.msra.mxu1 %v7699_v25  ;;  %5386 = vmatprep.subr.bf16.mxu0 %v7697_v51  ;;  %v7735_v25 = vld [vmem:[%s7959_s30 + $0x1028] ss:$60 sps:$4 sm:$0xff]  }
 0x263   : > { %6681 = vmatprep.subr.bf16.mxu1 %v7703_v13  ;;  %v7787_v13 = vld [vmem:[%s9808_s0 + $0x60] ss:$20 sps:$4 sm:$0xff]  }
 0x264   : > { %5289 = vmatmul.mubr.bf16.gmra.mxu0 %v9303_v56 }
 0x265   : > { %5360 = vmatmul.mubr.bf16.gmra.mxu1 %v9309_v7  ;;  %5387 = vmatpush1.bf16.msra.mxu0 %v7695_v62  ;;  %v7733_v62 = vld [vmem:[%s7959_s30 + $0x8a8] ss:$60 sps:$4 sm:$0xff]  }
 0x266   : > { %6682 = vmatpush3.bf16.msra.mxu1 %v7704_v30  ;;  %5388 = vmatprep.subr.bf16.mxu0 %v7702_v28 }
 0x267   : > { %5298 = vmatprep.mubr.bf16.mxu0 %v8127_v36  ;;  %5369 = vmatprep.mubr.bf16.mxu1 %v8129_v37 }
 0x268   : > { %6683 = vmatprep.subr.bf16.mxu1 %v7708_v32  ;;  %v7734_v32 = vld [vmem:[%s7959_s30 + $0xbf0] ss:$60 sps:$4 sm:$0xff]  }
 0x269   : > { %5389 = vmatpush1.bf16.msra.mxu0 %v7700_v3  ;;  %v7738_v3 = vld [vmem:[%s7959_s30 + $0xfb0] ss:$60 sps:$4 sm:$0xff]  }
 0x26a   : > { %6684 = vmatpush3.bf16.msra.mxu1 %v7709_v9  ;;  %5390 = vmatprep.subr.bf16.mxu0 %v7707_v6  ;;  %v7736_v6 = vld [vmem:[%s7959_s30 + $0x830] ss:$60 sps:$4 sm:$0xff]  }
 0x26b   : > { %6685 = vmatprep.subr.bf16.mxu1 %v7713_v39 }
 0x26c   : > { %5299 = vmatmul.mubr.bf16.gmra.mxu0 %v8139_v42 }
 0x26d   : > { %5370 = vmatmul.mubr.bf16.gmra.mxu1 %v8141_v43  ;;  %5391 = vmatpush1.bf16.msra.mxu0 %v7705_v52 }
 0x26e   : > { %6686 = vmatpush3.bf16.msra.mxu1 %v7714_v57  ;;  %5392 = vmatprep.subr.bf16.mxu0 %v7712_v35  ;;  %v7737_v57 = vld [vmem:[%s7959_s30 + $0xb78] ss:$60 sps:$4 sm:$0xff]  }
 0x26f   : > { %5410 = vmatprep.mubr.bf16.mxu0 %v7857_v54  ;;  %6687 = vmatprep.subr.bf16.mxu1 %v7715_v20 }
 0x270   : > { %5481 = vmatprep.mubr.bf16.mxu1 %v9163_v55  ;;  %v7721_v55 = vld [vmem:[%s7959_s30 + $0xa88] ss:$60 sps:$4 sm:$0xff]  }
 0x271   : > { %5393 = vmatpush1.bf16.msra.mxu0 %v7710_v41  ;;  %v7739_v41 = vld [vmem:[%s7959_s30 + $0x7b8] ss:$60 sps:$4 sm:$0xff]  }
 0x272   : > { %6688 = vmatpush3.bf16.msra.mxu1 %v7717_v29  ;;  %6713 = vmatprep.subr.bf16.mxu0 %v7716_v45 }
 0x273   : > { %6765 = vmatprep.subr.bf16.mxu1 %v7720_v12 }
 0x274   : > { %v9333_v8 = vpop.f32.mrf.mxu0  ;;  %5411 = vmatmul.mubr.bf16.vlgmr.msra.gmra.mxu0 %v9340_v50 }
 0x275   : > { %v9335_v5 = vpop.f32.mrf.mxu1  ;;  %5482 = vmatmul.mubr.bf16.vlgmr.msra.gmra.mxu1 %v9239_v48  ;;  %6714 = vmatpush3.bf16.msra.mxu0 %v7718_v47  ;;  %v9371_v48 = vld [vmem:[%s9808_s0 + $0x38] ss:$20 sps:$4 sm:$0xff]  }
 0x276   : > { %6766 = vmatpush3.bf16.msra.mxu1 %v7720_v12  ;;  %v9345_v0 = vpop.f32.mrf.mxu0  ;;  %6715 = vmatprep.subr.bf16.mxu0 %v7719_v10 }
 0x277   : > { %v9347_v58 = vpop.f32.mrf.mxu1  ;;  %5420 = vmatprep.mubr.bf16.mxu0 %v7857_v54  ;;  %6767 = vmatprep.subr.bf16.mxu1 %v7723_v21 }
 0x278   : > { %5489 = vmatprep.mubr.bf16.mxu1 %v9253_v31  ;;  %v9353_v17 = vpop.f32.mrf.mxu0 }
 0x279   : > { %v9355_v15 = vpop.f32.mrf.mxu1  ;;  %6716 = vmatpush3.bf16.msra.mxu0 %v7721_v55 }
 0x27a   : > { %6768 = vmatpush3.bf16.msra.mxu1 %v7723_v21  ;;  %v9358_v23 = vpop.f32.mrf.mxu0  ;;  %6717 = vmatprep.subr.bf16.mxu0 %v7722_v60  ;;  %v4916_v21 = vadd.f32 %v9335_v5, %v9333_v8 }
 0x27b   : > { %v9360_v63 = vpop.f32.mrf.mxu1  ;;  %6769 = vmatprep.subr.bf16.mxu1 %v7726_v4 }
 0x27c   : > { %v9364_v18 = vpop.f32.mrf.mxu0  ;;  %5421 = vmatmul.mubr.bf16.gmra.mxu0 %v9371_v48 }
 0x27d   : > { %v9366_v26 = vpop.f32.mrf.mxu1  ;;  %5490 = vmatmul.mubr.bf16.gmra.mxu1 %v9271_v2  ;;  %6718 = vmatpush3.bf16.msra.mxu0 %v7724_v40 }
 0x27e   : > { %6770 = vmatpush3.bf16.msra.mxu1 %v7726_v4  ;;  %v9376_v27 = vpop.f32.mrf.mxu0  ;;  %6719 = vmatprep.subr.bf16.mxu0 %v7725_v22  ;;  %v4920_v4 = vadd.f32 %v9355_v15, %v9353_v17 }
 0x27f   : > { %v9378_v31 = vpop.f32.mrf.mxu1  ;;  %5430 = vmatprep.mubr.bf16.mxu0 %v7857_v54  ;;  %6771 = vmatprep.subr.bf16.mxu1 %v7729_v34 }
 0x280   : > { %5497 = vmatprep.mubr.bf16.mxu1 %v9285_v49  ;;  %v9384_v14 = vpop.f32.mrf.mxu0  ;;  %v4928_v17 = vadd.f32 %v9378_v31, %v9376_v27 }
 0x281   : > { %v9386_v53 = vpop.f32.mrf.mxu1  ;;  %6720 = vmatpush3.bf16.msra.mxu0 %v7727_v38 }
 0x282   : > { %6772 = vmatpush3.bf16.msra.mxu1 %v7729_v34  ;;  %v9389_v19 = vpop.f32.mrf.mxu0  ;;  %6721 = vmatprep.subr.bf16.mxu0 %v7728_v59 }
 0x283   : > { %v9391_v2 = vpop.f32.mrf.mxu1  ;;  %6773 = vmatprep.subr.bf16.mxu1 %v7732_v33 }
 0x284   : > { %v9395_v51 = vpop.f32.mrf.mxu0  ;;  %5431 = vmatmul.mubr.bf16.gmra.mxu0 %v7787_v13 }
 0x285   : > { %v9397_v49 = vpop.f32.mrf.mxu1  ;;  %5498 = vmatmul.mubr.bf16.gmra.mxu1 %v9303_v56  ;;  %6722 = vmatpush3.bf16.msra.mxu0 %v7730_v44 }
 0x286   : > { %6774 = vmatpush3.bf16.msra.mxu1 %v7732_v33  ;;  %v9404_v30 = vpop.f32.mrf.mxu0  ;;  %6723 = vmatprep.subr.bf16.mxu0 %v7731_v61  ;;  %v4936_v38 = vadd.f32 %v9397_v49, %v9395_v51 }
 0x287   : > { %v9406_v28 = vpop.f32.mrf.mxu1  ;;  %5440 = vmatprep.mubr.bf16.mxu0 %v7857_v54  ;;  %6775 = vmatprep.subr.bf16.mxu1 %v7735_v25  ;;  %v7740_v54 = vld [vmem:[%s7959_s30 + $0xf38] ss:$60 sps:$4 sm:$0xff]   ;;  %s6672_s30 = smul.u32 (%p9816_p9), 120, %s7892_s13 }
 0x288   : > { %5505 = vmatprep.mubr.bf16.mxu1 %v8127_v36  ;;  %v9412_v9 = vpop.f32.mrf.mxu0  ;;  %v7788_v36 = vld [vmem:[%s9808_s0 + $0x88] ss:$0 sps:$4 sm:$0x11]   ;;  %v4938_v31 = vadd.f32 %v9406_v28, %v9404_v30 }
 0x289   : > { %v9414_v56 = vpop.f32.mrf.mxu1  ;;  %6724 = vmatpush3.bf16.msra.mxu0 %v7733_v62  ;;  %s9589_s16 = scalar_lea.vmem (%p9816_p9), %s9810_s2, %s6672_s30 }
 0x28a   : > { %6776 = vmatpush3.bf16.msra.mxu1 %v7735_v25  ;;  %v9417_v39 = vpop.f32.mrf.mxu0  ;;  %6725 = vmatprep.subr.bf16.mxu0 %v7734_v32 }
 0x28b   : > { %v9419_v52 = vpop.f32.mrf.mxu1  ;;  %6777 = vmatprep.subr.bf16.mxu1 %v7738_v3 }
 0x28c   : > { %v9423_v35 = vpop.f32.mrf.mxu0  ;;  %5441 = vmatmul.mubr.bf16.gmra.mxu0 %v7788_v36 }
 0x28d   : > { %v9425_v20 = vpop.f32.mrf.mxu1  ;;  %5506 = vmatmul.mubr.bf16.gmra.mxu1 %v8139_v42  ;;  %6726 = vmatpush3.bf16.msra.mxu0 %v7736_v6 }
 0x28e   : > { %6778 = vmatpush3.bf16.msra.mxu1 %v7738_v3  ;;  %v9432_v29 = vpop.f32.mrf.mxu0  ;;  %6727 = vmatprep.subr.bf16.mxu0 %v7737_v57  ;;  %v4946_v61 = vadd.f32 %v9425_v20, %v9423_v35 }
 0x28f   : > { %v9434_v45 = vpop.f32.mrf.mxu1  ;;  %5545 = vmatprep.mubr.bf16.mxu0 %v9169_v24  ;;  %6779 = vmatprep.subr.bf16.mxu1 %v7740_v54  ;;  %v4918_v24 = vadd.f32 %v9347_v58, %v9345_v0  ;;  %v4926_v0 = vadd.f32 %v9366_v26, %v9364_v18 }
 0x290   : > { %6781 = vmatprep.mubr.bf16.mxu1 %v9340_v50  ;;  %v4878_v12 = vpop.f32.mrf.mxu0  ;;  %v4948_v51 = vadd.f32 %v9434_v45, %v9432_v29 }
 0x291   : > { %v4949_v47 = vpop.f32.mrf.mxu1  ;;  %6728 = vmatpush3.bf16.msra.mxu0 %v7739_v41 }
 0x292   : > { %6780 = vmatpush3.bf16.msra.mxu1 %v7740_v54  ;;  %v4879_v10 = vpop.f32.mrf.mxu0 }
 0x293   : > { %v4950_v42 = vpop.f32.mrf.mxu1 }
 0x294   : > { %v4986_v55 = vpop.f32.mrf.mxu0  ;;  %5546 = vmatmul.mubr.bf16.vlgmr.msra.gmra.mxu0 %v9245_v11  ;;  %v4922_v11 = vadd.f32 %v9360_v63, %v9358_v23  ;;  %v4930_v63 = vadd.f32 %v9386_v53, %v9384_v14  ;;  %v4940_v14 = vadd.f32 %v9414_v56, %v9412_v9 }
 0x295   : > { %6782 = vmatmul.mubr.bf16.vlgmr.msra.gmra.mxu1 %v9371_v48  ;;  %v4987_v50 = vadd.f32 %v4986_v55, %v4916_v21  ;;  %5553 = vmatprep.mubr.bf16.mxu0 %v9261_v1 }
 0x296   : > { %6785 = vmatprep.mubr.bf16.mxu1 %v7787_v13  ;;  %v4988_v60 = vpop.f32.mrf.mxu0 }
 0x297   : > { %5649 = vst [vmem:[%s8575_s24 + $0x40] sm:$0xff] %v4987_v50  ;;  %v4989_v8 = vadd.f32 %v4988_v60, %v4918_v24 }
 0x298   : > { %v4990_v5 = vpop.f32.mrf.mxu0 }
 0x299   : > { %5650 = vst [vmem:[%s8575_s24 + $0x48] sm:$0xff] %v4989_v8  ;;  %v4991_v40 = vadd.f32 %v4990_v5, %v4920_v4 }
 0x29a   : > { %v4992_v22 = vpop.f32.mrf.mxu0 }
 0x29b   : > { %5664 = vst [vmem:[%s8575_s24 + $0xb8] sm:$0xff] %v4991_v40  ;;  %v4993_v1 = vadd.f32 %v4992_v22, %v4922_v11 }
 0x29c   : > { %v4996_v58 = vpop.f32.mrf.mxu0  ;;  %5554 = vmatmul.mubr.bf16.gmra.mxu0 %v9277_v16  ;;  %v4932_v16 = vadd.f32 %v9391_v2, %v9389_v19  ;;  %v4942_v19 = vadd.f32 %v9419_v52, %v9417_v39 }
 0x29d   : > { %6786 = vmatmul.mubr.bf16.gmra.mxu1 %v7788_v36  ;;  %5665 = vst [vmem:[%s8575_s24 + $0xc0] sm:$0xff] %v4993_v1  ;;  %v4997_v15 = vadd.f32 %v4996_v58, %v4926_v0  ;;  %5561 = vmatprep.mubr.bf16.mxu0 %v9293_v46 }
 0x29e   : > { %v4998_v23 = vpop.f32.mrf.mxu0 }
 0x29f   : > { %5679 = vst [vmem:[%s8575_s24 + $0x130] sm:$0xff] %v4997_v15  ;;  %v4999_v34 = vadd.f32 %v4998_v23, %v4928_v17 }
 0x2a0   : > { %v5000_v18 = vpop.f32.mrf.mxu0 }
 0x2a1   : > { %5680 = vst [vmem:[%s8575_s24 + $0x138] sm:$0xff] %v4999_v34  ;;  %v5001_v26 = vadd.f32 %v5000_v18, %v4930_v63 }
 0x2a2   : > { %v5002_v48 = vpop.f32.mrf.mxu0 }
 0x2a3   : > { %5694 = vst [vmem:[%s8575_s24 + $0x1a8] sm:$0xff] %v5001_v26  ;;  %v5003_v46 = vadd.f32 %v5002_v48, %v4932_v16 }
 0x2a4   : > { %v5006_v27 = vpop.f32.mrf.mxu0  ;;  %5562 = vmatmul.mubr.bf16.gmra.mxu0 %v9309_v7 }
 0x2a5   : > { %5695 = vst [vmem:[%s8575_s24 + $0x1b0] sm:$0xff] %v5003_v46  ;;  %v5007_v59 = vadd.f32 %v5006_v27, %v4936_v38  ;;  %5569 = vmatprep.mubr.bf16.mxu0 %v8129_v37 }
 0x2a6   : > { %v5008_v33 = vpop.f32.mrf.mxu0 }
 0x2a7   : > { %5709 = vst [vmem:[%s8575_s24 + $0x220] sm:$0xff] %v5007_v59  ;;  %v5009_v53 = vadd.f32 %v5008_v33, %v4938_v31 }
 0x2a8   : > { %v5010_v44 = vpop.f32.mrf.mxu0 }
 0x2a9   : > { %5710 = vst [vmem:[%s8575_s24 + $0x228] sm:$0xff] %v5009_v53  ;;  %v5011_v7 = vadd.f32 %v5010_v44, %v4940_v14 }
 0x2aa   : > { %v5012_v2 = vpop.f32.mrf.mxu0 }
 0x2ab   : > { %5724 = vst [vmem:[%s8575_s24 + $0x298] sm:$0xff] %v5011_v7  ;;  %v5013_v37 = vadd.f32 %v5012_v2, %v4942_v19 }
 0x2ac   : > { %v5016_v25 = vpop.f32.mrf.mxu0  ;;  %5570 = vmatmul.mubr.bf16.gmra.mxu0 %v8141_v43 }
 0x2ad   : > { %5725 = vst [vmem:[%s8575_s24 + $0x2a0] sm:$0xff] %v5013_v37  ;;  %v5017_v49 = vadd.f32 %v5016_v25, %v4946_v61 }
 0x2ae   : > { %v5018_v13 = vpop.f32.mrf.mxu0 }
 0x2af   : > { %5739 = vst [vmem:[%s8575_s24 + $0x310] sm:$0x1] %v5017_v49  ;;  %v5019_v62 = vadd.f32 %v5018_v13, %v4948_v51 }
 0x2b0   : > { %v5020_v30 = vpop.f32.mrf.mxu0 }
 0x2b1   : > { %5740 = vst [vmem:[%s8575_s24 + $0x318] sm:$0x1] %v5019_v62 }
 0x2b2   : > { %v5021_v28 = vpop.f32.mrf.mxu0 }
 0x2b5   : > { %v5057_v32 = vpop.f32.mrf.mxu1 }
 0x2b7   : > { %v5059_v3 = vpop.f32.mrf.mxu1 }
 0x2b9   : > { %v5061_v9 = vpop.f32.mrf.mxu1 }
 0x2bb   : > { %v5063_v56 = vpop.f32.mrf.mxu1 }
 0x2bd   : > { %v5067_v6 = vpop.f32.mrf.mxu1 }
 0x2bf   : > { %v5069_v39 = vpop.f32.mrf.mxu1 }
 0x2c1   : > { %v5071_v52 = vpop.f32.mrf.mxu1 }
 0x2c3   : > { %v5073_v57 = vpop.f32.mrf.mxu1 }
 0x2c5   : > { %v5077_v43 = vpop.f32.mrf.mxu1 }
 0x2c7   : > { %v5079_v54 = vpop.f32.mrf.mxu1 }
 0x2c9   : > { %v5081_v35 = vpop.f32.mrf.mxu1 }
 0x2cb   : > { %v5083_v20 = vpop.f32.mrf.mxu1 }
 0x2cd   : > { %v9488_v36 = vpop.f32.mrf.mxu1 }
 0x2cf   : > { %v9490_v41 = vpop.f32.mrf.mxu1 }
 0x2d1   : > { %v5091_v29 = vpop.f32.mrf.mxu1 }
 0x2d3   : > { %v5092_v45 = vpop.f32.mrf.mxu1 }
 0x2d4   : > { %v5128_v12 = vpop.f32.mrf.mxu0 }
 0x2d5   : > { %v5199_v47 = vpop.f32.mrf.mxu1  ;;  %v5129_v10 = vadd.f32 %v5128_v12, %v5057_v32 }
 0x2d6   : > { %v5130_v42 = vpop.f32.mrf.mxu0 }
 0x2d7   : > { %v5201_v21 = vpop.f32.mrf.mxu1  ;;  %v5131_v55 = vadd.f32 %v5130_v42, %v5059_v3  ;;  %v5200_v24 = vadd.f32 %v5199_v47, %v5129_v10 }
 0x2d8   : > { %v5132_v50 = vpop.f32.mrf.mxu0 }
 0x2d9   : > { %v5203_v60 = vpop.f32.mrf.mxu1  ;;  %5651 = vst [vmem:[%s8575_s24 + $0x50] sm:$0xff] %v5200_v24  ;;  %v5133_v4 = vadd.f32 %v5132_v50, %v5061_v9  ;;  %v5202_v8 = vadd.f32 %v5201_v21, %v5131_v55 }
 0x2da   : > { %v5134_v5 = vpop.f32.mrf.mxu0 }
 0x2db   : > { %v5205_v11 = vpop.f32.mrf.mxu1  ;;  %5652 = vst [vmem:[%s8575_s24 + $0x58] sm:$0xff] %v5202_v8  ;;  %v5135_v40 = vadd.f32 %v5134_v5, %v5063_v56  ;;  %v5204_v22 = vadd.f32 %v5203_v60, %v5133_v4 }
 0x2dc   : > { %v5138_v0 = vpop.f32.mrf.mxu0 }
 0x2dd   : > { %v5209_v1 = vpop.f32.mrf.mxu1  ;;  %5666 = vst [vmem:[%s8575_s24 + $0xc8] sm:$0xff] %v5204_v22  ;;  %v5139_v58 = vadd.f32 %v5138_v0, %v5067_v6  ;;  %v5206_v17 = vadd.f32 %v5205_v11, %v5135_v40 }
 0x2de   : > { %v5140_v15 = vpop.f32.mrf.mxu0 }
 0x2df   : > { %v5211_v23 = vpop.f32.mrf.mxu1  ;;  %5667 = vst [vmem:[%s8575_s24 + $0xd0] sm:$0xff] %v5206_v17  ;;  %v5141_v63 = vadd.f32 %v5140_v15, %v5069_v39  ;;  %v5210_v34 = vadd.f32 %v5209_v1, %v5139_v58 }
 0x2e0   : > { %v5142_v18 = vpop.f32.mrf.mxu0 }
 0x2e1   : > { %v5213_v16 = vpop.f32.mrf.mxu1  ;;  %5681 = vst [vmem:[%s8575_s24 + $0x140] sm:$0xff] %v5210_v34  ;;  %v5143_v26 = vadd.f32 %v5142_v18, %v5071_v52  ;;  %v5212_v48 = vadd.f32 %v5211_v23, %v5141_v63 }
 0x2e2   : > { %v5144_v38 = vpop.f32.mrf.mxu0 }
 0x2e3   : > { %v5215_v46 = vpop.f32.mrf.mxu1  ;;  %5682 = vst [vmem:[%s8575_s24 + $0x148] sm:$0xff] %v5212_v48  ;;  %v5145_v27 = vadd.f32 %v5144_v38, %v5073_v57  ;;  %v5214_v31 = vadd.f32 %v5213_v16, %v5143_v26 }
 0x2e4   : > { %v5148_v59 = vpop.f32.mrf.mxu0 }
 0x2e5   : > { %v5219_v33 = vpop.f32.mrf.mxu1  ;;  %5696 = vst [vmem:[%s8575_s24 + $0x1b8] sm:$0xff] %v5214_v31  ;;  %v5149_v14 = vadd.f32 %v5148_v59, %v5077_v43  ;;  %v5216_v53 = vadd.f32 %v5215_v46, %v5145_v27 }
 0x2e6   : > { %v5150_v44 = vpop.f32.mrf.mxu0 }
 0x2e7   : > { %v5221_v19 = vpop.f32.mrf.mxu1  ;;  %5697 = vst [vmem:[%s8575_s24 + $0x1c0] sm:$0xff] %v5216_v53  ;;  %v5151_v7 = vadd.f32 %v5150_v44, %v5079_v54  ;;  %v5220_v2 = vadd.f32 %v5219_v33, %v5149_v14 }
 0x2e8   : > { %v5152_v61 = vpop.f32.mrf.mxu0 }
 0x2e9   : > { %v5223_v37 = vpop.f32.mrf.mxu1  ;;  %5711 = vst [vmem:[%s8575_s24 + $0x230] sm:$0xff] %v5220_v2  ;;  %v5153_v25 = vadd.f32 %v5152_v61, %v5081_v35  ;;  %v5222_v51 = vadd.f32 %v5221_v19, %v5151_v7 }
 0x2ea   : > { %v5154_v49 = vpop.f32.mrf.mxu0 }
 0x2eb   : > { %v5225_v13 = vpop.f32.mrf.mxu1  ;;  %5712 = vst [vmem:[%s8575_s24 + $0x238] sm:$0xff] %v5222_v51  ;;  %v5155_v62 = vadd.f32 %v5154_v49, %v5083_v20  ;;  %v5224_v30 = vadd.f32 %v5223_v37, %v5153_v25 }
 0x2ec   : > { %v5158_v28 = vpop.f32.mrf.mxu0 }
 0x2ed   : > { %v5229_v32 = vpop.f32.mrf.mxu1  ;;  %5726 = vst [vmem:[%s8575_s24 + $0x2a8] sm:$0xff] %v5224_v30  ;;  %v5159_v3 = vadd.f32 %v5158_v28, %v9488_v36  ;;  %v5226_v9 = vadd.f32 %v5225_v13, %v5155_v62 }
 0x2ee   : > { %v5160_v56 = vpop.f32.mrf.mxu0 }
 0x2ef   : > { %v5231_v6 = vpop.f32.mrf.mxu1  ;;  %5727 = vst [vmem:[%s8575_s24 + $0x2b0] sm:$0xff] %v5226_v9  ;;  %v5161_v39 = vadd.f32 %v5160_v56, %v9490_v41  ;;  %v5230_v52 = vadd.f32 %v5229_v32, %v5159_v3 }
 0x2f0   : > { %v5162_v57 = vpop.f32.mrf.mxu0 }
 0x2f1   : > { %v5233_v43 = vpop.f32.mrf.mxu1  ;;  %5741 = vst [vmem:[%s8575_s24 + $0x320] sm:$0x1] %v5230_v52  ;;  %v5232_v54 = vadd.f32 %v5231_v6, %v5161_v39 }
 0x2f2   : > { %v5163_v35 = vpop.f32.mrf.mxu0 }
 0x2f3   : > { %v5234_v20 = vpop.f32.mrf.mxu1  ;;  %5742 = vst [vmem:[%s8575_s24 + $0x328] sm:$0x1] %v5232_v54 }
 0x314   : > { %v5270_v29 = vpop.f32.mrf.mxu0 }
 0x315   : > { %v5341_v45 = vpop.f32.mrf.mxu1 }
 0x316   : > { %v5272_v12 = vpop.f32.mrf.mxu0  ;;  %v5342_v46 = vadd.f32 %v5341_v45, %v5270_v29 }
 0x317   : > { %v5343_v47 = vpop.f32.mrf.mxu1 }
 0x318   : > { %v5274_v10 = vpop.f32.mrf.mxu0  ;;  %v5344_v59 = vadd.f32 %v5343_v47, %v5272_v12 }
 0x319   : > { %v5345_v36 = vpop.f32.mrf.mxu1 }
 0x31a   : > { %v5276_v42 = vpop.f32.mrf.mxu0  ;;  %v5346_v44 = vadd.f32 %v5345_v36, %v5274_v10 }
 0x31b   : > { %v5347_v21 = vpop.f32.mrf.mxu1 }
 0x31c   : > { %v5280_v55 = vpop.f32.mrf.mxu0  ;;  %v5348_v61 = vadd.f32 %v5347_v21, %v5276_v42 }
 0x31d   : > { %v5351_v24 = vpop.f32.mrf.mxu1 }
 0x31e   : > { %v5282_v50 = vpop.f32.mrf.mxu0  ;;  %v5352_v49 = vadd.f32 %v5351_v24, %v5280_v55 }
 0x31f   : > { %v5353_v41 = vpop.f32.mrf.mxu1 }
 0x320   : > { %v5284_v60 = vpop.f32.mrf.mxu0  ;;  %v5354_v28 = vadd.f32 %v5353_v41, %v5282_v50 }
 0x321   : > { %v5355_v4 = vpop.f32.mrf.mxu1 }
 0x322   : > { %v5286_v8 = vpop.f32.mrf.mxu0  ;;  %v5356_v56 = vadd.f32 %v5355_v4, %v5284_v60 }
 0x323   : > { %v5357_v5 = vpop.f32.mrf.mxu1 }
 0x324   : > { %v5290_v11 = vpop.f32.mrf.mxu0  ;;  %v5358_v57 = vadd.f32 %v5357_v5, %v5286_v8 }
 0x325   : > { %v5361_v40 = vpop.f32.mrf.mxu1 }
 0x326   : > { %v5292_v22 = vpop.f32.mrf.mxu0  ;;  %v5362_v20 = vadd.f32 %v5361_v40, %v5290_v11 }
 0x327   : > { %v5363_v0 = vpop.f32.mrf.mxu1 }
 0x328   : > { %v5294_v1 = vpop.f32.mrf.mxu0  ;;  %v5364_v47 = vadd.f32 %v5363_v0, %v5292_v22 }
 0x329   : > { %v5365_v58 = vpop.f32.mrf.mxu1 }
 0x32a   : > { %v5296_v17 = vpop.f32.mrf.mxu0  ;;  %v5366_v21 = vadd.f32 %v5365_v58, %v5294_v1 }
 0x32b   : > { %v5367_v15 = vpop.f32.mrf.mxu1 }
 0x32c   : > { %v9508_v23 = vpop.f32.mrf.mxu0  ;;  %v5368_v41 = vadd.f32 %v5367_v15, %v5296_v17 }
 0x32d   : > { %v9510_v63 = vpop.f32.mrf.mxu1 }
 0x32e   : > { %v9512_v34 = vpop.f32.mrf.mxu0  ;;  %v5372_v5 = vadd.f32 %v9510_v63, %v9508_v23 }
 0x32f   : > { %v9514_v18 = vpop.f32.mrf.mxu1 }
 0x330   : > { %v5304_v16 = vpop.f32.mrf.mxu0  ;;  %v5374_v0 = vadd.f32 %v9514_v18, %v9512_v34 }
 0x331   : > { %v5375_v26 = vpop.f32.mrf.mxu1 }
 0x332   : > { %v5305_v48 = vpop.f32.mrf.mxu0 }
 0x333   : > { %v5376_v38 = vpop.f32.mrf.mxu1 }
 0x334   : > { %v5412_v27 = vpop.f32.mrf.mxu0 }
 0x335   : > { %v9516_v31 = vpop.f32.mrf.mxu1  ;;  %v5413_v33 = vadd.f32 %v5412_v27, %v5342_v46 }
 0x336   : > { %v5414_v14 = vpop.f32.mrf.mxu0 }
 0x337   : > { %v9518_v53 = vpop.f32.mrf.mxu1  ;;  %5653 = vst [vmem:[%s8575_s24 + $0x60] sm:$0xff] %v5413_v33  ;;  %v5415_v19 = vadd.f32 %v5414_v14, %v5344_v59 }
 0x338   : > { %v5416_v7 = vpop.f32.mrf.mxu0  ;;  %v6691_v59 = vadd.f32 %v9518_v53, %v9516_v31 }
 0x339   : > { %v9521_v2 = vpop.f32.mrf.mxu1  ;;  %5654 = vst [vmem:[%s8575_s24 + $0x68] sm:$0xff] %v5415_v19  ;;  %v5417_v37 = vadd.f32 %v5416_v7, %v5346_v44 }
 0x33a   : > { %v5418_v25 = vpop.f32.mrf.mxu0 }
 0x33b   : > { %v9524_v51 = vpop.f32.mrf.mxu1  ;;  %5668 = vst [vmem:[%s8575_s24 + $0xd8] sm:$0xff] %v5417_v37  ;;  %v5419_v13 = vadd.f32 %v5418_v25, %v5348_v61 }
 0x33c   : > { %v5422_v62 = vpop.f32.mrf.mxu0  ;;  %v6694_v7 = vadd.f32 %v9524_v51, %v9521_v2 }
 0x33d   : > { %v9527_v30 = vpop.f32.mrf.mxu1  ;;  %5669 = vst [vmem:[%s8575_s24 + $0xe0] sm:$0xff] %v5419_v13  ;;  %v5423_v32 = vadd.f32 %v5422_v62, %v5352_v49 }
 0x33e   : > { %v5424_v3 = vpop.f32.mrf.mxu0 }
 0x33f   : > { %v9530_v9 = vpop.f32.mrf.mxu1  ;;  %5683 = vst [vmem:[%s8575_s24 + $0x150] sm:$0xff] %v5423_v32  ;;  %v5425_v6 = vadd.f32 %v5424_v3, %v5354_v28 }
 0x340   : > { %v5426_v39 = vpop.f32.mrf.mxu0  ;;  %v6697_v31 = vadd.f32 %v9530_v9, %v9527_v30 }
 0x341   : > { %v9533_v52 = vpop.f32.mrf.mxu1  ;;  %5684 = vst [vmem:[%s8575_s24 + $0x158] sm:$0xff] %v5425_v6  ;;  %v5427_v43 = vadd.f32 %v5426_v39, %v5356_v56 }
 0x342   : > { %v5428_v54 = vpop.f32.mrf.mxu0 }
 0x343   : > { %v9536_v35 = vpop.f32.mrf.mxu1  ;;  %5698 = vst [vmem:[%s8575_s24 + $0x1c8] sm:$0xff] %v5427_v43  ;;  %v5429_v29 = vadd.f32 %v5428_v54, %v5358_v57 }
 0x344   : > { %v5432_v45 = vpop.f32.mrf.mxu0  ;;  %v6700_v51 = vadd.f32 %v9536_v35, %v9533_v52 }
 0x345   : > { %v9539_v12 = vpop.f32.mrf.mxu1  ;;  %5699 = vst [vmem:[%s8575_s24 + $0x1d0] sm:$0xff] %v5429_v29  ;;  %v5433_v10 = vadd.f32 %v5432_v45, %v5362_v20 }
 0x346   : > { %v5434_v36 = vpop.f32.mrf.mxu0 }
 0x347   : > { %v9542_v42 = vpop.f32.mrf.mxu1  ;;  %5713 = vst [vmem:[%s8575_s24 + $0x240] sm:$0xff] %v5433_v10  ;;  %v5435_v55 = vadd.f32 %v5434_v36, %v5364_v47 }
 0x348   : > { %v5436_v24 = vpop.f32.mrf.mxu0  ;;  %v6703_v30 = vadd.f32 %v9542_v42, %v9539_v12 }
 0x349   : > { %v9545_v50 = vpop.f32.mrf.mxu1  ;;  %5714 = vst [vmem:[%s8575_s24 + $0x248] sm:$0xff] %v5435_v55  ;;  %v5437_v60 = vadd.f32 %v5436_v24, %v5366_v21 }
 0x34a   : > { %v5438_v4 = vpop.f32.mrf.mxu0 }
 0x34b   : > { %v6705_v8 = vpop.f32.mrf.mxu1  ;;  %5728 = vst [vmem:[%s8575_s24 + $0x2b8] sm:$0xff] %v5437_v60  ;;  %v5439_v11 = vadd.f32 %v5438_v4, %v5368_v41 }
 0x34c   : > { %v5442_v40 = vpop.f32.mrf.mxu0  ;;  %v6706_v36 = vadd.f32 %v6705_v8, %v9545_v50  ;;  %v5768_v50 = vld [vmem:[%s8575_s24] sm:$0xff] (%p9816_p9)  ;;  %v5770_v8 = vld [vmem:[%s8575_s24 + $0x8] sm:$0xff] (%p9816_p9) }
 0x34d   : > { %v9551_v22 = vpop.f32.mrf.mxu1  ;;  %5729 = vst [vmem:[%s8575_s24 + $0x2c0] sm:$0xff] %v5439_v11  ;;  %v5443_v1 = vadd.f32 %v5442_v40, %v5372_v5  ;;  %5769 = vst [vmem:[%s9589_s16] sm:$0xff] (%p9816_p9), %v5768_v50  ;;  %v5896_v50 = vld [vmem:[%s8575_s24 + $0x200] sm:$0xff] (%p9816_p9) }
 0x34e   : > { %v5444_v58 = vpop.f32.mrf.mxu0  ;;  %5771 = vst [vmem:[%s9589_s16 + $0x8] sm:$0xff] (%p9816_p9), %v5770_v8  ;;  %v5898_v8 = vld [vmem:[%s8575_s24 + $0x208] sm:$0xff] (%p9816_p9)  ;;  %5897 = vst [vmem:[%s9589_s16 + $0x3e0] sm:$0xff] (%p9816_p9), %v5896_v50 }
 0x34f   : > { %v6708_v17 = vpop.f32.mrf.mxu1  ;;  %5743 = vst [vmem:[%s8575_s24 + $0x330] sm:$0x1] %v5443_v1  ;;  %v5445_v15 = vadd.f32 %v5444_v58, %v5374_v0  ;;  %v5774_v0 = vld [vmem:[%s8575_s24 + $0x18] sm:$0xff] (%p9816_p9)  ;;  %v5776_v1 = vld [vmem:[%s8575_s24 + $0x20] sm:$0xff] (%p9816_p9)  ;;  %v5778_v58 = vld [vmem:[%s8575_s24 + $0x28] sm:$0xff] (%p9816_p9) }
 0x350   : > { %v5446_v16 = vpop.f32.mrf.mxu0  ;;  %v6709_v60 = vadd.f32 %v6708_v17, %v9551_v22  ;;  %v5772_v22 = vld [vmem:[%s8575_s24 + $0x10] sm:$0xff] (%p9816_p9)  ;;  %5775 = vst [vmem:[%s9589_s16 + $0x18] sm:$0xff] (%p9816_p9), %v5774_v0  ;;  %5777 = vst [vmem:[%s9589_s16 + $0x20] sm:$0xff] (%p9816_p9), %v5776_v1  ;;  %v5902_v0 = vld [vmem:[%s8575_s24 + $0x218] sm:$0xff] (%p9816_p9) }
 0x351   : > { %v6710_v26 = vpop.f32.mrf.mxu1  ;;  %5744 = vst [vmem:[%s8575_s24 + $0x338] sm:$0x1] %v5445_v15  ;;  %v5780_v17 = vld [vmem:[%s8575_s24 + $0x30] sm:$0xff] (%p9816_p9)  ;;  %v5782_v15 = vld [vmem:[%s8575_s24 + $0x38] sm:$0xff] (%p9816_p9)  ;;  %v5784_v16 = vld [vmem:[%s8575_s24 + $0x40] sm:$0xff] (%p9816_p9) }
 0x352   : > { %v5447_v48 = vpop.f32.mrf.mxu0  ;;  %5773 = vst [vmem:[%s9589_s16 + $0x10] sm:$0xff] (%p9816_p9), %v5772_v22  ;;  %5779 = vst [vmem:[%s9589_s16 + $0x28] sm:$0xff] (%p9816_p9), %v5778_v58  ;;  %v5786_v26 = vld [vmem:[%s8575_s24 + $0x48] sm:$0xff] (%p9816_p9)  ;;  %v5900_v22 = vld [vmem:[%s8575_s24 + $0x210] sm:$0xff] (%p9816_p9) }
 0x353   : > { %v6711_v38 = vpop.f32.mrf.mxu1  ;;  %5781 = vst [vmem:[%s9589_s16 + $0x30] sm:$0xff] (%p9816_p9), %v5780_v17  ;;  %5783 = vst [vmem:[%s9589_s16 + $0x38] sm:$0xff] (%p9816_p9), %v5782_v15  ;;  %v5788_v48 = vld [vmem:[%s8575_s24 + $0x50] sm:$0xff] (%p9816_p9)  ;;  %v5904_v1 = vld [vmem:[%s8575_s24 + $0x220] sm:$0xff] (%p9816_p9) }
 0x354   : > { %v6729_v23 = vpop.f32.mrf.mxu0  ;;  %5785 = vst [vmem:[%s9589_s16 + $0x40] sm:$0xff] (%p9816_p9), %v5784_v16  ;;  %v5790_v38 = vld [vmem:[%s8575_s24 + $0x58] sm:$0xff] (%p9816_p9)  ;;  %5787 = vst [vmem:[%s9589_s16 + $0x48] sm:$0xff] (%p9816_p9), %v5786_v26  ;;  %v5906_v58 = vld [vmem:[%s8575_s24 + $0x228] sm:$0xff] (%p9816_p9) }
 0x355   : > { %v6783_v63 = vpop.f32.mrf.mxu1  ;;  %5789 = vst [vmem:[%s9589_s16 + $0x50] sm:$0xff] (%p9816_p9), %v5788_v48  ;;  %5791 = vst [vmem:[%s9589_s16 + $0x58] sm:$0xff] (%p9816_p9), %v5790_v38  ;;  %v5908_v17 = vld [vmem:[%s8575_s24 + $0x230] sm:$0xff] (%p9816_p9)  ;;  %v5910_v15 = vld [vmem:[%s8575_s24 + $0x238] sm:$0xff] (%p9816_p9) }
 0x356   : > { %v6730_v46 = vpop.f32.mrf.mxu0  ;;  %5899 = vst [vmem:[%s9589_s16 + $0x3e8] sm:$0xff] (%p9816_p9), %v5898_v8  ;;  %5901 = vst [vmem:[%s9589_s16 + $0x3f0] sm:$0xff] (%p9816_p9), %v5900_v22  ;;  %v5912_v16 = vld [vmem:[%s8575_s24 + $0x240] sm:$0xff] (%p9816_p9)  ;;  %v5914_v26 = vld [vmem:[%s8575_s24 + $0x248] sm:$0xff] (%p9816_p9) }
 0x357   : > { %v5611_v27 = vpop.f32.mrf.mxu1  ;;  %v6731_v34 = vadd.f32 %v6730_v46, %v6729_v23  ;;  %v5792_v23 = vld [vmem:[%s8575_s24 + $0x60] sm:$0xff] (%p9816_p9)  ;;  %5903 = vst [vmem:[%s9589_s16 + $0x3f8] sm:$0xff] (%p9816_p9), %v5902_v0  ;;  %5905 = vst [vmem:[%s9589_s16 + $0x400] sm:$0xff] (%p9816_p9), %v5904_v1  ;;  %v5918_v38 = vld [vmem:[%s8575_s24 + $0x258] sm:$0xff] (%p9816_p9) }
 0x358   : > { %v6732_v18 = vpop.f32.mrf.mxu0  ;;  %5793 = vst [vmem:[%s9589_s16 + $0x60] sm:$0xff] (%p9816_p9), %v5792_v23  ;;  %5907 = vst [vmem:[%s9589_s16 + $0x408] sm:$0xff] (%p9816_p9), %v5906_v58  ;;  %v5920_v23 = vld [vmem:[%s8575_s24 + $0x260] sm:$0xff] (%p9816_p9) }
 0x359   : > { %v6784_v33 = vpop.f32.mrf.mxu1  ;;  %v5548_v14 = vadd.f32 %v6731_v34, %v6691_v59  ;;  %v5800_v59 = vld [vmem:[%s8575_s24 + $0x80] sm:$0xff] (%p9816_p9)  ;;  %v5802_v34 = vld [vmem:[%s8575_s24 + $0x88] sm:$0xff] (%p9816_p9)  ;;  %5909 = vst [vmem:[%s9589_s16 + $0x410] sm:$0xff] (%p9816_p9), %v5908_v17  ;;  %5911 = vst [vmem:[%s9589_s16 + $0x418] sm:$0xff] (%p9816_p9), %v5910_v15 }
 0x35a   : > { %v6733_v44 = vpop.f32.mrf.mxu0  ;;  %5801 = vst [vmem:[%s9589_s16 + $0xf8] sm:$0xff] (%p9816_p9), %v5800_v59  ;;  %5803 = vst [vmem:[%s9589_s16 + $0x100] sm:$0xff] (%p9816_p9), %v5802_v34  ;;  %v5928_v59 = vld [vmem:[%s8575_s24 + $0x280] sm:$0xff] (%p9816_p9)  ;;  %v5930_v34 = vld [vmem:[%s8575_s24 + $0x288] sm:$0xff] (%p9816_p9) }
 0x35b   : > { %v5614_v19 = vpop.f32.mrf.mxu1  ;;  %v6734_v61 = vadd.f32 %v6733_v44, %v6732_v18  ;;  %v5612_v37 = vadd.f32 %v5611_v27, %v5548_v14  ;;  %v5798_v27 = vld [vmem:[%s8575_s24 + $0x78] sm:$0xff] (%p9816_p9)  ;;  %v5804_v18 = vld [vmem:[%s8575_s24 + $0x90] sm:$0xff] (%p9816_p9)  ;;  %v5808_v14 = vld [vmem:[%s8575_s24 + $0xa0] sm:$0xff] (%p9816_p9)  ;;  %5913 = vst [vmem:[%s9589_s16 + $0x420] sm:$0xff] (%p9816_p9), %v5912_v16 }
 0x35c   : > { %v6735_v25 = vpop.f32.mrf.mxu0  ;;  %5799 = vst [vmem:[%s9589_s16 + $0xf0] sm:$0xff] (%p9816_p9), %v5798_v27  ;;  %5805 = vst [vmem:[%s9589_s16 + $0x108] sm:$0xff] (%p9816_p9), %v5804_v18  ;;  %v5810_v44 = vld [vmem:[%s8575_s24 + $0xa8] sm:$0xff] (%p9816_p9)  ;;  %v5926_v27 = vld [vmem:[%s8575_s24 + $0x278] sm:$0xff] (%p9816_p9) }
 0x35d   : > { %v6787_v49 = vpop.f32.mrf.mxu1  ;;  %5655 = vst [vmem:[%s8575_s24 + $0x70] sm:$0xff] %v5612_v37  ;;  %v5551_v13 = vadd.f32 %v6734_v61, %v6694_v7  ;;  %5809 = vst [vmem:[%s9589_s16 + $0x118] sm:$0xff] (%p9816_p9), %v5808_v14  ;;  %v5814_v7 = vld [vmem:[%s8575_s24 + $0xb8] sm:$0xff] (%p9816_p9)  ;;  %v5816_v61 = vld [vmem:[%s8575_s24 + $0xc0] sm:$0xff] (%p9816_p9) }
 0x35e   : > { %v6736_v62 = vpop.f32.mrf.mxu0  ;;  %5811 = vst [vmem:[%s9589_s16 + $0x120] sm:$0xff] (%p9816_p9), %v5810_v44  ;;  %5815 = vst [vmem:[%s9589_s16 + $0x130] sm:$0xff] (%p9816_p9), %v5814_v7  ;;  %v5818_v37 = vld [vmem:[%s8575_s24 + $0xc8] sm:$0xff] (%p9816_p9)  ;;  %v5932_v18 = vld [vmem:[%s8575_s24 + $0x290] sm:$0xff] (%p9816_p9) }
 0x35f   : > { %v5627_v28 = vpop.f32.mrf.mxu1  ;;  %v6737_v53 = vadd.f32 %v6736_v62, %v6735_v25  ;;  %v5615_v32 = vadd.f32 %v5614_v19, %v5551_v13  ;;  %v5812_v19 = vld [vmem:[%s8575_s24 + $0xb0] sm:$0xff] (%p9816_p9)  ;;  %5817 = vst [vmem:[%s9589_s16 + $0x138] sm:$0xff] (%p9816_p9), %v5816_v61  ;;  %5819 = vst [vmem:[%s9589_s16 + $0x140] sm:$0xff] (%p9816_p9), %v5818_v37  ;;  %v5824_v13 = vld [vmem:[%s8575_s24 + $0xe0] sm:$0xff] (%p9816_p9) }
 0x360   : > { %v6738_v3 = vpop.f32.mrf.mxu0  ;;  %5813 = vst [vmem:[%s9589_s16 + $0x128] sm:$0xff] (%p9816_p9), %v5812_v19  ;;  %v5820_v25 = vld [vmem:[%s8575_s24 + $0xd0] sm:$0xff] (%p9816_p9)  ;;  %5825 = vst [vmem:[%s9589_s16 + $0x158] sm:$0xff] (%p9816_p9), %v5824_v13  ;;  %v5936_v14 = vld [vmem:[%s8575_s24 + $0x2a0] sm:$0xff] (%p9816_p9) }
 0x361   : > { %v6788_v56 = vpop.f32.mrf.mxu1  ;;  %v5556_v6 = vadd.f32 %v6737_v53, %v6697_v31  ;;  %5670 = vst [vmem:[%s8575_s24 + $0xe8] sm:$0xff] %v5615_v32  ;;  %5821 = vst [vmem:[%s9589_s16 + $0x148] sm:$0xff] (%p9816_p9), %v5820_v25  ;;  %v5830_v31 = vld [vmem:[%s8575_s24 + $0xf8] sm:$0xff] (%p9816_p9)  ;;  %v5832_v53 = vld [vmem:[%s8575_s24 + $0x100] sm:$0xff] (%p9816_p9) }
 0x362   : > { %v6739_v2 = vpop.f32.mrf.mxu0  ;;  %5831 = vst [vmem:[%s9589_s16 + $0x1e8] sm:$0xff] (%p9816_p9), %v5830_v31  ;;  %5833 = vst [vmem:[%s9589_s16 + $0x1f0] sm:$0xff] (%p9816_p9), %v5832_v53  ;;  %v5834_v32 = vld [vmem:[%s8575_s24 + $0x108] sm:$0xff] (%p9816_p9)  ;;  %v5838_v56 = vld [vmem:[%s8575_s24 + $0x118] sm:$0xff] (%p9816_p9) }
 0x363   : > { %v5620_v39 = vadd.f32 %v6783_v63, %v5556_v6  ;;  %v6740_v57 = vadd.f32 %v6739_v2, %v6738_v3  ;;  %v5630_v24 = vpop.f32.mrf.mxu1  ;;  %v5794_v63 = vld [vmem:[%s8575_s24 + $0x68] sm:$0xff] (%p9816_p9)  ;;  %v5836_v3 = vld [vmem:[%s8575_s24 + $0x110] sm:$0xff] (%p9816_p9)  ;;  %5835 = vst [vmem:[%s9589_s16 + $0x1f8] sm:$0xff] (%p9816_p9), %v5834_v32  ;;  %5839 = vst [vmem:[%s9589_s16 + $0x208] sm:$0xff] (%p9816_p9), %v5838_v56 }
 0x364   : > { %v6741_v43 = vpop.f32.mrf.mxu0  ;;  %v5796_v46 = vld [vmem:[%s8575_s24 + $0x70] sm:$0xff] (%p9816_p9)  ;;  %5795 = vst [vmem:[%s9589_s16 + $0x68] sm:$0xff] (%p9816_p9), %v5794_v63  ;;  %5837 = vst [vmem:[%s9589_s16 + $0x200] sm:$0xff] (%p9816_p9), %v5836_v3  ;;  %v5840_v6 = vld [vmem:[%s8575_s24 + $0x120] sm:$0xff] (%p9816_p9) }
 0x365   : > { %5685 = vst [vmem:[%s8575_s24 + $0x160] sm:$0xff] %v5620_v39  ;;  %v5559_v54 = vadd.f32 %v6740_v57, %v6700_v51  ;;  %5797 = vst [vmem:[%s9589_s16 + $0x70] sm:$0xff] (%p9816_p9), %v5796_v46  ;;  %v5842_v2 = vld [vmem:[%s8575_s24 + $0x128] sm:$0xff] (%p9816_p9)  ;;  %v5844_v51 = vld [vmem:[%s8575_s24 + $0x130] sm:$0xff] (%p9816_p9) }
 0x366   : > { %v6742_v20 = vpop.f32.mrf.mxu0  ;;  %5841 = vst [vmem:[%s9589_s16 + $0x210] sm:$0xff] (%p9816_p9), %v5840_v6  ;;  %5843 = vst [vmem:[%s9589_s16 + $0x218] sm:$0xff] (%p9816_p9), %v5842_v2  ;;  %v5846_v39 = vld [vmem:[%s8575_s24 + $0x138] sm:$0xff] (%p9816_p9)  ;;  %v5848_v57 = vld [vmem:[%s8575_s24 + $0x140] sm:$0xff] (%p9816_p9) }
 0x367   : > { %v5623_v9 = vadd.f32 %v6784_v33, %v5559_v54  ;;  %v6743_v29 = vadd.f32 %v6742_v20, %v6741_v43  ;;  %v5806_v33 = vld [vmem:[%s8575_s24 + $0x98] sm:$0xff] (%p9816_p9)  ;;  %5845 = vst [vmem:[%s9589_s16 + $0x220] sm:$0xff] (%p9816_p9), %v5844_v51  ;;  %v5850_v43 = vld [vmem:[%s8575_s24 + $0x148] sm:$0xff] (%p9816_p9)  ;;  %5847 = vst [vmem:[%s9589_s16 + $0x228] sm:$0xff] (%p9816_p9), %v5846_v39 }
 0x368   : > { %v6744_v45 = vpop.f32.mrf.mxu0  ;;  %5807 = vst [vmem:[%s9589_s16 + $0x110] sm:$0xff] (%p9816_p9), %v5806_v33  ;;  %v5826_v62 = vld [vmem:[%s8575_s24 + $0xe8] sm:$0xff] (%p9816_p9)  ;;  %5849 = vst [vmem:[%s9589_s16 + $0x230] sm:$0xff] (%p9816_p9), %v5848_v57  ;;  %v5852_v54 = vld [vmem:[%s8575_s24 + $0x150] sm:$0xff] (%p9816_p9) }
 0x369   : > { %5700 = vst [vmem:[%s8575_s24 + $0x1d8] sm:$0xff] %v5623_v9  ;;  %v5564_v47 = vadd.f32 %v6743_v29, %v6703_v30  ;;  %5827 = vst [vmem:[%s9589_s16 + $0x160] sm:$0xff] (%p9816_p9), %v5826_v62  ;;  %v5854_v20 = vld [vmem:[%s8575_s24 + $0x158] sm:$0xff] (%p9816_p9)  ;;  %v5858_v9 = vld [vmem:[%s8575_s24 + $0x168] sm:$0xff] (%p9816_p9) }
 0x36a   : > { %v6745_v10 = vpop.f32.mrf.mxu0  ;;  %5851 = vst [vmem:[%s9589_s16 + $0x238] sm:$0xff] (%p9816_p9), %v5850_v43  ;;  %5853 = vst [vmem:[%s9589_s16 + $0x240] sm:$0xff] (%p9816_p9), %v5852_v54  ;;  %v5860_v29 = vld [vmem:[%s8575_s24 + $0x170] sm:$0xff] (%p9816_p9)  ;;  %v5922_v63 = vld [vmem:[%s8575_s24 + $0x268] sm:$0xff] (%p9816_p9) }
 0x36b   : > { %v5628_v52 = vadd.f32 %v5627_v28, %v5564_v47  ;;  %v6746_v35 = vadd.f32 %v6745_v10, %v6744_v45  ;;  %v5828_v28 = vld [vmem:[%s8575_s24 + $0xf0] sm:$0xff] (%p9816_p9)  ;;  %5855 = vst [vmem:[%s9589_s16 + $0x248] sm:$0xff] (%p9816_p9), %v5854_v20  ;;  %v5862_v45 = vld [vmem:[%s8575_s24 + $0x178] sm:$0xff] (%p9816_p9)  ;;  %5859 = vst [vmem:[%s9589_s16 + $0x2d0] sm:$0xff] (%p9816_p9), %v5858_v9 }
 0x36c   : > { %v6747_v21 = vpop.f32.mrf.mxu0  ;;  %5829 = vst [vmem:[%s9589_s16 + $0x1e0] sm:$0xff] (%p9816_p9), %v5828_v28  ;;  %v5856_v30 = vld [vmem:[%s8575_s24 + $0x160] sm:$0xff] (%p9816_p9)  ;;  %5861 = vst [vmem:[%s9589_s16 + $0x2d8] sm:$0xff] (%p9816_p9), %v5860_v29  ;;  %v5866_v10 = vld [vmem:[%s8575_s24 + $0x188] sm:$0xff] (%p9816_p9) }
 0x36d   : > { %5715 = vst [vmem:[%s8575_s24 + $0x250] sm:$0xff] %v5628_v52  ;;  %v5567_v55 = vadd.f32 %v6746_v35, %v6706_v36  ;;  %5857 = vst [vmem:[%s9589_s16 + $0x250] sm:$0xff] (%p9816_p9), %v5856_v30  ;;  %v5864_v47 = vld [vmem:[%s8575_s24 + $0x180] sm:$0xff] (%p9816_p9)  ;;  %v5868_v36 = vld [vmem:[%s8575_s24 + $0x190] sm:$0xff] (%p9816_p9) }
 0x36e   : > { %v6748_v41 = vpop.f32.mrf.mxu0  ;;  %5863 = vst [vmem:[%s9589_s16 + $0x2e0] sm:$0xff] (%p9816_p9), %v5862_v45  ;;  %5865 = vst [vmem:[%s9589_s16 + $0x2e8] sm:$0xff] (%p9816_p9), %v5864_v47  ;;  %v5870_v52 = vld [vmem:[%s8575_s24 + $0x198] sm:$0xff] (%p9816_p9)  ;;  %v5872_v35 = vld [vmem:[%s8575_s24 + $0x1a0] sm:$0xff] (%p9816_p9) }
 0x36f   : > { %v5631_v12 = vadd.f32 %v5630_v24, %v5567_v55  ;;  %v6749_v42 = vadd.f32 %v6748_v41, %v6747_v21  ;;  %5867 = vst [vmem:[%s9589_s16 + $0x2f0] sm:$0xff] (%p9816_p9), %v5866_v10  ;;  %5869 = vst [vmem:[%s9589_s16 + $0x2f8] sm:$0xff] (%p9816_p9), %v5868_v36  ;;  %v5874_v21 = vld [vmem:[%s8575_s24 + $0x1a8] sm:$0xff] (%p9816_p9)  ;;  %v5876_v55 = vld [vmem:[%s8575_s24 + $0x1b0] sm:$0xff] (%p9816_p9) }
 0x370   : > { %v6750_v4 = vpop.f32.mrf.mxu0  ;;  %5871 = vst [vmem:[%s9589_s16 + $0x300] sm:$0xff] (%p9816_p9), %v5870_v52  ;;  %5873 = vst [vmem:[%s9589_s16 + $0x308] sm:$0xff] (%p9816_p9), %v5872_v35  ;;  %v5878_v24 = vld [vmem:[%s8575_s24 + $0x1b8] sm:$0xff] (%p9816_p9)  ;;  %v5880_v41 = vld [vmem:[%s8575_s24 + $0x1c0] sm:$0xff] (%p9816_p9) }
 0x371   : > { %5730 = vst [vmem:[%s8575_s24 + $0x2c8] sm:$0xff] %v5631_v12  ;;  %v5572_v5 = vadd.f32 %v6749_v42, %v6709_v60  ;;  %5752 = sbr.rel (!%p9816_p9) target bundleno = 904 (0x388), region = 36  ;;  %5875 = vst [vmem:[%s9589_s16 + $0x310] sm:$0xff] (%p9816_p9), %v5874_v21  ;;  %v5882_v60 = vld [vmem:[%s8575_s24 + $0x1c8] sm:$0xff] (%p9816_p9)  ;;  %v5884_v12 = vld [vmem:[%s8575_s24 + $0x1d0] sm:$0xff] (%p9816_p9) }
 0x372   : > { %v6751_v11 = vpop.f32.mrf.mxu0  ;;  %5877 = vst [vmem:[%s9589_s16 + $0x318] sm:$0xff] (%p9816_p9), %v5876_v55  ;;  %5879 = vst [vmem:[%s9589_s16 + $0x320] sm:$0xff] (%p9816_p9), %v5878_v24  ;;  %v5886_v42 = vld [vmem:[%s8575_s24 + $0x1d8] sm:$0xff] (%p9816_p9)  ;;  %v5888_v4 = vld [vmem:[%s8575_s24 + $0x1e0] sm:$0xff] (%p9816_p9) }
 0x373   : > { %v5636_v40 = vadd.f32 %v6787_v49, %v5572_v5  ;;  %v5822_v49 = vld [vmem:[%s8575_s24 + $0xd8] sm:$0xff] (%p9816_p9)  ;;  %5881 = vst [vmem:[%s9589_s16 + $0x328] sm:$0xff] (%p9816_p9), %v5880_v41  ;;  %5883 = vst [vmem:[%s9589_s16 + $0x330] sm:$0xff] (%p9816_p9), %v5882_v60  ;;  %v5890_v5 = vld [vmem:[%s8575_s24 + $0x1e8] sm:$0xff] (%p9816_p9) }
 0x374   : > { %5823 = vst [vmem:[%s9589_s16 + $0x150] sm:$0xff] (%p9816_p9), %v5822_v49  ;;  %5885 = vst [vmem:[%s9589_s16 + $0x338] sm:$0xff] (%p9816_p9), %v5884_v12  ;;  %v5892_v11 = vld [vmem:[%s8575_s24 + $0x1f0] sm:$0xff] (%p9816_p9)  ;;  %v5934_v33 = vld [vmem:[%s8575_s24 + $0x298] sm:$0xff] (%p9816_p9) }
 0x375   : > { %5745 = vst [vmem:[%s8575_s24 + $0x340] sm:$0x1] %v5636_v40  ;;  %5887 = vst [vmem:[%s9589_s16 + $0x340] sm:$0xff] (%p9816_p9), %v5886_v42  ;;  %v5894_v40 = vld [vmem:[%s8575_s24 + $0x1f8] sm:$0xff] (%p9816_p9)  ;;  %v5916_v48 = vld [vmem:[%s8575_s24 + $0x250] sm:$0xff] (%p9816_p9) }
 0x376   : > { %5889 = vst [vmem:[%s9589_s16 + $0x3c0] sm:$0xff] %v5888_v4  ;;  %5891 = vst [vmem:[%s9589_s16 + $0x3c8] sm:$0xff] %v5890_v5  ;;  %v5924_v46 = vld [vmem:[%s8575_s24 + $0x270] sm:$0xff]  ;;  %v5938_v44 = vld [vmem:[%s8575_s24 + $0x2a8] sm:$0xff] }
 0x377   : > { %5893 = vst [vmem:[%s9589_s16 + $0x3d0] sm:$0xff] %v5892_v11  ;;  %5895 = vst [vmem:[%s9589_s16 + $0x3d8] sm:$0xff] %v5894_v40  ;;  %v5940_v19 = vld [vmem:[%s8575_s24 + $0x2b0] sm:$0xff]  ;;  %v5942_v7 = vld [vmem:[%s8575_s24 + $0x2b8] sm:$0xff] }
 0x378   : > { %5915 = vst [vmem:[%s9589_s16 + $0x428] sm:$0xff] %v5914_v26  ;;  %5917 = vst [vmem:[%s9589_s16 + $0x430] sm:$0xff] %v5916_v48  ;;  %v5944_v61 = vld [vmem:[%s8575_s24 + $0x2c0] sm:$0xff]  ;;  %v5946_v37 = vld [vmem:[%s8575_s24 + $0x2c8] sm:$0xff] }
 0x379   : > { %5919 = vst [vmem:[%s9589_s16 + $0x4b0] sm:$0xff] %v5918_v38  ;;  %5921 = vst [vmem:[%s9589_s16 + $0x4b8] sm:$0xff] %v5920_v23  ;;  %v5948_v25 = vld [vmem:[%s8575_s24 + $0x2d0] sm:$0xff]  ;;  %v5950_v49 = vld [vmem:[%s8575_s24 + $0x2d8] sm:$0xff] }
 0x37a   : > { %5923 = vst [vmem:[%s9589_s16 + $0x4c0] sm:$0xff] %v5922_v63  ;;  %5925 = vst [vmem:[%s9589_s16 + $0x4c8] sm:$0xff] %v5924_v46  ;;  %v5952_v13 = vld [vmem:[%s8575_s24 + $0x2e0] sm:$0xff]  ;;  %v5954_v62 = vld [vmem:[%s8575_s24 + $0x2e8] sm:$0xff] }
 0x37b   : > { %5927 = vst [vmem:[%s9589_s16 + $0x4d0] sm:$0xff] %v5926_v27  ;;  %5929 = vst [vmem:[%s9589_s16 + $0x4d8] sm:$0xff] %v5928_v59  ;;  %v5956_v28 = vld [vmem:[%s8575_s24 + $0x2f0] sm:$0xff]  ;;  %v5958_v31 = vld [vmem:[%s8575_s24 + $0x2f8] sm:$0xff] }
 0x37c   : > { %5931 = vst [vmem:[%s9589_s16 + $0x4e0] sm:$0xff] %v5930_v34  ;;  %5933 = vst [vmem:[%s9589_s16 + $0x4e8] sm:$0xff] %v5932_v18  ;;  %v5960_v53 = vld [vmem:[%s8575_s24 + $0x300] sm:$0xff]  ;;  %v5962_v32 = vld [vmem:[%s8575_s24 + $0x308] sm:$0xff] }
 0x37d   : > { %5935 = vst [vmem:[%s9589_s16 + $0x4f0] sm:$0xff] %v5934_v33  ;;  %5937 = vst [vmem:[%s9589_s16 + $0x4f8] sm:$0xff] %v5936_v14  ;;  %v5964_v3 = vld [vmem:[%s8575_s24 + $0x310] sm:$0xff]  ;;  %v5966_v56 = vld [vmem:[%s8575_s24 + $0x318] sm:$0xff] }
 0x37e   : > { %5939 = vst [vmem:[%s9589_s16 + $0x500] sm:$0xff] %v5938_v44  ;;  %5941 = vst [vmem:[%s9589_s16 + $0x508] sm:$0xff] %v5940_v19  ;;  %v5968_v6 = vld [vmem:[%s8575_s24 + $0x320] sm:$0xff]  ;;  %v5970_v2 = vld [vmem:[%s8575_s24 + $0x328] sm:$0xff] }
 0x37f   : > { %5943 = vst [vmem:[%s9589_s16 + $0x510] sm:$0xff] %v5942_v7  ;;  %5945 = vst [vmem:[%s9589_s16 + $0x518] sm:$0xff] %v5944_v61  ;;  %v5972_v51 = vld [vmem:[%s8575_s24 + $0x330] sm:$0xff]  ;;  %v5974_v39 = vld [vmem:[%s8575_s24 + $0x338] sm:$0xff] }
 0x380   : > { %5947 = vst [vmem:[%s9589_s16 + $0x520] sm:$0xff] %v5946_v37  ;;  %5949 = vst [vmem:[%s9589_s16 + $0x5a0] sm:$0xff] %v5948_v25  ;;  %v5976_v57 = vld [vmem:[%s8575_s24 + $0x340] sm:$0xff] }
 0x381   : > { %5951 = vst [vmem:[%s9589_s16 + $0x5a8] sm:$0xff] %v5950_v49  ;;  %5953 = vst [vmem:[%s9589_s16 + $0x5b0] sm:$0xff] %v5952_v13 }
 0x382   : > { %5955 = vst [vmem:[%s9589_s16 + $0x5b8] sm:$0xff] %v5954_v62  ;;  %5957 = vst [vmem:[%s9589_s16 + $0x5c0] sm:$0xff] %v5956_v28 }
 0x383   : > { %5959 = vst [vmem:[%s9589_s16 + $0x5c8] sm:$0xff] %v5958_v31  ;;  %5961 = vst [vmem:[%s9589_s16 + $0x5d0] sm:$0xff] %v5960_v53 }
 0x384   : > { %5963 = vst [vmem:[%s9589_s16 + $0x5d8] sm:$0xff] %v5962_v32  ;;  %5965 = vst [vmem:[%s9589_s16 + $0x5e0] sm:$0xff] %v5964_v3 }
 0x385   : > { %5967 = vst [vmem:[%s9589_s16 + $0x5e8] sm:$0xff] %v5966_v56  ;;  %5969 = vst [vmem:[%s9589_s16 + $0x5f0] sm:$0xff] %v5968_v6 }
 0x386   : > { %5971 = vst [vmem:[%s9589_s16 + $0x5f8] sm:$0xff] %v5970_v2  ;;  %5973 = vst [vmem:[%s9589_s16 + $0x600] sm:$0xff] %v5972_v51 }
 0x387   : > { %5975 = vst [vmem:[%s9589_s16 + $0x608] sm:$0xff] %v5974_v39  ;;  %5977 = vst [vmem:[%s9589_s16 + $0x610] sm:$0xff] %v5976_v57 }
 0x388 PF: > { %p12_p10 = scmp.ge.s32.totalorder %s7895_s14, 4   ;;  %s9817_s9 = smov %s7843_s10 }
 0x389   : > { %s9818_s10 = smov %s7847_s11  ;;  %s9819_s11 = smov %s7905_s17 }
 0x38a   : > { %s9820_s12 = smov %s7895_s14  ;;  %14 = sbr.rel (!%p12_p10) target bundleno = 3 (0x3), region = 91 }
 0x38f   :  { %5993 = vsyncpa [#allocation3], 1 }
 0x390   :  { %5995 = vsyncpa [#allocation3 + $0x1], 1 }

</bundles_post_ra>
